<compile_context>
chip_gen: v7x
topology: tpu7x:2x2x1
jax: 0.10.0
libtpu: 0.0.40
codegen_flags: <defaults>
</compile_context>

<pallas_src>
import math

import jax
import jax.numpy as jnp
from jax.scipy.linalg import block_diag
from jax.experimental import pallas as pl
from jax.experimental.pallas import tpu as pltpu

# ----------------------------- synthetic config -----------------------------
B = 2                          # batch (number of multi-view samples)
V = 4                          # cameras per sample (uniform here)
BN = B * V
C_IN = 16                      # cfg.IN_CHANNELS
EMBED = 32                     # cfg.EMBED_DIMS == cfg.POINTS_FEAT_DIM
E2 = EMBED // 2
PT_FEAT = EMBED
NUM_FEATS = EMBED // 2         # SinePositionalEncoding3D NUM_FEATS
PE_CH = 3 * NUM_FEATS          # == EMBED * 3 // 2 (adapt_pos3d in_channels)
HF = WF = 16                   # feature-map spatial size
HW = HF * WF
VHW = V * HW
INP_H = INP_W = 64             # inp_img_shape
NSAMPLE = 64                   # cfg.N_SAMPLE
RADIUS = 0.2                   # cfg.RADIUS_SAMPLE
NUM_PREDS = 3                  # cfg.NUM_PREDS
NUM_PTS = 799                  # 21 MANO joints + 778 vertices
NPTS_PAD = 1024                # lane-dense padding of NUM_PTS for the reg head

# The in-VMEM replication of torch's raw .view(1, -1, V, C) relies on each scrambled row
# (length V*EMBED) covering exactly two source channels' full sample vectors.
assert V * EMBED == 2 * NSAMPLE
assert EMBED % 2 == 0


# =============================== Pallas kernel ===============================
def _poem_fused_kernel(x_ref, pe_ref, w_in_ref, s_ref,
                       w0a_ref, b0a_ref, w0b_ref, b0b_ref, w0bm_ref,
                       tseg_ref, tfold_ref,
                       w1a_ref, b1a_ref, w1b_ref, b1b_ref,
                       qf_ref, w0s_ref, b0s_ref, w1bd_ref, b1s_ref,
                       out_m_ref, out_r_ref):
    """One batch sample: input_proj + folded PE + grid_sample + attn merge (+ reg head).

    x_ref:  (1, C_IN, V*HW)    feature maps, transposed / lane-dense
    pe_ref: (EMBED, V*HW)      adapt_pos3d(PE)+b_pe+b_in, transposed, channel-permuted
    w_in_ref: (EMBED, C_IN)    input_proj weight^T, channel-permuted (even|odd)
    s_ref:  (1, V, HW, 2*NS)   per-view [S^T | S^T] bilinear sampling matrices
    out_m:  (1, NSAMPLE, EMBED)        merged per-sample features (q1 + merged)
    out_r:  (1, NUM_PREDS*3, NPTS_PAD) stacked reg_branches offsets, transposed
    """
    f32 = jnp.float32

    # (1) input_proj + constant-folded PE/bias: featT (EMBED, V*HW), rows = even|odd channels
    featT = jnp.dot(w_in_ref[...], x_ref[0], preferred_element_type=f32) + pe_ref[...]

    # (2) per-view MXU sampling + torch raw-.view relayout done in VMEM.
    #     q128[n, vt*EMBED + c] reproduces the scrambled slab exactly.
    lane = jax.lax.broadcasted_iota(jnp.int32, (E2, 2 * NSAMPLE), 1)
    even_sel = lane < NSAMPLE
    qblks = []
    for v in range(V):
        fv = featT[:, v * HW:(v + 1) * HW]                                   # (E, HW)
        t = jnp.dot(fv, s_ref[0, v], preferred_element_type=f32)            # (E, 2*NS)
        # rows 0:E2 = even channels, rows E2:E = odd channels (both halves hold sampled data)
        qblks.append(jnp.where(even_sel, t[0:E2, :], t[E2:EMBED, :]))       # (E2, 2*NS)
    q128 = jnp.concatenate(qblks, axis=0)                                    # (NS, V*EMBED)

    # (3) merge_features_mv with block-diagonal per-"view" weights over the packed lanes
    act = jnp.maximum(
        jnp.dot(q128, w0a_ref[...], preferred_element_type=f32) + b0a_ref[...], 0.0)
    h = jnp.dot(act, w0b_ref[...], preferred_element_type=f32) + b0b_ref[...]        # (NS, V*E2)
    master_t = jnp.dot(act, w0bm_ref[...], preferred_element_type=f32) + b0b_ref[...]  # master tiled
    scores_t = jnp.dot(h * master_t, tseg_ref[...], preferred_element_type=f32)      # per-view scores
    att = jnp.dot(h * scores_t, tfold_ref[...], preferred_element_type=f32)          # (NS, E2)
    m = jnp.maximum(
        jnp.dot(att, w1a_ref[...], preferred_element_type=f32) + b1a_ref[...], 0.0)
    m = jnp.dot(m, w1b_ref[...], preferred_element_type=f32) + b1b_ref[...]          # /V folded in
    out_m_ref[0] = q128[:, 0:EMBED] + m                                               # q1 + merged

    # (4) reg_branches (all NUM_PREDS layers stacked; batch-invariant, lane-dense)
    h_reg = jnp.maximum(
        jnp.dot(w0s_ref[...], qf_ref[...], preferred_element_type=f32) + b0s_ref[...], 0.0)
    out_r_ref[0] = jnp.dot(w1bd_ref[...], h_reg, preferred_element_type=f32) + b1s_ref[...]


def poem_fused(xT, peT, w_inT, s_dup,
               w0a_bd, b0a4, w0b_bd, b0b4, w0b_master, tseg, tfold,
               w1a, b1a, w1b_s, b1b_s,
               qfT, w0s, b0s, w1bd, b1s):
    def c2(a):  # whole-array constant operand (2-D)
        return pl.BlockSpec(a.shape, lambda b: (0, 0))

    return pl.pallas_call(
        _poem_fused_kernel,
        out_shape=(jax.ShapeDtypeStruct((B, NSAMPLE, EMBED), jnp.float32),
                   jax.ShapeDtypeStruct((B, NUM_PREDS * 3, NPTS_PAD), jnp.float32)),
        grid=(B,),
        in_specs=[
            pl.BlockSpec((1, C_IN, VHW), lambda b: (b, 0, 0)),
            c2(peT), c2(w_inT),
            pl.BlockSpec((1, V, HW, 2 * NSAMPLE), lambda b: (b, 0, 0, 0)),
            c2(w0a_bd), c2(b0a4), c2(w0b_bd), c2(b0b4), c2(w0b_master),
            c2(tseg), c2(tfold),
            c2(w1a), c2(b1a), c2(w1b_s), c2(b1b_s),
            c2(qfT), c2(w0s), c2(b0s), c2(w1bd), c2(b1s),
        ],
        out_specs=(pl.BlockSpec((1, NSAMPLE, EMBED), lambda b: (b, 0, 0)),
                   pl.BlockSpec((1, NUM_PREDS * 3, NPTS_PAD), lambda b: (b, 0, 0))),
        compiler_params=pltpu.CompilerParams(dimension_semantics=("parallel",)),
    )(xT, peT, w_inT, s_dup,
      w0a_bd, b0a4, w0b_bd, b0b4, w0b_master, tseg, tfold,
      w1a, b1a, w1b_s, b1b_s, qfT, w0s, b0s, w1bd, b1s)


# ================================ JAX glue ===================================
def sine_positional_encoding_3d(mask, num_feats, temperature=10000.0,
                                normalize=True, scale=2 * math.pi, eps=1e-6, offset=0.0):
    """SinePositionalEncoding3D (PETR-style). mask: (B, N, H, W) -> (B, N, 3*nf, H, W)."""
    not_mask = 1.0 - mask.astype(jnp.float32)
    n_embed = jnp.cumsum(not_mask, axis=1)
    y_embed = jnp.cumsum(not_mask, axis=2)
    x_embed = jnp.cumsum(not_mask, axis=3)
    if normalize:
        n_embed = (n_embed + offset) / (n_embed[:, -1:, :, :] + eps) * scale
        y_embed = (y_embed + offset) / (y_embed[:, :, -1:, :] + eps) * scale
        x_embed = (x_embed + offset) / (x_embed[:, :, :, -1:] + eps) * scale
    dim_t = jnp.arange(num_feats, dtype=jnp.float32)
    dim_t = temperature ** (2.0 * jnp.floor(dim_t / 2.0) / num_feats)

    def enc(e):
        pos = e[..., None] / dim_t
        pos = jnp.stack((jnp.sin(pos[..., 0::2]), jnp.cos(pos[..., 1::2])), axis=5)
        b_, n_, h_, w_ = mask.shape
        return pos.reshape(b_, n_, h_, w_, -1)

    pos = jnp.concatenate((enc(n_embed), enc(y_embed), enc(x_embed)), axis=4)
    return jnp.transpose(pos, (0, 1, 4, 2, 3))


def generate_random_basis(key, n_points, n_dims, radius):
    """Uniform sampling from a d-ball (matches _generate_random_basis)."""
    # TODO(synk): get_bps caches to assets/bps.npy in torch; generated deterministically here.
    k1, k2 = jax.random.split(key)
    x = jax.random.normal(k1, (n_points, n_dims), jnp.float32)
    x_unit = x / jnp.linalg.norm(x, axis=1, keepdims=True)
    r = jax.random.uniform(k2, (n_points, 1), jnp.float32)
    u = r ** (1.0 / n_dims)
    return radius * x_unit * u


def pinhole_project(points_world, img_metas):
    """Project world points into every camera view's pixel plane."""
    # TODO(synk): generate_grid_sample_proj source unavailable; standard pinhole projection assumed.
    extr = img_metas['cam_extr']                                   # (BN, 4, 4)
    intr = img_metas['cam_intr']                                   # (BN, 3, 3)
    pts = jnp.repeat(points_world, V, axis=0)                      # (BN, NSAMPLE, 3)
    cam = jnp.einsum('nij,nsj->nsi', extr[:, :3, :3], pts) + extr[:, None, :3, 3]
    z = cam[..., 2:3]
    fx, fy = intr[:, None, 0, 0:1], intr[:, None, 1, 1:2]
    cx, cy = intr[:, None, 0, 2:3], intr[:, None, 1, 2:3]
    u = fx * cam[..., 0:1] / z + cx
    v = fy * cam[..., 1:2] / z + cy
    return jnp.concatenate([u, v], axis=-1)                        # (BN, NSAMPLE, 2) pixels


def build_sample_matrix(grid_xy, hf, wf):
    """Bilinear F.grid_sample(align_corners=False, padding='zeros') as a weight matrix."""
    # TODO(synk): verify against original generate_grid_sample_proj for half-pixel convention.
    gx, gy = grid_xy[..., 0], grid_xy[..., 1]
    ix = ((gx + 1.0) * wf - 1.0) / 2.0
    iy = ((gy + 1.0) * hf - 1.0) / 2.0
    x0, y0 = jnp.floor(ix), jnp.floor(iy)
    s_mat = jnp.zeros(grid_xy.shape[:-1] + (hf * wf,), jnp.float32)
    for dy in (0, 1):
        for dx in (0, 1):
            xc, yc = x0 + dx, y0 + dy
            w = (1.0 - jnp.abs(ix - xc)) * (1.0 - jnp.abs(iy - yc))
            valid = ((xc >= 0) & (xc < wf) & (yc >= 0) & (yc < hf)).astype(jnp.float32)
            xi = jnp.clip(xc, 0, wf - 1).astype(jnp.int32)
            yi = jnp.clip(yc, 0, hf - 1).astype(jnp.int32)
            oh = jax.nn.one_hot(yi * wf + xi, hf * wf, dtype=jnp.float32)
            s_mat = s_mat + oh * (w * valid)[..., None]
    return s_mat                                                   # (BN, NSAMPLE, HW)


def init_params(key):
    ks = jax.random.split(key, 12)

    def lin(k, fi, fo):
        return (jax.random.normal(k, (fi, fo), jnp.float32) / math.sqrt(fi)).astype(jnp.float32)

    p = {
        'w_in': lin(ks[0], C_IN, EMBED),  'b_in': jnp.full((1, EMBED), 0.01, jnp.float32),
        'w_pe': lin(ks[1], PE_CH, EMBED), 'b_pe': jnp.zeros((1, EMBED), jnp.float32),
        'm_w0a': lin(ks[2], EMBED, EMBED),           'm_b0a': jnp.zeros((1, EMBED), jnp.float32),
        'm_w0b': lin(ks[3], EMBED, EMBED // 2),      'm_b0b': jnp.zeros((1, EMBED // 2), jnp.float32),
        'm_w1a': lin(ks[4], EMBED // 2, EMBED // 2), 'm_b1a': jnp.zeros((1, EMBED // 2), jnp.float32),
        'm_w1b': lin(ks[5], EMBED // 2, EMBED),      'm_b1b': jnp.zeros((1, EMBED), jnp.float32),
        'query_feat_embedding': jax.random.normal(ks[6], (NUM_PTS, PT_FEAT), jnp.float32) * 0.02,
        'r_w0': jax.random.normal(ks[7], (NUM_PREDS, PT_FEAT, PT_FEAT), jnp.float32) / math.sqrt(PT_FEAT),
        'r_b0': jnp.zeros((NUM_PREDS, 1, PT_FEAT), jnp.float32),
        'r_w1': jax.random.normal(ks[8], (NUM_PREDS, PT_FEAT, 3), jnp.float32) / math.sqrt(PT_FEAT),
        'r_b1': jnp.zeros((NUM_PREDS, 1, 3), jnp.float32),
        # TODO(synk): ManoLayer (MANO assets) unavailable; deterministic pseudo template mesh.
        'template_mesh': jax.random.normal(ks[9], (NUM_PTS, 3), jnp.float32) * 0.05,
    }
    return p


def poem_head_forward(params, mlvl_feat, img_metas, reference_joints):
    inp_w, inp_h = img_metas['inp_img_shape']
    inp_res = jnp.array([inp_w, inp_h], jnp.float32)

    # --- constant-folded positional-encoding branch -----------------------
    # masks are identically zero and the sine PE only depends on the view index, so
    # adapt_pos3d(PE) + b_pe + b_in is a batch-invariant (V*HW, EMBED) additive constant.
    masks = jnp.zeros((1, V, HF, WF), jnp.float32)
    pe = sine_positional_encoding_3d(masks, NUM_FEATS)[0]          # (V, PE_CH, HF, WF)
    pe_flat = pe.transpose(0, 2, 3, 1).reshape(VHW, PE_CH)
    pe_bias = pe_flat @ params['w_pe'] + params['b_pe'] + params['b_in']   # (V*HW, EMBED)

    # channel permutation (even channels first, then odd) baked into the projection weights:
    # this makes the in-VMEM replication of torch's raw .view need only aligned slices.
    perm = jnp.array(list(range(0, EMBED, 2)) + list(range(1, EMBED, 2)), jnp.int32)
    w_inT = params['w_in'].T[perm]                                 # (EMBED, C_IN)
    peT = pe_bias.T[perm]                                          # (EMBED, V*HW)

    # transposed, lane-dense feature maps
    xT = mlvl_feat.reshape(B, V, C_IN, HW).transpose(0, 2, 1, 3).reshape(B, C_IN, VHW)

    # BPS points around reference hand center (joint 9)
    hand_center = reference_joints[:, 9, :]                        # (B, 3)
    bps_root = generate_random_basis(jax.random.PRNGKey(7), NSAMPLE, 3, RADIUS)
    bps_world = bps_root[None] + hand_center[:, None, :]           # (B, NSAMPLE, 3)

    proj = pinhole_project(bps_world, img_metas)                   # (BN, NSAMPLE, 2)
    grid = proj / inp_res * 2.0 - 1.0
    s_mat = build_sample_matrix(grid, HF, WF)                      # (BN, NSAMPLE, HW)
    s_T = jnp.transpose(s_mat.reshape(B, V, NSAMPLE, HW), (0, 1, 3, 2))     # (B, V, HW, NS)
    s_dup = jnp.concatenate([s_T, s_T], axis=-1)                   # (B, V, HW, 2*NS)

    # --- merge_features_mv weights, block-diagonal over the lane-packed views ----
    w0a_bd = block_diag(*([params['m_w0a']] * V))                  # (V*E, V*E)
    b0a4 = jnp.tile(params['m_b0a'], (1, V))                       # (1, V*E)
    w0b_bd = block_diag(*([params['m_w0b']] * V))                  # (V*E, V*E2)
    b0b4 = jnp.tile(params['m_b0b'], (1, V))                       # (1, V*E2)
    # broadcasts the master (view-0) features to every view chunk (same bias b0b4)
    w0b_master = jnp.zeros((V * EMBED, V * E2), jnp.float32).at[0:EMBED, :].set(
        jnp.tile(params['m_w0b'], (1, V)))
    ji = jnp.arange(V * E2)[:, None]
    li = jnp.arange(V * E2)[None, :]
    tseg = (ji // E2 == li // E2).astype(jnp.float32)              # per-chunk segment sum
    lo = jnp.arange(E2)[None, :]
    tfold = ((ji % E2 == lo) & (ji >= E2)).astype(jnp.float32)     # fold chunks 1..V-1
    w1a, b1a = params['m_w1a'], params['m_b1a']
    w1b_s, b1b_s = params['m_w1b'] / V, params['m_b1b'] / V        # /cam_num folded in

    # --- reg_branches weights, all prediction layers stacked / transposed ----
    query_feat = params['query_feat_embedding']                    # (799, PT_FEAT), shared
    qfT = jnp.zeros((PT_FEAT, NPTS_PAD), jnp.float32).at[:, :NUM_PTS].set(query_feat.T)
    w0s = jnp.concatenate([params['r_w0'][i].T for i in range(NUM_PREDS)], axis=0)  # (P*F, F)
    b0s = params['r_b0'].reshape(NUM_PREDS * PT_FEAT, 1)
    w1bd = block_diag(*[params['r_w1'][i].T for i in range(NUM_PREDS)])             # (P*3, P*F)
    b1s = params['r_b1'].reshape(NUM_PREDS * 3, 1)

    # ---- the single fused Pallas kernel (grid=(B,), "parallel") ----
    merged_feat, offT_all = poem_fused(
        xT, peT, w_inT, s_dup,
        w0a_bd, b0a4, w0b_bd, b0b4, w0b_master, tseg, tfold,
        w1a, b1a, w1b_s, b1b_s,
        qfT, w0s, b0s, w1bd, b1s)
    # offsets are batch-invariant; every step wrote the same values -> take batch 0
    off = offT_all[0].reshape(NUM_PREDS, 3, NPTS_PAD)[:, :, :NUM_PTS]
    off = jnp.transpose(off, (0, 2, 1))                            # (NUM_PREDS, 799, 3)

    # reference points (query_type == 'KPT')
    template_mesh = params['template_mesh'][None]                  # (1, 799, 3)
    reference_points_world = hand_center[:, None, :] + template_mesh   # (B, 799, 3)

    # normalized point clouds (transformer inputs; kept as diagnostics)
    pt_xyz = (bps_world - hand_center[:, None, :]) / RADIUS
    ref_norm = (reference_points_world - hand_center[:, None, :]) / RADIUS

    # TODO(synk): build_transformer(cfg.TRANSFORMER) decoder unavailable; reg_branches applied
    # to the shared query features (non-parametric output branch).
    # interm_ref_pts = ref_norm + off ; all_coords = interm*radius + center
    #                = ref_world + off*radius
    all_coords = reference_points_world[None, :, :, :] + off[:, None, :, :] * RADIUS
    all_coords = jnp.nan_to_num(all_coords)                        # torch.nan_to_num

    return {
        'all_coords_preds': all_coords,                            # (NUM_PREDS, B, 799, 3)
        'merged_pt_feats': merged_feat,                            # (B, NSAMPLE, EMBED)
        'pt_xyz': pt_xyz,
        'ref_norm': ref_norm,
    }


if __name__ == "__main__":
    key = jax.random.PRNGKey(0)
    kx, kj, kp = jax.random.split(key, 3)

    mlvl_feat = jax.random.normal(kx, (BN, C_IN, HF, WF), jnp.float32)       # NCHW, like torch
    reference_joints = (jax.random.normal(kj, (B, 21, 3), jnp.float32) * 0.05
                        + jnp.array([0.0, 0.0, 0.5], jnp.float32))
    params = init_params(kp)

    intr = jnp.tile(jnp.array([[48.0, 0.0, 32.0],
                               [0.0, 48.0, 32.0],
                               [0.0, 0.0, 1.0]], jnp.float32), (BN, 1, 1))
    extr = jnp.tile(jnp.eye(4, dtype=jnp.float32), (BN, 1, 1))
    extr = extr.at[:, 0, 3].set(0.02 * jnp.arange(BN, dtype=jnp.float32))    # per-view x offset

    img_metas = {
        'inp_img_shape': (INP_W, INP_H),
        'cam_view_num': [V] * B,
        'master_id': [0] * B,
        'cam_intr': intr,
        'cam_extr': extr,
    }

    fwd = jax.jit(lambda p, x, rj: poem_head_forward(p, x, img_metas, rj))
    results = fwd(params, mlvl_feat, reference_joints)
    jax.block_until_ready(results['all_coords_preds'])
    jax.block_until_ready(results['merged_pt_feats'])
    assert results['all_coords_preds'].shape == (NUM_PREDS, B, NUM_PTS, 3)
    assert results['merged_pt_feats'].shape == (B, NSAMPLE, EMBED)
    print("KERNEL_OK")
</pallas_src>

<mosaic_0001>
module attributes {stable_mosaic.version = 11 : i64} {
  func.func @_poem_fused_kernel(%arg0: i32, %arg1: memref<1x16x1024xf32, #tpu.memory_space<vmem>>, %arg2: memref<32x1024xf32, #tpu.memory_space<vmem>>, %arg3: memref<32x16xf32, #tpu.memory_space<vmem>>, %arg4: memref<1x4x256x128xf32, #tpu.memory_space<vmem>>, %arg5: memref<128x128xf32, #tpu.memory_space<vmem>>, %arg6: memref<1x128xf32, #tpu.memory_space<vmem>>, %arg7: memref<128x64xf32, #tpu.memory_space<vmem>>, %arg8: memref<1x64xf32, #tpu.memory_space<vmem>>, %arg9: memref<128x64xf32, #tpu.memory_space<vmem>>, %arg10: memref<64x64xf32, #tpu.memory_space<vmem>>, %arg11: memref<64x16xf32, #tpu.memory_space<vmem>>, %arg12: memref<16x16xf32, #tpu.memory_space<vmem>>, %arg13: memref<1x16xf32, #tpu.memory_space<vmem>>, %arg14: memref<16x32xf32, #tpu.memory_space<vmem>>, %arg15: memref<1x32xf32, #tpu.memory_space<vmem>>, %arg16: memref<32x1024xf32, #tpu.memory_space<vmem>>, %arg17: memref<96x32xf32, #tpu.memory_space<vmem>>, %arg18: memref<96x1xf32, #tpu.memory_space<vmem>>, %arg19: memref<9x96xf32, #tpu.memory_space<vmem>>, %arg20: memref<9x1xf32, #tpu.memory_space<vmem>>, %arg21: memref<1x64x32xf32, #tpu.memory_space<vmem>>, %arg22: memref<1x9x1024xf32, #tpu.memory_space<vmem>>) attributes {dimension_semantics = [#tpu.dimension_semantics<parallel>], iteration_bounds = array<i64: 2>, scalar_prefetch = 0 : i64, scratch_operands = 0 : i64, tpu.core_type = #tpu.core_type<tc>, window_params = [{transform_indices = @transform_0, window_bounds = array<i64: 1, 16, 1024>}, {pipeline_mode = #tpu.pipeline_mode<synchronous>, transform_indices = @transform_1, window_bounds = array<i64: 32, 1024>}, {pipeline_mode = #tpu.pipeline_mode<synchronous>, transform_indices = @transform_2, window_bounds = array<i64: 32, 16>}, {transform_indices = @transform_3, window_bounds = array<i64: 1, 4, 256, 128>}, {pipeline_mode = #tpu.pipeline_mode<synchronous>, transform_indices = @transform_4, window_bounds = array<i64: 128, 128>}, {pipeline_mode = #tpu.pipeline_mode<synchronous>, transform_indices = @transform_5, window_bounds = array<i64: 1, 128>}, {pipeline_mode = #tpu.pipeline_mode<synchronous>, transform_indices = @transform_6, window_bounds = array<i64: 128, 64>}, {pipeline_mode = #tpu.pipeline_mode<synchronous>, transform_indices = @transform_7, window_bounds = array<i64: 1, 64>}, {pipeline_mode = #tpu.pipeline_mode<synchronous>, transform_indices = @transform_8, window_bounds = array<i64: 128, 64>}, {pipeline_mode = #tpu.pipeline_mode<synchronous>, transform_indices = @transform_9, window_bounds = array<i64: 64, 64>}, {pipeline_mode = #tpu.pipeline_mode<synchronous>, transform_indices = @transform_10, window_bounds = array<i64: 64, 16>}, {pipeline_mode = #tpu.pipeline_mode<synchronous>, transform_indices = @transform_11, window_bounds = array<i64: 16, 16>}, {pipeline_mode = #tpu.pipeline_mode<synchronous>, transform_indices = @transform_12, window_bounds = array<i64: 1, 16>}, {pipeline_mode = #tpu.pipeline_mode<synchronous>, transform_indices = @transform_13, window_bounds = array<i64: 16, 32>}, {pipeline_mode = #tpu.pipeline_mode<synchronous>, transform_indices = @transform_14, window_bounds = array<i64: 1, 32>}, {pipeline_mode = #tpu.pipeline_mode<synchronous>, transform_indices = @transform_15, window_bounds = array<i64: 32, 1024>}, {pipeline_mode = #tpu.pipeline_mode<synchronous>, transform_indices = @transform_16, window_bounds = array<i64: 96, 32>}, {pipeline_mode = #tpu.pipeline_mode<synchronous>, transform_indices = @transform_17, window_bounds = array<i64: 96, 1>}, {pipeline_mode = #tpu.pipeline_mode<synchronous>, transform_indices = @transform_18, window_bounds = array<i64: 9, 96>}, {pipeline_mode = #tpu.pipeline_mode<synchronous>, transform_indices = @transform_19, window_bounds = array<i64: 9, 1>}, {transform_indices = @transform_20, window_bounds = array<i64: 1, 64, 32>}, {transform_indices = @transform_21, window_bounds = array<i64: 1, 9, 1024>}]} {
    %c0 = arith.constant 0 : index
    %c0_0 = arith.constant 0 : index
    %0 = vector.load %arg3[%c0, %c0_0] : memref<32x16xf32, #tpu.memory_space<vmem>>, vector<32x16xf32>
    %c0_1 = arith.constant 0 : index
    %c0_2 = arith.constant 0 : index
    %c0_3 = arith.constant 0 : index
    %1 = vector.load %arg1[%c0_1, %c0_2, %c0_3] : memref<1x16x1024xf32, #tpu.memory_space<vmem>>, vector<1x16x1024xf32>
    %2 = vector.shape_cast %1 : vector<1x16x1024xf32> to vector<16x1024xf32>
    %cst = arith.constant dense<0.000000e+00> : vector<32x1024xf32>
    %3 = tpu.matmul %0, %2, %cst {dimension_numbers = #tpu.dot_dimension_numbers<[1], [0], [0], [1], [0, 0, 1, 1], [], []>} : vector<32x16xf32>, vector<16x1024xf32>, vector<32x1024xf32> -> vector<32x1024xf32>
    %c0_4 = arith.constant 0 : index
    %c0_5 = arith.constant 0 : index
    %4 = vector.load %arg2[%c0_4, %c0_5] : memref<32x1024xf32, #tpu.memory_space<vmem>>, vector<32x1024xf32>
    %5 = arith.addf %3, %4 : vector<32x1024xf32>
    %6 = tpu.iota {dimensions = array<i32: 1>} : vector<16x128xi32>
    %c64_i32 = arith.constant 64 : i32
    %7 = vector.broadcast %c64_i32 : i32 to vector<16x128xi32>
    %8 = arith.cmpi slt, %6, %7 : vector<16x128xi32>
    %9 = vector.extract_strided_slice %5 {offsets = [0, 0], sizes = [32, 256], strides = [1, 1]} : vector<32x1024xf32> to vector<32x256xf32>
    %c0_6 = arith.constant 0 : index
    %c0_7 = arith.constant 0 : index
    %c0_8 = arith.constant 0 : index
    %c0_9 = arith.constant 0 : index
    %10 = vector.load %arg4[%c0_6, %c0_7, %c0_8, %c0_9] : memref<1x4x256x128xf32, #tpu.memory_space<vmem>>, vector<1x1x256x128xf32>
    %11 = vector.shape_cast %10 : vector<1x1x256x128xf32> to vector<256x128xf32>
    %cst_10 = arith.constant dense<0.000000e+00> : vector<32x128xf32>
    %12 = tpu.matmul %9, %11, %cst_10 {dimension_numbers = #tpu.dot_dimension_numbers<[1], [0], [0], [1], [0, 0, 1, 1], [], []>} : vector<32x256xf32>, vector<256x128xf32>, vector<32x128xf32> -> vector<32x128xf32>
    %13 = vector.extract_strided_slice %12 {offsets = [0, 0], sizes = [16, 128], strides = [1, 1]} : vector<32x128xf32> to vector<16x128xf32>
    %14 = vector.extract_strided_slice %12 {offsets = [16, 0], sizes = [16, 128], strides = [1, 1]} : vector<32x128xf32> to vector<16x128xf32>
    %15 = arith.select %8, %13, %14 : vector<16x128xi1>, vector<16x128xf32>
    %16 = vector.extract_strided_slice %5 {offsets = [0, 256], sizes = [32, 256], strides = [1, 1]} : vector<32x1024xf32> to vector<32x256xf32>
    %c0_11 = arith.constant 0 : index
    %c1 = arith.constant 1 : index
    %c0_12 = arith.constant 0 : index
    %c0_13 = arith.constant 0 : index
    %17 = vector.load %arg4[%c0_11, %c1, %c0_12, %c0_13] : memref<1x4x256x128xf32, #tpu.memory_space<vmem>>, vector<1x1x256x128xf32>
    %18 = vector.shape_cast %17 : vector<1x1x256x128xf32> to vector<256x128xf32>
    %cst_14 = arith.constant dense<0.000000e+00> : vector<32x128xf32>
    %19 = tpu.matmul %16, %18, %cst_14 {dimension_numbers = #tpu.dot_dimension_numbers<[1], [0], [0], [1], [0, 0, 1, 1], [], []>} : vector<32x256xf32>, vector<256x128xf32>, vector<32x128xf32> -> vector<32x128xf32>
    %20 = vector.extract_strided_slice %19 {offsets = [0, 0], sizes = [16, 128], strides = [1, 1]} : vector<32x128xf32> to vector<16x128xf32>
    %21 = vector.extract_strided_slice %19 {offsets = [16, 0], sizes = [16, 128], strides = [1, 1]} : vector<32x128xf32> to vector<16x128xf32>
    %22 = arith.select %8, %20, %21 : vector<16x128xi1>, vector<16x128xf32>
    %23 = vector.extract_strided_slice %5 {offsets = [0, 512], sizes = [32, 256], strides = [1, 1]} : vector<32x1024xf32> to vector<32x256xf32>
    %c0_15 = arith.constant 0 : index
    %c2 = arith.constant 2 : index
    %c0_16 = arith.constant 0 : index
    %c0_17 = arith.constant 0 : index
    %24 = vector.load %arg4[%c0_15, %c2, %c0_16, %c0_17] : memref<1x4x256x128xf32, #tpu.memory_space<vmem>>, vector<1x1x256x128xf32>
    %25 = vector.shape_cast %24 : vector<1x1x256x128xf32> to vector<256x128xf32>
    %cst_18 = arith.constant dense<0.000000e+00> : vector<32x128xf32>
    %26 = tpu.matmul %23, %25, %cst_18 {dimension_numbers = #tpu.dot_dimension_numbers<[1], [0], [0], [1], [0, 0, 1, 1], [], []>} : vector<32x256xf32>, vector<256x128xf32>, vector<32x128xf32> -> vector<32x128xf32>
    %27 = vector.extract_strided_slice %26 {offsets = [0, 0], sizes = [16, 128], strides = [1, 1]} : vector<32x128xf32> to vector<16x128xf32>
    %28 = vector.extract_strided_slice %26 {offsets = [16, 0], sizes = [16, 128], strides = [1, 1]} : vector<32x128xf32> to vector<16x128xf32>
    %29 = arith.select %8, %27, %28 : vector<16x128xi1>, vector<16x128xf32>
    %30 = vector.extract_strided_slice %5 {offsets = [0, 768], sizes = [32, 256], strides = [1, 1]} : vector<32x1024xf32> to vector<32x256xf32>
    %c0_19 = arith.constant 0 : index
    %c3 = arith.constant 3 : index
    %c0_20 = arith.constant 0 : index
    %c0_21 = arith.constant 0 : index
    %31 = vector.load %arg4[%c0_19, %c3, %c0_20, %c0_21] : memref<1x4x256x128xf32, #tpu.memory_space<vmem>>, vector<1x1x256x128xf32>
    %32 = vector.shape_cast %31 : vector<1x1x256x128xf32> to vector<256x128xf32>
    %cst_22 = arith.constant dense<0.000000e+00> : vector<32x128xf32>
    %33 = tpu.matmul %30, %32, %cst_22 {dimension_numbers = #tpu.dot_dimension_numbers<[1], [0], [0], [1], [0, 0, 1, 1], [], []>} : vector<32x256xf32>, vector<256x128xf32>, vector<32x128xf32> -> vector<32x128xf32>
    %34 = vector.extract_strided_slice %33 {offsets = [0, 0], sizes = [16, 128], strides = [1, 1]} : vector<32x128xf32> to vector<16x128xf32>
    %35 = vector.extract_strided_slice %33 {offsets = [16, 0], sizes = [16, 128], strides = [1, 1]} : vector<32x128xf32> to vector<16x128xf32>
    %36 = arith.select %8, %34, %35 : vector<16x128xi1>, vector<16x128xf32>
    %37 = tpu.concatenate %15, %22, %29, %36 in 0 : vector<16x128xf32>, vector<16x128xf32>, vector<16x128xf32>, vector<16x128xf32> -> vector<64x128xf32>
    %c0_23 = arith.constant 0 : index
    %c0_24 = arith.constant 0 : index
    %38 = vector.load %arg5[%c0_23, %c0_24] : memref<128x128xf32, #tpu.memory_space<vmem>>, vector<128x128xf32>
    %cst_25 = arith.constant dense<0.000000e+00> : vector<64x128xf32>
    %39 = tpu.matmul %37, %38, %cst_25 {dimension_numbers = #tpu.dot_dimension_numbers<[1], [0], [0], [1], [0, 0, 1, 1], [], []>} : vector<64x128xf32>, vector<128x128xf32>, vector<64x128xf32> -> vector<64x128xf32>
    %c0_26 = arith.constant 0 : index
    %c0_27 = arith.constant 0 : index
    %40 = vector.load %arg6[%c0_26, %c0_27] : memref<1x128xf32, #tpu.memory_space<vmem>>, vector<1x128xf32>
    %41 = vector.broadcast %40 : vector<1x128xf32> to vector<64x128xf32>
    %42 = arith.addf %39, %41 : vector<64x128xf32>
    %cst_28 = arith.constant 0.000000e+00 : f32
    %43 = vector.broadcast %cst_28 : f32 to vector<64x128xf32>
    %44 = arith.maximumf %42, %43 : vector<64x128xf32>
    %c0_29 = arith.constant 0 : index
    %c0_30 = arith.constant 0 : index
    %45 = vector.load %arg7[%c0_29, %c0_30] : memref<128x64xf32, #tpu.memory_space<vmem>>, vector<128x64xf32>
    %cst_31 = arith.constant dense<0.000000e+00> : vector<64x64xf32>
    %46 = tpu.matmul %44, %45, %cst_31 {dimension_numbers = #tpu.dot_dimension_numbers<[1], [0], [0], [1], [0, 0, 1, 1], [], []>} : vector<64x128xf32>, vector<128x64xf32>, vector<64x64xf32> -> vector<64x64xf32>
    %c0_32 = arith.constant 0 : index
    %c0_33 = arith.constant 0 : index
    %47 = vector.load %arg8[%c0_32, %c0_33] : memref<1x64xf32, #tpu.memory_space<vmem>>, vector<1x64xf32>
    %48 = vector.broadcast %47 : vector<1x64xf32> to vector<64x64xf32>
    %49 = arith.addf %46, %48 : vector<64x64xf32>
    %c0_34 = arith.constant 0 : index
    %c0_35 = arith.constant 0 : index
    %50 = vector.load %arg9[%c0_34, %c0_35] : memref<128x64xf32, #tpu.memory_space<vmem>>, vector<128x64xf32>
    %cst_36 = arith.constant dense<0.000000e+00> : vector<64x64xf32>
    %51 = tpu.matmul %44, %50, %cst_36 {dimension_numbers = #tpu.dot_dimension_numbers<[1], [0], [0], [1], [0, 0, 1, 1], [], []>} : vector<64x128xf32>, vector<128x64xf32>, vector<64x64xf32> -> vector<64x64xf32>
    %c0_37 = arith.constant 0 : index
    %c0_38 = arith.constant 0 : index
    %52 = vector.load %arg8[%c0_37, %c0_38] : memref<1x64xf32, #tpu.memory_space<vmem>>, vector<1x64xf32>
    %53 = vector.broadcast %52 : vector<1x64xf32> to vector<64x64xf32>
    %54 = arith.addf %51, %53 : vector<64x64xf32>
    %55 = arith.mulf %49, %54 : vector<64x64xf32>
    %c0_39 = arith.constant 0 : index
    %c0_40 = arith.constant 0 : index
    %56 = vector.load %arg10[%c0_39, %c0_40] : memref<64x64xf32, #tpu.memory_space<vmem>>, vector<64x64xf32>
    %cst_41 = arith.constant dense<0.000000e+00> : vector<64x64xf32>
    %57 = tpu.matmul %55, %56, %cst_41 {dimension_numbers = #tpu.dot_dimension_numbers<[1], [0], [0], [1], [0, 0, 1, 1], [], []>} : vector<64x64xf32>, vector<64x64xf32>, vector<64x64xf32> -> vector<64x64xf32>
    %58 = arith.mulf %49, %57 : vector<64x64xf32>
    %c0_42 = arith.constant 0 : index
    %c0_43 = arith.constant 0 : index
    %59 = vector.load %arg11[%c0_42, %c0_43] : memref<64x16xf32, #tpu.memory_space<vmem>>, vector<64x16xf32>
    %cst_44 = arith.constant dense<0.000000e+00> : vector<64x16xf32>
    %60 = tpu.matmul %58, %59, %cst_44 {dimension_numbers = #tpu.dot_dimension_numbers<[1], [0], [0], [1], [0, 0, 1, 1], [], []>} : vector<64x64xf32>, vector<64x16xf32>, vector<64x16xf32> -> vector<64x16xf32>
    %c0_45 = arith.constant 0 : index
    %c0_46 = arith.constant 0 : index
    %61 = vector.load %arg12[%c0_45, %c0_46] : memref<16x16xf32, #tpu.memory_space<vmem>>, vector<16x16xf32>
    %cst_47 = arith.constant dense<0.000000e+00> : vector<64x16xf32>
    %62 = tpu.matmul %60, %61, %cst_47 {dimension_numbers = #tpu.dot_dimension_numbers<[1], [0], [0], [1], [0, 0, 1, 1], [], []>} : vector<64x16xf32>, vector<16x16xf32>, vector<64x16xf32> -> vector<64x16xf32>
    %c0_48 = arith.constant 0 : index
    %c0_49 = arith.constant 0 : index
    %63 = vector.load %arg13[%c0_48, %c0_49] : memref<1x16xf32, #tpu.memory_space<vmem>>, vector<1x16xf32>
    %64 = vector.broadcast %63 : vector<1x16xf32> to vector<64x16xf32>
    %65 = arith.addf %62, %64 : vector<64x16xf32>
    %cst_50 = arith.constant 0.000000e+00 : f32
    %66 = vector.broadcast %cst_50 : f32 to vector<64x16xf32>
    %67 = arith.maximumf %65, %66 : vector<64x16xf32>
    %c0_51 = arith.constant 0 : index
    %c0_52 = arith.constant 0 : index
    %68 = vector.load %arg14[%c0_51, %c0_52] : memref<16x32xf32, #tpu.memory_space<vmem>>, vector<16x32xf32>
    %cst_53 = arith.constant dense<0.000000e+00> : vector<64x32xf32>
    %69 = tpu.matmul %67, %68, %cst_53 {dimension_numbers = #tpu.dot_dimension_numbers<[1], [0], [0], [1], [0, 0, 1, 1], [], []>} : vector<64x16xf32>, vector<16x32xf32>, vector<64x32xf32> -> vector<64x32xf32>
    %c0_54 = arith.constant 0 : index
    %c0_55 = arith.constant 0 : index
    %70 = vector.load %arg15[%c0_54, %c0_55] : memref<1x32xf32, #tpu.memory_space<vmem>>, vector<1x32xf32>
    %71 = vector.broadcast %70 : vector<1x32xf32> to vector<64x32xf32>
    %72 = arith.addf %69, %71 : vector<64x32xf32>
    %73 = vector.extract_strided_slice %37 {offsets = [0, 0], sizes = [64, 32], strides = [1, 1]} : vector<64x128xf32> to vector<64x32xf32>
    %74 = arith.addf %73, %72 : vector<64x32xf32>
    %c0_56 = arith.constant 0 : index
    %c0_57 = arith.constant 0 : index
    %c0_58 = arith.constant 0 : index
    %75 = vector.load %arg21[%c0_56, %c0_57, %c0_58] : memref<1x64x32xf32, #tpu.memory_space<vmem>>, vector<1x64x32xf32>
    %76 = vector.shape_cast %75 : vector<1x64x32xf32> to vector<64x32xf32>
    %77 = vector.shape_cast %74 : vector<64x32xf32> to vector<1x64x32xf32>
    tpu.vector_store %arg21[%c0_56, %c0_57, %c0_58], %77 {strides = array<i32>} : memref<1x64x32xf32, #tpu.memory_space<vmem>>, vector<1x64x32xf32>,
    %c0_59 = arith.constant 0 : index
    %c0_60 = arith.constant 0 : index
    %78 = vector.load %arg17[%c0_59, %c0_60] : memref<96x32xf32, #tpu.memory_space<vmem>>, vector<96x32xf32>
    %c0_61 = arith.constant 0 : index
    %c0_62 = arith.constant 0 : index
    %79 = vector.load %arg16[%c0_61, %c0_62] : memref<32x1024xf32, #tpu.memory_space<vmem>>, vector<32x1024xf32>
    %cst_63 = arith.constant dense<0.000000e+00> : vector<96x1024xf32>
    %80 = tpu.matmul %78, %79, %cst_63 {dimension_numbers = #tpu.dot_dimension_numbers<[1], [0], [0], [1], [0, 0, 1, 1], [], []>} : vector<96x32xf32>, vector<32x1024xf32>, vector<96x1024xf32> -> vector<96x1024xf32>
    %c0_64 = arith.constant 0 : index
    %c0_65 = arith.constant 0 : index
    %81 = vector.load %arg18[%c0_64, %c0_65] : memref<96x1xf32, #tpu.memory_space<vmem>>, vector<96x1xf32>
    %82 = vector.broadcast %81 : vector<96x1xf32> to vector<96x1024xf32>
    %83 = arith.addf %80, %82 : vector<96x1024xf32>
    %cst_66 = arith.constant 0.000000e+00 : f32
    %84 = vector.broadcast %cst_66 : f32 to vector<96x1024xf32>
    %85 = arith.maximumf %83, %84 : vector<96x1024xf32>
    %c0_67 = arith.constant 0 : index
    %c0_68 = arith.constant 0 : index
    %86 = vector.load %arg19[%c0_67, %c0_68] : memref<9x96xf32, #tpu.memory_space<vmem>>, vector<9x96xf32>
    %cst_69 = arith.constant dense<0.000000e+00> : vector<9x1024xf32>
    %87 = tpu.matmul %86, %85, %cst_69 {dimension_numbers = #tpu.dot_dimension_numbers<[1], [0], [0], [1], [0, 0, 1, 1], [], []>} : vector<9x96xf32>, vector<96x1024xf32>, vector<9x1024xf32> -> vector<9x1024xf32>
    %c0_70 = arith.constant 0 : index
    %c0_71 = arith.constant 0 : index
    %88 = vector.load %arg20[%c0_70, %c0_71] : memref<9x1xf32, #tpu.memory_space<vmem>>, vector<9x1xf32>
    %89 = vector.broadcast %88 : vector<9x1xf32> to vector<9x1024xf32>
    %90 = arith.addf %87, %89 : vector<9x1024xf32>
    %c0_72 = arith.constant 0 : index
    %c0_73 = arith.constant 0 : index
    %c0_74 = arith.constant 0 : index
    %91 = vector.load %arg22[%c0_72, %c0_73, %c0_74] : memref<1x9x1024xf32, #tpu.memory_space<vmem>>, vector<1x9x1024xf32>
    %92 = vector.shape_cast %91 : vector<1x9x1024xf32> to vector<9x1024xf32>
    %93 = vector.shape_cast %90 : vector<9x1024xf32> to vector<1x9x1024xf32>
    tpu.vector_store %arg22[%c0_72, %c0_73, %c0_74], %93 {strides = array<i32>} : memref<1x9x1024xf32, #tpu.memory_space<vmem>>, vector<1x9x1024xf32>,
    return
  }
  func.func @transform_0(%arg0: i32) -> (i32, i32, i32) {
    %c0_i32 = arith.constant 0 : i32
    %c0_i32_0 = arith.constant 0 : i32
    %c0_i32_1 = arith.constant 0 : i32
    return %arg0, %c0_i32, %c0_i32_0 : i32, i32, i32
  }
  func.func @transform_1(%arg0: i32) -> (i32, i32) {
    %c0_i32 = arith.constant 0 : i32
    %c0_i32_0 = arith.constant 0 : i32
    %c0_i32_1 = arith.constant 0 : i32
    return %c0_i32, %c0_i32_0 : i32, i32
  }
  func.func @transform_2(%arg0: i32) -> (i32, i32) {
    %c0_i32 = arith.constant 0 : i32
    %c0_i32_0 = arith.constant 0 : i32
    %c0_i32_1 = arith.constant 0 : i32
    return %c0_i32, %c0_i32_0 : i32, i32
  }
  func.func @transform_3(%arg0: i32) -> (i32, i32, i32, i32) {
    %c0_i32 = arith.constant 0 : i32
    %c0_i32_0 = arith.constant 0 : i32
    %c0_i32_1 = arith.constant 0 : i32
    %c0_i32_2 = arith.constant 0 : i32
    return %arg0, %c0_i32, %c0_i32_0, %c0_i32_1 : i32, i32, i32, i32
  }
  func.func @transform_4(%arg0: i32) -> (i32, i32) {
    %c0_i32 = arith.constant 0 : i32
    %c0_i32_0 = arith.constant 0 : i32
    %c0_i32_1 = arith.constant 0 : i32
    return %c0_i32, %c0_i32_0 : i32, i32
  }
  func.func @transform_5(%arg0: i32) -> (i32, i32) {
    %c0_i32 = arith.constant 0 : i32
    %c0_i32_0 = arith.constant 0 : i32
    %c0_i32_1 = arith.constant 0 : i32
    return %c0_i32, %c0_i32_0 : i32, i32
  }
  func.func @transform_6(%arg0: i32) -> (i32, i32) {
    %c0_i32 = arith.constant 0 : i32
    %c0_i32_0 = arith.constant 0 : i32
    %c0_i32_1 = arith.constant 0 : i32
    return %c0_i32, %c0_i32_0 : i32, i32
  }
  func.func @transform_7(%arg0: i32) -> (i32, i32) {
    %c0_i32 = arith.constant 0 : i32
    %c0_i32_0 = arith.constant 0 : i32
    %c0_i32_1 = arith.constant 0 : i32
    return %c0_i32, %c0_i32_0 : i32, i32
  }
  func.func @transform_8(%arg0: i32) -> (i32, i32) {
    %c0_i32 = arith.constant 0 : i32
    %c0_i32_0 = arith.constant 0 : i32
    %c0_i32_1 = arith.constant 0 : i32
    return %c0_i32, %c0_i32_0 : i32, i32
  }
  func.func @transform_9(%arg0: i32) -> (i32, i32) {
    %c0_i32 = arith.constant 0 : i32
    %c0_i32_0 = arith.constant 0 : i32
    %c0_i32_1 = arith.constant 0 : i32
    return %c0_i32, %c0_i32_0 : i32, i32
  }
  func.func @transform_10(%arg0: i32) -> (i32, i32) {
    %c0_i32 = arith.constant 0 : i32
    %c0_i32_0 = arith.constant 0 : i32
    %c0_i32_1 = arith.constant 0 : i32
    return %c0_i32, %c0_i32_0 : i32, i32
  }
  func.func @transform_11(%arg0: i32) -> (i32, i32) {
    %c0_i32 = arith.constant 0 : i32
    %c0_i32_0 = arith.constant 0 : i32
    %c0_i32_1 = arith.constant 0 : i32
    return %c0_i32, %c0_i32_0 : i32, i32
  }
  func.func @transform_12(%arg0: i32) -> (i32, i32) {
    %c0_i32 = arith.constant 0 : i32
    %c0_i32_0 = arith.constant 0 : i32
    %c0_i32_1 = arith.constant 0 : i32
    return %c0_i32, %c0_i32_0 : i32, i32
  }
  func.func @transform_13(%arg0: i32) -> (i32, i32) {
    %c0_i32 = arith.constant 0 : i32
    %c0_i32_0 = arith.constant 0 : i32
    %c0_i32_1 = arith.constant 0 : i32
    return %c0_i32, %c0_i32_0 : i32, i32
  }
  func.func @transform_14(%arg0: i32) -> (i32, i32) {
    %c0_i32 = arith.constant 0 : i32
    %c0_i32_0 = arith.constant 0 : i32
    %c0_i32_1 = arith.constant 0 : i32
    return %c0_i32, %c0_i32_0 : i32, i32
  }
  func.func @transform_15(%arg0: i32) -> (i32, i32) {
    %c0_i32 = arith.constant 0 : i32
    %c0_i32_0 = arith.constant 0 : i32
    %c0_i32_1 = arith.constant 0 : i32
    return %c0_i32, %c0_i32_0 : i32, i32
  }
  func.func @transform_16(%arg0: i32) -> (i32, i32) {
    %c0_i32 = arith.constant 0 : i32
    %c0_i32_0 = arith.constant 0 : i32
    %c0_i32_1 = arith.constant 0 : i32
    return %c0_i32, %c0_i32_0 : i32, i32
  }
  func.func @transform_17(%arg0: i32) -> (i32, i32) {
    %c0_i32 = arith.constant 0 : i32
    %c0_i32_0 = arith.constant 0 : i32
    %c0_i32_1 = arith.constant 0 : i32
    return %c0_i32, %c0_i32_0 : i32, i32
  }
  func.func @transform_18(%arg0: i32) -> (i32, i32) {
    %c0_i32 = arith.constant 0 : i32
    %c0_i32_0 = arith.constant 0 : i32
    %c0_i32_1 = arith.constant 0 : i32
    return %c0_i32, %c0_i32_0 : i32, i32
  }
  func.func @transform_19(%arg0: i32) -> (i32, i32) {
    %c0_i32 = arith.constant 0 : i32
    %c0_i32_0 = arith.constant 0 : i32
    %c0_i32_1 = arith.constant 0 : i32
    return %c0_i32, %c0_i32_0 : i32, i32
  }
  func.func @transform_20(%arg0: i32) -> (i32, i32, i32) {
    %c0_i32 = arith.constant 0 : i32
    %c0_i32_0 = arith.constant 0 : i32
    %c0_i32_1 = arith.constant 0 : i32
    return %arg0, %c0_i32, %c0_i32_0 : i32, i32, i32
  }
  func.func @transform_21(%arg0: i32) -> (i32, i32, i32) {
    %c0_i32 = arith.constant 0 : i32
    %c0_i32_0 = arith.constant 0 : i32
    %c0_i32_1 = arith.constant 0 : i32
    return %arg0, %c0_i32, %c0_i32_0 : i32, i32, i32
  }
}

</mosaic_0001>

<bundles_post_ra>
// kernel: squeeze.35
= control target key start
LH: loop header
LB: loop body
LE: loop exit
PB: predicated region body
PF: predicated region fallthrough
CT: control target
= control target key end

     0   :  { %vm68_vm0 = vcmask 1047556   ;;  %s384_s0 = inlined_call_operand.vmem [shape: f32[1,9,1024], index: 0, kind: input, shape index: {}]   ;;  %s385_s1 = inlined_call_operand.vmem [shape: f32[3,3,1024], index: 1, kind: output, shape index: {}]  }
   0x1   :  { %v2_v0 = vld [vmem:[%s384_s0] sm:$0xff]   ;;  %v239_v1 = vld [vmem:[%s384_s0 + $0x8] sm:$0xff]   ;;  %v240_v2 = vld [vmem:[%s384_s0 + $0x10] sm:$0xff]  }
   0x2   :  { %3 = vst [vmem:[#allocation0] sm:$0x7] %v2_v0   ;;  %5 = vst [vmem:[#allocation0 + $0x3d] sm:$0x38] %v2_v0   ;;  %v241_v3 = vld [vmem:[%s384_s0 + $0x18] sm:$0xff]   ;;  %v242_v4 = vld [vmem:[%s384_s0 + $0x20] sm:$0xff]  }
   0x3   :  { %7 = vst [vmem:[#allocation0 + $0x7a] sm:$0xc0] %v2_v0   ;;  %11 = vst [vmem:[#allocation0 + $0x8] sm:$0x7] %v239_v1   ;;  %v243_v5 = vld [vmem:[%s384_s0 + $0x28] sm:$0xff]   ;;  %v244_v6 = vld [vmem:[%s384_s0 + $0x30] sm:$0xff]  }
   0x4   :  { %13 = vst [vmem:[#allocation0 + $0x45] sm:$0x38] %v239_v1   ;;  %15 = vst [vmem:[#allocation0 + $0x82] sm:$0xc0] %v239_v1   ;;  %v245_v7 = vld [vmem:[%s384_s0 + $0x38] sm:$0xff]  }
   0x5   :  { %19 = vst [vmem:[#allocation0 + $0x10] sm:$0x7] %v240_v2   ;;  %21 = vst [vmem:[#allocation0 + $0x4d] sm:$0x38] %v240_v2  }
   0x6   :  { %23 = vst [vmem:[#allocation0 + $0x8a] sm:$0xc0] %v240_v2   ;;  %27 = vst [vmem:[#allocation0 + $0x18] sm:$0x7] %v241_v3  }
   0x7   :  { %29 = vst [vmem:[#allocation0 + $0x55] sm:$0x38] %v241_v3   ;;  %31 = vst [vmem:[#allocation0 + $0x92] sm:$0xc0] %v241_v3  }
   0x8   :  { %35 = vst [vmem:[#allocation0 + $0x20] sm:$0x7] %v242_v4   ;;  %37 = vst [vmem:[#allocation0 + $0x5d] sm:$0x38] %v242_v4  }
   0x9   :  { %39 = vst [vmem:[#allocation0 + $0x9a] sm:$0xc0] %v242_v4   ;;  %43 = vst [vmem:[#allocation0 + $0x28] sm:$0x7] %v243_v5   ;;  %v77_v11 = vld [vmem:[#allocation0] sm:$0xf] }
   0xa   :  { %45 = vst [vmem:[#allocation0 + $0x65] sm:$0x38] %v243_v5   ;;  %47 = vst [vmem:[#allocation0 + $0xa2] sm:$0xc0] %v243_v5   ;;  %v81_v12 = vld [vmem:[#allocation0 + $0x8] sm:$0xf] }
   0xb   :  { %v246_v8 = vld [vmem:[%s384_s0 + $0x40] ss:$8 sm:$0xf]   ;;  %51 = vst [vmem:[#allocation0 + $0x30] sm:$0x7] %v244_v6   ;;  %79 = vst [vmem:[%s385_s1] sm:$0xf] %v77_v11 }
   0xc   :  { %53 = vst [vmem:[#allocation0 + $0x6d] sm:$0x38] %v244_v6   ;;  %55 = vst [vmem:[#allocation0 + $0xaa] sm:$0xc0] %v244_v6   ;;  %v86_v13 = vld [vmem:[#allocation0 + $0x10] sm:$0xf] }
   0xd   :  { %59 = vst [vmem:[#allocation0 + $0x38] sm:$0x7] %v245_v7   ;;  %61 = vst [vmem:[#allocation0 + $0x75] sm:$0x38] %v245_v7   ;;  %v92_v14 = vld [vmem:[#allocation0 + $0x18] sm:$0xf] }
   0xe   :  { %63 = vst [vmem:[#allocation0 + $0xb2] sm:$0xc0] %v245_v7   ;;  %v247_v9 = vld [vmem:[%s384_s0 + $0x40] ss:$8 sm:$0xf0]  }
   0xf   :  { %v69_v10 = vsel %vm68_vm0, %v247_v9, %v246_v8  ;;  %248 = vst [vmem:[%s385_s1 + $0x4] sm:$0xf] %v81_v12  ;;  %249 = vst [vmem:[%s385_s1 + $0x8] sm:$0xf] %v86_v13  ;;  %v98_v15 = vld [vmem:[#allocation0 + $0x20] sm:$0xf] }
  0x10   :  { %71 = vst [vmem:[#allocation0 + $0x82] ss:$8 sm:$0xf] %v69_v10   ;;  %73 = vst [vmem:[#allocation0 + $0x82] ss:$8 sm:$0xf0] %v69_v10  }
  0x11   :  { %v104_v16 = vld [vmem:[#allocation0 + $0x28] sm:$0xf]  ;;  %250 = vst [vmem:[%s385_s1 + $0xc] sm:$0xf] %v92_v14  ;;  %251 = vst [vmem:[%s385_s1 + $0x10] sm:$0xf] %v98_v15 }
  0x12   :  { %252 = vst [vmem:[%s385_s1 + $0x14] sm:$0xf] %v104_v16  ;;  %v110_v17 = vld [vmem:[#allocation0 + $0x30] sm:$0xf]  ;;  %v122_v19 = vld [vmem:[#allocation0 + $0x40] sm:$0xf] }
  0x13   :  { %253 = vst [vmem:[%s385_s1 + $0x18] sm:$0xf] %v110_v17  ;;  %255 = vst [vmem:[%s385_s1 + $0x20] sm:$0xf] %v122_v19  ;;  %v128_v20 = vld [vmem:[#allocation0 + $0x48] sm:$0xf] }
  0x14   :  { %v116_v18 = vld [vmem:[#allocation0 + $0x38] sm:$0xf]  ;;  %v134_v21 = vld [vmem:[#allocation0 + $0x50] sm:$0xf]  ;;  %256 = vst [vmem:[%s385_s1 + $0x24] sm:$0xf] %v128_v20 }
  0x15   :  { %254 = vst [vmem:[%s385_s1 + $0x1c] sm:$0xf] %v116_v18  ;;  %v140_v22 = vld [vmem:[#allocation0 + $0x58] sm:$0xf]  ;;  %257 = vst [vmem:[%s385_s1 + $0x28] sm:$0xf] %v134_v21 }
  0x16   :  { %258 = vst [vmem:[%s385_s1 + $0x2c] sm:$0xf] %v140_v22  ;;  %v146_v23 = vld [vmem:[#allocation0 + $0x60] sm:$0xf]  ;;  %v152_v24 = vld [vmem:[#allocation0 + $0x68] sm:$0xf] }
  0x17   :  { %v158_v25 = vld [vmem:[#allocation0 + $0x70] sm:$0xf]  ;;  %259 = vst [vmem:[%s385_s1 + $0x30] sm:$0xf] %v146_v23  ;;  %260 = vst [vmem:[%s385_s1 + $0x34] sm:$0xf] %v152_v24 }
  0x18   :  { %261 = vst [vmem:[%s385_s1 + $0x38] sm:$0xf] %v158_v25  ;;  %v164_v26 = vld [vmem:[#allocation0 + $0x78] sm:$0xf]  ;;  %v170_v27 = vld [vmem:[#allocation0 + $0x80] sm:$0xf] }
  0x19   :  { %v176_v28 = vld [vmem:[#allocation0 + $0x88] sm:$0xf]  ;;  %262 = vst [vmem:[%s385_s1 + $0x3c] sm:$0xf] %v164_v26  ;;  %263 = vst [vmem:[%s385_s1 + $0x40] sm:$0xf] %v170_v27 }
  0x1a   :  { %264 = vst [vmem:[%s385_s1 + $0x44] sm:$0xf] %v176_v28  ;;  %v182_v29 = vld [vmem:[#allocation0 + $0x90] sm:$0xf]  ;;  %v188_v30 = vld [vmem:[#allocation0 + $0x98] sm:$0xf] }
  0x1b   :  { %v194_v31 = vld [vmem:[#allocation0 + $0xa0] sm:$0xf]  ;;  %265 = vst [vmem:[%s385_s1 + $0x48] sm:$0xf] %v182_v29  ;;  %266 = vst [vmem:[%s385_s1 + $0x4c] sm:$0xf] %v188_v30 }
  0x1c   :  { %267 = vst [vmem:[%s385_s1 + $0x50] sm:$0xf] %v194_v31  ;;  %v200_v32 = vld [vmem:[#allocation0 + $0xa8] sm:$0xf]  ;;  %v206_v33 = vld [vmem:[#allocation0 + $0xb0] sm:$0xf] }
  0x1d   :  { %v212_v34 = vld [vmem:[#allocation0 + $0xb8] sm:$0xf]  ;;  %268 = vst [vmem:[%s385_s1 + $0x54] sm:$0xf] %v200_v32  ;;  %269 = vst [vmem:[%s385_s1 + $0x58] sm:$0xf] %v206_v33 }
  0x1e   :  { %270 = vst [vmem:[%s385_s1 + $0x5c] sm:$0xf] %v212_v34 }

// kernel: _lambda_.1
= control target key start
LH: loop header
LB: loop body
LE: loop exit
PB: predicated region body
PF: predicated region fallthrough
CT: control target
= control target key end

     0   :  { %s6320_s0 = inlined_call_operand.vmem [shape: f32[2,16,1024], index: 0, kind: input, shape index: {}]   ;;  %s6321_s1 = inlined_call_operand.vmem [shape: f32[32,1024], index: 1, kind: input, shape index: {}]   ;;  %s6322_s2 = inlined_call_operand.vmem [shape: f32[32,16], index: 2, kind: input, shape index: {}]   ;;  %s6323_s3 = inlined_call_operand.vmem [shape: f32[2,4,256,128], index: 3, kind: input, shape index: {}]   ;;  %s6324_s4 = inlined_call_operand.vmem [shape: f32[128,128], index: 4, kind: input, shape index: {}]   ;;  %s6325_s5 = inlined_call_operand.vmem [shape: f32[1,128], index: 5, kind: input, shape index: {}]   ;;  %s6326_s6 = inlined_call_operand.vmem [shape: f32[128,64], index: 6, kind: input, shape index: {}]   ;;  %s6327_s7 = inlined_call_operand.vmem [shape: f32[1,64], index: 7, kind: input, shape index: {}]   ;;  %s6328_s8 = inlined_call_operand.vmem [shape: f32[128,64], index: 8, kind: input, shape index: {}]   ;;  %s6329_s9 = inlined_call_operand.vmem [shape: f32[64,64], index: 9, kind: input, shape index: {}]   ;;  %s6330_s10 = inlined_call_operand.vmem [shape: f32[64,16], index: 10, kind: input, shape index: {}]   ;;  %s6331_s11 = inlined_call_operand.vmem [shape: f32[16,16], index: 11, kind: input, shape index: {}]   ;;  %s6332_s12 = inlined_call_operand.vmem [shape: f32[1,16], index: 12, kind: input, shape index: {}]   ;;  %s6333_s13 = inlined_call_operand.vmem [shape: f32[16,32], index: 13, kind: input, shape index: {}]   ;;  %s6334_s14 = inlined_call_operand.vmem [shape: f32[1,32], index: 14, kind: input, shape index: {}]   ;;  %s6335_s15 = inlined_call_operand.vmem [shape: f32[32,1024], index: 15, kind: input, shape index: {}]   ;;  %s6336_s16 = inlined_call_operand.vmem [shape: f32[96,32], index: 16, kind: input, shape index: {}]   ;;  %s6337_s17 = inlined_call_operand.vmem [shape: f32[96,1], index: 17, kind: input, shape index: {}]   ;;  %s6338_s18 = inlined_call_operand.vmem [shape: f32[9,96], index: 18, kind: input, shape index: {}]   ;;  %s6339_s19 = inlined_call_operand.vmem [shape: f32[9,1], index: 19, kind: input, shape index: {}]   ;;  %s6340_s20 = inlined_call_operand.vmem [shape: f32[2,64,32], index: 20, kind: output, shape index: {0}]   ;;  %s6341_s21 = inlined_call_operand.vmem [shape: f32[2,9,1024], index: 21, kind: output, shape index: {1}]  }
   0x1   :  { %6347 = sst [smem:[#allocation2_spill]] %s6320_s0 }
   0x2   :  { %6348 = sst [smem:[#allocation3_spill]] %s6321_s1 }
   0x3   :  { %6349 = sst [smem:[#allocation4_spill]] %s6322_s2  ;;  %s5094_s2 = smov 0  }
   0x4   :  { %6350 = sst [smem:[#allocation5_spill]] %s6323_s3 }
   0x5   :  { %6351 = sst [smem:[#allocation6_spill]] %s6324_s4 }
   0x6   :  { %6352 = sst [smem:[#allocation7_spill]] %s6325_s5 }
   0x7 LB: > { %s3811_s25 = sadd.s32 4294967295, %s4980_s2   ;;  %p3815_p0 = scmp.ge.s32.totalorder %s4980_s2, 1  ;;  %s4980_s2 = sphi %s5094_s2, %s32_s2  }
   0x8   : > { %p600_p1 = scmp.lt.s32.totalorder %s4980_s2, 3 }
   0xa   : > { %p601_p2 = pnand %p3815_p0, %p600_p1 }
   0xb   : > { %p670_p3 = scmp.lt.s32.totalorder (!%p601_p2), %s3811_s25, 1  ;;  %v4982_v0 = vmov (!%p601_p2), 0.0   ;;  %s6353_s28 = sld [smem:[#allocation2_spill]] (!%p601_p2)  ;;  %vm742_vm0 = vcmask (!%p601_p2), 130048   ;;  %vm1994_vm2 = vcmask (!%p601_p2), 523264   ;;  %vm2561_vm3 = vcmask (!%p601_p2), 261120  }
   0xc   : > { %604 = sbr.rel (%p601_p2) target bundleno = 2133 (0x855), region = 100  ;;  %819 = vmatprep.mubr.f32.mxu0 (!%p601_p2), %v4982_v0  ;;  %908 = vmatprep.mubr.f32.mxu1 (!%p601_p2), %v4982_v0  ;;  %s6354_s5 = sld [smem:[#allocation5_spill]] (!%p601_p2)  ;;  %vm3380_vm4 = vcmask (!%p601_p2), 785408  }
   0xd   : > { %s6355_s24 = sld [smem:[#allocation4_spill]] (!%p601_p2)  ;;  %s6356_s23 = sld [smem:[#allocation3_spill]] (!%p601_p2) }
   0xe   : > { %s6357_s1 = sld [smem:[#allocation6_spill]] (!%p601_p2) }
  0x13   : > { %s6361_s25 = smov (!%p670_p3, %s3811_s25), 1  ;;  %v5131_v12 = vld [vmem:[%s6355_s24] sm:$0xff]  ;;  %v691_v32 = vld [vmem:[%s6355_s24 + $0x8] sm:$0xff]  ;;  %v5160_v33 = vld [vmem:[%s6355_s24 + $0x10] sm:$0xff] }
  0x14   : > { %s6345_s26 = sshll.u32 %s6361_s25, 7  ;;  %s4031_s0 = sshll.u32 %s6361_s25, 10  ;;  %v5171_v34 = vld [vmem:[%s6355_s24 + $0x18] sm:$0xff] }
  0x15   : > { %s5112_s29 = scalar_lea.vmem %s6353_s28, %s6345_s26  ;;  %s5124_s22 = scalar_lea.vmem %s6354_s5, %s4031_s0 }
  0x16   : > { %v695_v1 = vld [vmem:[%s5112_s29 + $0x8] sm:$0xff]  ;;  %v697_v3 = vld [vmem:[%s5112_s29 + $0x18] sm:$0xff]  ;;  %v694_v6 = vld [vmem:[%s5112_s29] sm:$0xff]  ;;  %s6358_s28 = sld [smem:[#allocation7_spill]]  ;;  %s4032_s27 = sshll.u32 %s6361_s25, 6 }
  0x17   : > { %v703_v2 = vld [vmem:[%s5112_s29 + $0x48] sm:$0xff]  ;;  %v705_v5 = vld [vmem:[%s5112_s29 + $0x58] sm:$0xff]  ;;  %v702_v7 = vld [vmem:[%s5112_s29 + $0x40] sm:$0xff] }
  0x18   : > { %v4554_v4 = vpack.c.bf16 %v703_v2, %v695_v1  ;;  %v4558_v8 = vpack.c.bf16 %v705_v5, %v697_v3  ;;  %v4556_v9 = vpack.c.bf16 %v702_v7, %v694_v6  ;;  %v696_v10 = vld [vmem:[%s5112_s29 + $0x10] sm:$0xff]  ;;  %v699_v13 = vld [vmem:[%s5112_s29 + $0x28] sm:$0xff]  ;;  %v698_v16 = vld [vmem:[%s5112_s29 + $0x20] sm:$0xff] }
  0x19   : > { %v704_v11 = vld [vmem:[%s5112_s29 + $0x50] sm:$0xff]  ;;  %v707_v15 = vld [vmem:[%s5112_s29 + $0x68] sm:$0xff]  ;;  %v706_v17 = vld [vmem:[%s5112_s29 + $0x60] sm:$0xff] }
  0x1a   : > { %4555 = vmatprep.subr.bf16.mxu0 %v4554_v4  ;;  %v4560_v14 = vpack.c.bf16 %v704_v11, %v696_v10  ;;  %4559 = vmatprep.subr.bf16.mxu1 %v4558_v8  ;;  %v4562_v18 = vpack.c.bf16 %v707_v15, %v699_v13  ;;  %v701_v19 = vld [vmem:[%s5112_s29 + $0x38] sm:$0xff]  ;;  %v700_v21 = vld [vmem:[%s5112_s29 + $0x30] sm:$0xff]  ;;  %v4564_v22 = vpack.c.bf16 %v706_v17, %v698_v16  ;;  %v1130_v25 = vld [vmem:[%s5124_s22 + $0x80] sm:$0xff] }
  0x1b   : > { %4557 = vmatpush1.bf16.msra.mxu0 %v4556_v9  ;;  %v709_v20 = vld [vmem:[%s5112_s29 + $0x78] sm:$0xff]  ;;  %v708_v24 = vld [vmem:[%s5112_s29 + $0x70] sm:$0xff]  ;;  %v1131_v26 = vld [vmem:[%s5124_s22 + $0x88] sm:$0xff]  ;;  %s6189_s29 = scalar_lea.vmem %s6340_s20, %s4032_s27 }
  0x1c   : > { %4561 = vmatpush1.bf16.msra.mxu1 %v4560_v14  ;;  %v4566_v23 = vpack.c.bf16 %v709_v20, %v701_v19  ;;  %4563 = vmatprep.subr.bf16.mxu0 %v4562_v18  ;;  %v4568_v27 = vpack.c.bf16 %v708_v24, %v700_v21  ;;  %v4570_v28 = vpack.c.bf16 %v1131_v26, %v1130_v25  ;;  %v3856_v29 = vld [vmem:[%s5124_s22 + $0x180] sm:$0xff]  ;;  %v3857_v30 = vld [vmem:[%s5124_s22 + $0x188] sm:$0xff]  ;;  %v1132_v39 = vld [vmem:[%s5124_s22 + $0x90] sm:$0xff] }
  0x1d   : > { %v4602_v31 = vpack.c.bf16 %v3857_v30, %v3856_v29  ;;  %v1114_v35 = vld [vmem:[%s5124_s22] sm:$0xff]  ;;  %v1115_v36 = vld [vmem:[%s5124_s22 + $0x8] sm:$0xff]  ;;  %v1133_v40 = vld [vmem:[%s5124_s22 + $0x98] sm:$0xff] }
  0x1e   : > { %3824 = vmatmul.mubr.msk.f32.vlgmr.msra.gmra.mrb[0].mxu0 %vm742_vm0, %v5131_v12  ;;  %4567 = vmatprep.subr.bf16.mxu1 %v4566_v23  ;;  %v3840_v37 = vld [vmem:[%s5124_s22 + $0x100] sm:$0xff]  ;;  %v3841_v38 = vld [vmem:[%s5124_s22 + $0x108] sm:$0xff]  ;;  %v3858_v41 = vld [vmem:[%s5124_s22 + $0x190] sm:$0xff]  ;;  %v4572_v43 = vpack.c.bf16 %v1115_v36, %v1114_v35  ;;  %v4574_v45 = vpack.c.bf16 %v1133_v40, %v1132_v39 }
  0x1f   : > { %3828 = vmatmul.mubr.msk.f32.vlgmr.msra.gmra.mrb[0].mxu1 %vm742_vm0, %v5131_v12  ;;  %825 = vmatprep.mubr.f32.mxu0 %v4982_v0  ;;  %v3859_v42 = vld [vmem:[%s5124_s22 + $0x198] sm:$0xff]  ;;  %v4604_v44 = vpack.c.bf16 %v3841_v38, %v3840_v37  ;;  %v1116_v46 = vld [vmem:[%s5124_s22 + $0x10] sm:$0xff]  ;;  %v1134_v51 = vld [vmem:[%s5124_s22 + $0xa0] sm:$0xff] }
  0x20   : > { %914 = vmatprep.mubr.f32.mxu1 %v4982_v0  ;;  %4565 = vmatpush1.bf16.msra.mxu0 %v4564_v22  ;;  %v1117_v47 = vld [vmem:[%s5124_s22 + $0x18] sm:$0xff]  ;;  %v3842_v48 = vld [vmem:[%s5124_s22 + $0x110] sm:$0xff]  ;;  %v4606_v49 = vpack.c.bf16 %v3859_v42, %v3858_v41  ;;  %v1135_v52 = vld [vmem:[%s5124_s22 + $0xa8] sm:$0xff] }
  0x21   : > { %4569 = vmatpush1.bf16.msra.mxu1 %v4568_v27  ;;  %4571 = vmatprep.subr.bf16.mxu0 %v4570_v28  ;;  %v3843_v50 = vld [vmem:[%s5124_s22 + $0x118] sm:$0xff]  ;;  %v3860_v53 = vld [vmem:[%s5124_s22 + $0x1a0] sm:$0xff]  ;;  %v3861_v54 = vld [vmem:[%s5124_s22 + $0x1a8] sm:$0xff]  ;;  %v4576_v55 = vpack.c.bf16 %v1117_v47, %v1116_v46  ;;  %v4578_v57 = vpack.c.bf16 %v1135_v52, %v1134_v51 }
  0x22   : > { %3825 = vmatmul.mubr.msk.f32.gmra.mrb[2].mxu0 %vm742_vm0, %v691_v32  ;;  %4603 = vmatprep.subr.bf16.mxu1 %v4602_v31  ;;  %v4608_v56 = vpack.c.bf16 %v3843_v50, %v3842_v48  ;;  %v1118_v58 = vld [vmem:[%s5124_s22 + $0x20] sm:$0xff]  ;;  %v1119_v59 = vld [vmem:[%s5124_s22 + $0x28] sm:$0xff]  ;;  %v4610_v61 = vpack.c.bf16 %v3861_v54, %v3860_v53  ;;  %v1136_v63 = vld [vmem:[%s5124_s22 + $0xb0] sm:$0xff] }
  0x23   : > { %3829 = vmatmul.mubr.msk.f32.gmra.mrb[2].mxu1 %vm742_vm0, %v691_v32  ;;  %831 = vmatprep.mubr.f32.mxu0 %v4982_v0  ;;  %v3844_v60 = vld [vmem:[%s5124_s22 + $0x120] sm:$0xff]  ;;  %v3845_v62 = vld [vmem:[%s5124_s22 + $0x128] sm:$0xff]  ;;  %v1137_v1 = vld [vmem:[%s5124_s22 + $0xb8] sm:$0xff]  ;;  %v4580_v4 = vpack.c.bf16 %v1119_v59, %v1118_v58 }
  0x24   : > { %920 = vmatprep.mubr.f32.mxu1 %v4982_v0  ;;  %v3862_v2 = vld [vmem:[%s5124_s22 + $0x1b0] sm:$0xff]  ;;  %v3863_v3 = vld [vmem:[%s5124_s22 + $0x1b8] sm:$0xff]  ;;  %v4612_v5 = vpack.c.bf16 %v3845_v62, %v3844_v60  ;;  %v4582_v6 = vpack.c.bf16 %v1137_v1, %v1136_v63  ;;  %v1139_v13 = vld [vmem:[%s5124_s22 + $0xc8] sm:$0xff] }
  0x25   : > { %v1120_v7 = vld [vmem:[%s5124_s22 + $0x30] sm:$0xff]  ;;  %v1121_v8 = vld [vmem:[%s5124_s22 + $0x38] sm:$0xff]  ;;  %v4614_v10 = vpack.c.bf16 %v3863_v3, %v3862_v2  ;;  %v3864_v14 = vld [vmem:[%s5124_s22 + $0x1c0] sm:$0xff] }
  0x26   : > { %3826 = vmatmul.mubr.msk.f32.gmra.mrb[4].mxu0 %vm742_vm0, %v5160_v33  ;;  %v3846_v9 = vld [vmem:[%s5124_s22 + $0x130] sm:$0xff]  ;;  %v3847_v11 = vld [vmem:[%s5124_s22 + $0x138] sm:$0xff]  ;;  %v3865_v15 = vld [vmem:[%s5124_s22 + $0x1c8] sm:$0xff]  ;;  %v4584_v16 = vpack.c.bf16 %v1121_v8, %v1120_v7 }
  0x27   : > { %3830 = vmatmul.mubr.msk.f32.gmra.mrb[4].mxu1 %vm742_vm0, %v5160_v33  ;;  %837 = vmatprep.mubr.f32.mxu0 %v4982_v0  ;;  %v4616_v17 = vpack.c.bf16 %v3847_v11, %v3846_v9  ;;  %v1122_v19 = vld [vmem:[%s5124_s22 + $0x40] sm:$0xff]  ;;  %v1123_v20 = vld [vmem:[%s5124_s22 + $0x48] sm:$0xff]  ;;  %v4618_v22 = vpack.c.bf16 %v3865_v15, %v3864_v14  ;;  %v1140_v24 = vld [vmem:[%s5124_s22 + $0xd0] sm:$0xff] }
  0x28   : > { %926 = vmatprep.mubr.f32.mxu1 %v4982_v0  ;;  %v3848_v21 = vld [vmem:[%s5124_s22 + $0x140] sm:$0xff]  ;;  %v3849_v23 = vld [vmem:[%s5124_s22 + $0x148] sm:$0xff]  ;;  %v1141_v25 = vld [vmem:[%s5124_s22 + $0xd8] sm:$0xff]  ;;  %v4588_v28 = vpack.c.bf16 %v1123_v20, %v1122_v19 }
  0x29   : > { %v3866_v26 = vld [vmem:[%s5124_s22 + $0x1d0] sm:$0xff]  ;;  %v3867_v27 = vld [vmem:[%s5124_s22 + $0x1d8] sm:$0xff]  ;;  %v4620_v29 = vpack.c.bf16 %v3849_v23, %v3848_v21  ;;  %v4590_v30 = vpack.c.bf16 %v1141_v25, %v1140_v24  ;;  %v1142_v36 = vld [vmem:[%s5124_s22 + $0xe0] sm:$0xff] }
  0x2a   : > { %3827 = vmatmul.mubr.msk.f32.gmra.mrb[6].mxu0 %vm742_vm0, %v5171_v34  ;;  %v1124_v31 = vld [vmem:[%s5124_s22 + $0x50] sm:$0xff]  ;;  %v4622_v35 = vpack.c.bf16 %v3867_v27, %v3866_v26  ;;  %v1143_v37 = vld [vmem:[%s5124_s22 + $0xe8] sm:$0xff]  ;;  %v3868_v38 = vld [vmem:[%s5124_s22 + $0x1e0] sm:$0xff] }
  0x2b   : > { %3831 = vmatmul.mubr.msk.f32.gmra.mrb[6].mxu1 %vm742_vm0, %v5171_v34  ;;  %997 = vmatprep.mubr.f32.mxu0 %v4982_v0  ;;  %v3869_v39 = vld [vmem:[%s5124_s22 + $0x1e8] sm:$0xff]  ;;  %v4594_v42 = vpack.c.bf16 %v1143_v37, %v1142_v36  ;;  %v3852_v46 = vld [vmem:[%s5124_s22 + $0x160] sm:$0xff]  ;;  %v1144_v50 = vld [vmem:[%s5124_s22 + $0xf0] sm:$0xff] }
  0x2c   : > { %1086 = vmatprep.mubr.f32.mxu1 %v4982_v0  ;;  %v3853_v47 = vld [vmem:[%s5124_s22 + $0x168] sm:$0xff]  ;;  %v1145_v51 = vld [vmem:[%s5124_s22 + $0xf8] sm:$0xff]  ;;  %v3870_v52 = vld [vmem:[%s5124_s22 + $0x1f0] sm:$0xff] }
  0x2d   : > { %v4598_v53 = vpack.c.bf16 %v1145_v51, %v1144_v50  ;;  %v3871_v54 = vld [vmem:[%s5124_s22 + $0x1f8] sm:$0xff]  ;;  %v3854_v59 = vld [vmem:[%s5124_s22 + $0x170] sm:$0xff]  ;;  %v3888_v62 = vld [vmem:[%s5124_s22 + $0x280] sm:$0xff] }
  0x2e   : > { %3832 = vmatmul.mubr.msk.f32.vlgmr.msra.gmra.mrb[8].mxu0 %vm742_vm0, %v5131_v12  ;;  %v3855_v60 = vld [vmem:[%s5124_s22 + $0x178] sm:$0xff]  ;;  %v3889_v63 = vld [vmem:[%s5124_s22 + $0x288] sm:$0xff]  ;;  %v3920_v1 = vld [vmem:[%s5124_s22 + $0x380] sm:$0xff] }
  0x2f   : > { %3836 = vmatmul.mubr.msk.f32.vlgmr.msra.gmra.mrb[8].mxu1 %vm742_vm0, %v5131_v12  ;;  %1003 = vmatprep.mubr.f32.mxu0 %v4982_v0  ;;  %v1138_v12 = vld [vmem:[%s5124_s22 + $0xc0] sm:$0xff]  ;;  %v4634_v2 = vpack.c.bf16 %v3889_v63, %v3888_v62  ;;  %v3921_v3 = vld [vmem:[%s5124_s22 + $0x388] sm:$0xff]  ;;  %v713_v8 = vld [vmem:[%s6356_s23 + $0x18] sm:$0xff] }
  0x30   : > { %1092 = vmatprep.mubr.f32.mxu1 %v4982_v0  ;;  %4573 = vmatpush3.bf16.msra.mxu0 %v4572_v43  ;;  %v4586_v18 = vpack.c.bf16 %v1139_v13, %v1138_v12  ;;  %v1126_v43 = vld [vmem:[%s5124_s22 + $0x60] sm:$0xff]  ;;  %v711_v7 = vld [vmem:[%s6356_s23 + $0x8] sm:$0xff]  ;;  %v3890_v14 = vld [vmem:[%s5124_s22 + $0x290] sm:$0xff] }
  0x31   : > { %4605 = vmatpush3.bf16.msra.mxu1 %v4604_v44  ;;  %4575 = vmatprep.subr.bf16.mxu0 %v4574_v45  ;;  %v1127_v44 = vld [vmem:[%s5124_s22 + $0x68] sm:$0xff]  ;;  %v4626_v45 = vpack.c.bf16 %v3869_v39, %v3868_v38  ;;  %v3872_v9 = vld [vmem:[%s5124_s22 + $0x200] sm:$0xff]  ;;  %v3891_v15 = vld [vmem:[%s5124_s22 + $0x298] sm:$0xff] }
  0x32   : > { %3833 = vmatmul.mubr.msk.f32.gmra.mrb[10].mxu0 %vm742_vm0, %v691_v32  ;;  %4607 = vmatprep.subr.bf16.mxu1 %v4606_v49  ;;  %v4596_v48 = vpack.c.bf16 %v1127_v44, %v1126_v43  ;;  %v4628_v49 = vpack.c.bf16 %v3853_v47, %v3852_v46  ;;  %v3904_v11 = vld [vmem:[%s5124_s22 + $0x300] sm:$0xff]  ;;  %v3905_v13 = vld [vmem:[%s5124_s22 + $0x308] sm:$0xff]  ;;  %v3922_v19 = vld [vmem:[%s5124_s22 + $0x390] sm:$0xff] }
  0x33   : > { %3837 = vmatmul.mubr.msk.f32.gmra.mrb[10].mxu1 %vm742_vm0, %v691_v32  ;;  %1009 = vmatprep.mubr.f32.mxu0 %v4982_v0  ;;  %v1125_v32 = vld [vmem:[%s5124_s22 + $0x58] sm:$0xff]  ;;  %v720_v24 = vld [vmem:[%s6356_s23 + $0x50] sm:$0xff]  ;;  %v719_v25 = vld [vmem:[%s6356_s23 + $0x48] sm:$0xff] }
  0x34   : > { %1098 = vmatprep.mubr.f32.mxu1 %v4982_v0  ;;  %4577 = vmatpush3.bf16.msra.mxu0 %v4576_v55  ;;  %v4592_v40 = vpack.c.bf16 %v1125_v32, %v1124_v31  ;;  %v1128_v55 = vld [vmem:[%s5124_s22 + $0x70] sm:$0xff]  ;;  %v3923_v20 = vld [vmem:[%s5124_s22 + $0x398] sm:$0xff]  ;;  %v4638_v31 = vpack.c.bf16 %v3891_v15, %v3890_v14  ;;  %v3892_v38 = vld [vmem:[%s5124_s22 + $0x2a0] sm:$0xff] }
  0x35   : > { %4609 = vmatpush3.bf16.msra.mxu1 %v4608_v56  ;;  %4579 = vmatprep.subr.bf16.mxu0 %v4578_v57  ;;  %v1129_v56 = vld [vmem:[%s5124_s22 + $0x78] sm:$0xff]  ;;  %v4630_v57 = vpack.c.bf16 %v3871_v54, %v3870_v52  ;;  %v3874_v32 = vld [vmem:[%s5124_s22 + $0x210] sm:$0xff]  ;;  %v4670_v36 = vpack.c.bf16 %v3923_v20, %v3922_v19  ;;  %v3893_v39 = vld [vmem:[%s5124_s22 + $0x2a8] sm:$0xff] }
  0x36   : > { %3834 = vmatmul.mubr.msk.f32.gmra.mrb[12].mxu0 %vm742_vm0, %v5160_v33  ;;  %4611 = vmatprep.subr.bf16.mxu1 %v4610_v61  ;;  %v4600_v58 = vpack.c.bf16 %v1129_v56, %v1128_v55  ;;  %v4632_v61 = vpack.c.bf16 %v3855_v60, %v3854_v59  ;;  %v721_v26 = vld [vmem:[%s6356_s23 + $0x58] sm:$0xff]  ;;  %v726_v43 = vld [vmem:[%s6356_s23 + $0x80] sm:$0xff]  ;;  %v727_v50 = vld [vmem:[%s6356_s23 + $0x88] sm:$0xff]  ;;  %v4642_v55 = vpack.c.bf16 %v3893_v39, %v3892_v38 }
  0x37   : > { %3838 = vmatmul.mubr.msk.f32.gmra.mrb[12].mxu1 %vm742_vm0, %v5160_v33  ;;  %1015 = vmatprep.mubr.f32.mxu0 %v4982_v0  ;;  %v3850_v33 = vld [vmem:[%s5124_s22 + $0x150] sm:$0xff]  ;;  %v3907_v37 = vld [vmem:[%s5124_s22 + $0x318] sm:$0xff]  ;;  %v3924_v44 = vld [vmem:[%s5124_s22 + $0x3a0] sm:$0xff] }
  0x38   : > { %1104 = vmatprep.mubr.f32.mxu1 %v4982_v0  ;;  %4581 = vmatpush3.bf16.msra.mxu0 %v4580_v4  ;;  %v4666_v4 = vpack.c.bf16 %v3921_v3, %v3920_v1  ;;  %v729_v51 = vld [vmem:[%s6356_s23 + $0x98] sm:$0xff]  ;;  %v3876_v56 = vld [vmem:[%s5124_s22 + $0x220] sm:$0xff]  ;;  %v3894_v62 = vld [vmem:[%s5124_s22 + $0x2b0] sm:$0xff] }
  0x39   : > { %4613 = vmatpush3.bf16.msra.mxu1 %v4612_v5  ;;  %4583 = vmatprep.subr.bf16.mxu0 %v4582_v6  ;;  %v710_v5 = vld [vmem:[%s6356_s23] sm:$0xff]  ;;  %v712_v6 = vld [vmem:[%s6356_s23 + $0x10] sm:$0xff]  ;;  %v3895_v63 = vld [vmem:[%s5124_s22 + $0x2b8] sm:$0xff] }
  0x3a   : > { %3835 = vmatmul.mubr.msk.f32.gmra.mrb[14].mxu0 %vm742_vm0, %v5171_v34  ;;  %4615 = vmatprep.subr.bf16.mxu1 %v4614_v10  ;;  %v3873_v10 = vld [vmem:[%s5124_s22 + $0x208] sm:$0xff]  ;;  %v3910_v19 = vld [vmem:[%s5124_s22 + $0x330] sm:$0xff]  ;;  %v3912_v39 = vld [vmem:[%s5124_s22 + $0x340] sm:$0xff] }
  0x3b   : > { %3839 = vmatmul.mubr.msk.f32.gmra.mrb[14].mxu1 %vm742_vm0, %v5171_v34  ;;  %v3851_v34 = vld [vmem:[%s5124_s22 + $0x158] sm:$0xff]  ;;  %v4636_v27 = vpack.c.bf16 %v3873_v10, %v3872_v9  ;;  %v735_v10 = vld [vmem:[%s6356_s23 + $0xc8] sm:$0xff] }
  0x3c   : > { %4585 = vmatpush3.bf16.msra.mxu0 %v4584_v16  ;;  %v4624_v41 = vpack.c.bf16 %v3851_v34, %v3850_v33  ;;  %v3875_v33 = vld [vmem:[%s5124_s22 + $0x218] sm:$0xff] }
  0x3d   : > { %4617 = vmatpush3.bf16.msra.mxu1 %v4616_v17  ;;  %4587 = vmatprep.subr.bf16.mxu0 %v4586_v18  ;;  %v718_v18 = vld [vmem:[%s6356_s23 + $0x40] sm:$0xff]  ;;  %v4640_v52 = vpack.c.bf16 %v3875_v33, %v3874_v32 }
  0x3e   : > { %4619 = vmatprep.subr.bf16.mxu1 %v4618_v22 }
  0x40   : > { %4589 = vmatpush3.bf16.msra.mxu0 %v4588_v28 }
  0x41   : > { %4621 = vmatpush3.bf16.msra.mxu1 %v4620_v29  ;;  %4591 = vmatprep.subr.bf16.mxu0 %v4590_v30  ;;  %v4668_v30 = vpack.c.bf16 %v3905_v13, %v3904_v11  ;;  %v737_v13 = vld [vmem:[%s6356_s23 + $0xd8] sm:$0xff] }
  0x42   : > { %4623 = vmatprep.subr.bf16.mxu1 %v4622_v35  ;;  %v3906_v35 = vld [vmem:[%s5124_s22 + $0x310] sm:$0xff] }
  0x43   : > { %v4672_v54 = vpack.c.bf16 %v3907_v37, %v3906_v35  ;;  %v3880_v35 = vld [vmem:[%s5124_s22 + $0x240] sm:$0xff] }
  0x44   : > { %4593 = vmatpush3.bf16.msra.mxu0 %v4592_v40 }
  0x45   : > { %4625 = vmatpush3.bf16.msra.mxu1 %v4624_v41  ;;  %4595 = vmatprep.subr.bf16.mxu0 %v4594_v42 }
  0x46   : > { %4627 = vmatprep.subr.bf16.mxu1 %v4626_v45  ;;  %v3925_v45 = vld [vmem:[%s5124_s22 + $0x3a8] sm:$0xff] }
  0x47   : > { %v4674_v60 = vpack.c.bf16 %v3925_v45, %v3924_v44  ;;  %v3899_v44 = vld [vmem:[%s5124_s22 + $0x2d8] sm:$0xff] }
  0x48   : > { %4597 = vmatpush3.bf16.msra.mxu0 %v4596_v48 }
  0x49   : > { %4629 = vmatpush3.bf16.msra.mxu1 %v4628_v49  ;;  %4599 = vmatprep.subr.bf16.mxu0 %v4598_v53  ;;  %v728_v49 = vld [vmem:[%s6356_s23 + $0x90] sm:$0xff] }
  0x4a   : > { %4631 = vmatprep.subr.bf16.mxu1 %v4630_v57  ;;  %v3877_v57 = vld [vmem:[%s5124_s22 + $0x228] sm:$0xff] }
  0x4b   : > { %v4644_v11 = vpack.c.bf16 %v3877_v57, %v3876_v56  ;;  %v3882_v56 = vld [vmem:[%s5124_s22 + $0x250] sm:$0xff]  ;;  %v3883_v57 = vld [vmem:[%s5124_s22 + $0x258] sm:$0xff] }
  0x4c   : > { %4601 = vmatpush3.bf16.msra.mxu0 %v4600_v58  ;;  %v3908_v58 = vld [vmem:[%s5124_s22 + $0x320] sm:$0xff] }
  0x4d   : > { %4633 = vmatpush3.bf16.msra.mxu1 %v4632_v61  ;;  %4635 = vmatprep.subr.bf16.mxu0 %v4634_v2  ;;  %v3909_v61 = vld [vmem:[%s5124_s22 + $0x328] sm:$0xff] }
  0x4e   : > { %4667 = vmatprep.subr.bf16.mxu1 %v4666_v4  ;;  %v734_v4 = vld [vmem:[%s6356_s23 + $0xc0] sm:$0xff]  ;;  %v4676_v15 = vpack.c.bf16 %v3909_v61, %v3908_v58  ;;  %v3914_v58 = vld [vmem:[%s5124_s22 + $0x350] sm:$0xff]  ;;  %v3915_v61 = vld [vmem:[%s5124_s22 + $0x358] sm:$0xff] }
  0xf1   : > { %v821_v12 = vpop.f32.mrb[0].mxu0 }
  0xf2   : > { %v910_v16 = vpop.f32.mrb[0].mxu1  ;;  %v823_v17 = vpop.f32.mrb[1].mxu0  ;;  %v822_v28 = vadd.f32 %v821_v12, %v710_v5  ;;  %v3926_v5 = vld [vmem:[%s5124_s22 + $0x3b0] sm:$0xff] }
  0xf3   : > { %v911_v21 = vadd.f32 %v910_v16, %v712_v6  ;;  %v824_v22 = vadd.f32 %v823_v17, %v711_v7  ;;  %v912_v23 = vpop.f32.mrb[1].mxu1  ;;  %v3927_v6 = vld [vmem:[%s5124_s22 + $0x3b8] sm:$0xff]  ;;  %v736_v12 = vld [vmem:[%s6356_s23 + $0xd0] sm:$0xff]  ;;  %v4646_v16 = vpack.c.bf16 %v3895_v63, %v3894_v62  ;;  %v3900_v62 = vld [vmem:[%s5124_s22 + $0x2e0] sm:$0xff] }
  0xf4   : > { %v913_v29 = vadd.f32 %v912_v23, %v713_v8  ;;  %v3878_v17 = vld [vmem:[%s5124_s22 + $0x230] sm:$0xff]  ;;  %v3896_v23 = vld [vmem:[%s5124_s22 + $0x2c0] sm:$0xff]  ;;  %v3901_v63 = vld [vmem:[%s5124_s22 + $0x2e8] sm:$0xff] }
  0xf5   : > { %v827_v34 = vpop.f32.mrb[2].mxu0  ;;  %1210 = vmatprep.mubr.f32.mxu0 %v824_v22  ;;  %v3911_v22 = vld [vmem:[%s5124_s22 + $0x338] sm:$0xff] }
  0xf6   : > { %v828_v40 = vadd.f32 %v827_v34, %v718_v18  ;;  %v916_v41 = vpop.f32.mrb[2].mxu1  ;;  %1330 = vmatprep.mubr.f32.mxu1 %v913_v29  ;;  %v829_v42 = vpop.f32.mrb[3].mxu0  ;;  %1211 = vmatmul.mubr.f32.vlgmr.msra.gmra.mrb[16].mxu0 %v822_v28  ;;  %v3879_v18 = vld [vmem:[%s5124_s22 + $0x238] sm:$0xff]  ;;  %v3928_v28 = vld [vmem:[%s5124_s22 + $0x3c0] sm:$0xff]  ;;  %v3929_v29 = vld [vmem:[%s5124_s22 + $0x3c8] sm:$0xff]  ;;  %v4680_v37 = vpack.c.bf16 %v3911_v22, %v3910_v19 }
  0xf7   : > { %v917_v46 = vadd.f32 %v916_v41, %v720_v24  ;;  %v830_v47 = vadd.f32 %v829_v42, %v719_v25  ;;  %v918_v48 = vpop.f32.mrb[3].mxu1  ;;  %1331 = vmatmul.mubr.f32.vlgmr.msra.gmra.mrb[16].mxu1 %v911_v21  ;;  %4637 = vmatpush3.bf16.msra.mxu0 %v4636_v27  ;;  %v4678_v21 = vpack.c.bf16 %v3927_v6, %v3926_v5  ;;  %v3897_v24 = vld [vmem:[%s5124_s22 + $0x2c8] sm:$0xff]  ;;  %v3935_v19 = vld [vmem:[%s5124_s22 + $0x3f8] sm:$0xff] }
  0xf8   : > { %v919_v53 = vadd.f32 %v918_v48, %v721_v26  ;;  %4669 = vmatpush3.bf16.msra.mxu1 %v4668_v30  ;;  %4639 = vmatprep.subr.bf16.mxu0 %v4638_v31  ;;  %v4648_v33 = vpack.c.bf16 %v3879_v18, %v3878_v17  ;;  %v3881_v34 = vld [vmem:[%s5124_s22 + $0x248] sm:$0xff]  ;;  %v4650_v38 = vpack.c.bf16 %v3897_v24, %v3896_v23  ;;  %v3931_v48 = vld [vmem:[%s5124_s22 + $0x3d8] sm:$0xff]  ;;  %v3934_v18 = vld [vmem:[%s5124_s22 + $0x3f0] sm:$0xff] }
  0xf9   : > { %v833_v59 = vpop.f32.mrb[4].mxu0  ;;  %1215 = vmatprep.mubr.f32.mxu0 %v830_v47  ;;  %4671 = vmatprep.subr.bf16.mxu1 %v4670_v36  ;;  %v715_v41 = vld [vmem:[%s6356_s23 + $0x28] sm:$0xff]  ;;  %v4682_v42 = vpack.c.bf16 %v3929_v29, %v3928_v28  ;;  %v3930_v47 = vld [vmem:[%s5124_s22 + $0x3d0] sm:$0xff]  ;;  %v4656_v6 = vpack.c.bf16 %v3883_v57, %v3882_v56  ;;  %v4694_v29 = vpack.c.bf16 %v3935_v19, %v3934_v18  ;;  %v1604_v18 = vld [vmem:[%s6357_s1 + $0x58] sm:$0xff] }
  0xfa   : > { %v834_v1 = vadd.f32 %v833_v59, %v726_v43  ;;  %v922_v2 = vpop.f32.mrb[4].mxu1  ;;  %1335 = vmatprep.mubr.f32.mxu1 %v919_v53  ;;  %v835_v3 = vpop.f32.mrb[5].mxu0  ;;  %1216 = vmatmul.mubr.f32.gmra.mrb[18].mxu0 %v828_v40  ;;  %v3913_v40 = vld [vmem:[%s5124_s22 + $0x348] sm:$0xff]  ;;  %v3898_v43 = vld [vmem:[%s5124_s22 + $0x2d0] sm:$0xff] }
  0xfb   : > { %v923_v7 = vadd.f32 %v922_v2, %v728_v49  ;;  %v836_v8 = vadd.f32 %v835_v3, %v727_v50  ;;  %v924_v9 = vpop.f32.mrb[5].mxu1  ;;  %1336 = vmatmul.mubr.f32.gmra.mrb[18].mxu1 %v917_v46  ;;  %4641 = vmatpush3.bf16.msra.mxu0 %v4640_v52  ;;  %v717_v46 = vld [vmem:[%s6356_s23 + $0x38] sm:$0xff]  ;;  %v3932_v2 = vld [vmem:[%s5124_s22 + $0x3e0] sm:$0xff]  ;;  %v3933_v3 = vld [vmem:[%s5124_s22 + $0x3e8] sm:$0xff] }
  0xfc   : > { %v925_v14 = vadd.f32 %v924_v9, %v729_v51  ;;  %4673 = vmatpush3.bf16.msra.mxu1 %v4672_v54  ;;  %4643 = vmatprep.subr.bf16.mxu0 %v4642_v55  ;;  %v4652_v51 = vpack.c.bf16 %v3881_v34, %v3880_v35  ;;  %v4684_v54 = vpack.c.bf16 %v3913_v40, %v3912_v39  ;;  %v3918_v28 = vld [vmem:[%s5124_s22 + $0x370] sm:$0xff]  ;;  %v723_v40 = vld [vmem:[%s6356_s23 + $0x68] sm:$0xff] }
  0xfd   : > { %v839_v20 = vpop.f32.mrb[6].mxu0  ;;  %1220 = vmatprep.mubr.f32.mxu0 %v836_v8  ;;  %4675 = vmatprep.subr.bf16.mxu1 %v4674_v60  ;;  %v4654_v55 = vpack.c.bf16 %v3899_v44, %v3898_v43  ;;  %v4686_v60 = vpack.c.bf16 %v3931_v48, %v3930_v47  ;;  %v4688_v8 = vpack.c.bf16 %v3915_v61, %v3914_v58  ;;  %v725_v43 = vld [vmem:[%s6356_s23 + $0x78] sm:$0xff]  ;;  %v1595_v44 = vld [vmem:[%s6357_s1 + $0x10] sm:$0xff]  ;;  %v1598_v56 = vld [vmem:[%s6357_s1 + $0x28] sm:$0xff] }
  0xfe   : > { %v840_v25 = vadd.f32 %v839_v20, %v734_v4  ;;  %1340 = vmatprep.mubr.f32.mxu1 %v925_v14  ;;  %v841_v26 = vpop.f32.mrb[7].mxu0  ;;  %1221 = vmatmul.mubr.f32.gmra.mrb[20].mxu0 %v834_v1  ;;  %v928_v27 = vpop.f32.mrb[6].mxu1  ;;  %v4658_v9 = vpack.c.bf16 %v3901_v63, %v3900_v62  ;;  %v3917_v14 = vld [vmem:[%s5124_s22 + $0x368] sm:$0xff]  ;;  %v730_v63 = vld [vmem:[%s6356_s23 + $0xa0] sm:$0xff] }
  0xff   : > { %v842_v30 = vadd.f32 %v841_v26, %v735_v10  ;;  %1341 = vmatmul.mubr.f32.gmra.mrb[20].mxu1 %v923_v7  ;;  %4645 = vmatpush3.bf16.msra.mxu0 %v4644_v11  ;;  %v929_v31 = vadd.f32 %v928_v27, %v736_v12  ;;  %v930_v32 = vpop.f32.mrb[7].mxu1  ;;  %v3884_v10 = vld [vmem:[%s5124_s22 + $0x260] sm:$0xff]  ;;  %v3885_v11 = vld [vmem:[%s5124_s22 + $0x268] sm:$0xff]  ;;  %v3886_v26 = vld [vmem:[%s5124_s22 + $0x270] sm:$0xff] }
 0x100   : > { %4677 = vmatpush3.bf16.msra.mxu1 %v4676_v15  ;;  %4647 = vmatprep.subr.bf16.mxu0 %v4646_v16  ;;  %v931_v36 = vadd.f32 %v930_v32, %v737_v13  ;;  %v3916_v12 = vld [vmem:[%s5124_s22 + $0x360] sm:$0xff]  ;;  %v4690_v13 = vpack.c.bf16 %v3933_v3, %v3932_v2  ;;  %v3902_v15 = vld [vmem:[%s5124_s22 + $0x2f0] sm:$0xff]  ;;  %v3903_v16 = vld [vmem:[%s5124_s22 + $0x2f8] sm:$0xff]  ;;  %v4660_v22 = vpack.c.bf16 %v3885_v11, %v3884_v10 }
 0x101   : > { %1225 = vmatprep.mubr.f32.mxu0 %v842_v30  ;;  %4679 = vmatprep.subr.bf16.mxu1 %v4678_v21  ;;  %v5353_v45 = vpop.f32.mrb[8].mxu0  ;;  %v4692_v24 = vpack.c.bf16 %v3917_v14, %v3916_v12  ;;  %v3887_v27 = vld [vmem:[%s5124_s22 + $0x278] sm:$0xff]  ;;  %v1593_v32 = vld [vmem:[%s6357_s1] sm:$0xff]  ;;  %v739_v62 = vld [vmem:[%s6356_s23 + $0xe8] sm:$0xff] }
 0x102   : > { %1226 = vmatmul.mubr.f32.gmra.mrb[22].mxu0 %v840_v25  ;;  %1345 = vmatprep.mubr.f32.mxu1 %v931_v36  ;;  %v1001_v49 = vpop.f32.mrb[9].mxu0  ;;  %v5360_v50 = vpop.f32.mrb[8].mxu1  ;;  %v4662_v25 = vpack.c.bf16 %v3903_v16, %v3902_v15  ;;  %v3919_v30 = vld [vmem:[%s5124_s22 + $0x378] sm:$0xff]  ;;  %v4664_v36 = vpack.c.bf16 %v3887_v27, %v3886_v26  ;;  %v1599_v3 = vld [vmem:[%s6357_s1 + $0x30] sm:$0xff]  ;;  %v738_v10 = vld [vmem:[%s6356_s23 + $0xe0] sm:$0xff] }
 0x103   : > { %4649 = vmatpush3.bf16.msra.mxu0 %v4648_v33  ;;  %1346 = vmatmul.mubr.f32.gmra.mrb[22].mxu1 %v929_v31  ;;  %v1002_v52 = vadd.f32 %v1001_v49, %v715_v41  ;;  %v1090_v53 = vpop.f32.mrb[9].mxu1  ;;  %v1594_v33 = vld [vmem:[%s6357_s1 + $0x8] sm:$0xff]  ;;  %v4696_v39 = vpack.c.bf16 %v3919_v30, %v3918_v28  ;;  %v741_v2 = vld [vmem:[%s6356_s23 + $0xf8] sm:$0xff]  ;;  %v1601_v14 = vld [vmem:[%s6357_s1 + $0x40] sm:$0xff] }
 0x104   : > { %4681 = vmatpush3.bf16.msra.mxu1 %v4680_v37  ;;  %4651 = vmatprep.subr.bf16.mxu0 %v4650_v38  ;;  %v1091_v59 = vadd.f32 %v1090_v53, %v717_v46  ;;  %v716_v38 = vld [vmem:[%s6356_s23 + $0x30] sm:$0xff]  ;;  %v4698_v41 = vpack.c.bf16 %v1594_v33, %v1593_v32  ;;  %v1596_v46 = vld [vmem:[%s6357_s1 + $0x18] sm:$0xff]  ;;  %v731_v53 = vld [vmem:[%s6356_s23 + $0xa8] sm:$0xff] }
 0x105   : > { %4683 = vmatprep.subr.bf16.mxu1 %v4682_v42  ;;  %v5368_v1 = vpop.f32.mrb[10].mxu0  ;;  %1450 = vmatprep.mubr.f32.mxu0 %v1002_v52  ;;  %v714_v42 = vld [vmem:[%s6356_s23 + $0x20] sm:$0xff]  ;;  %v1089_v47 = vadd.f32 %v5360_v50, %v716_v38  ;;  %v733_v50 = vld [vmem:[%s6356_s23 + $0xb8] sm:$0xff]  ;;  %v1602_v15 = vld [vmem:[%s6357_s1 + $0x48] sm:$0xff] }
 0x106   : > { %v1007_v4 = vpop.f32.mrb[11].mxu0  ;;  %v5372_v5 = vpop.f32.mrb[10].mxu1  ;;  %1570 = vmatprep.mubr.f32.mxu1 %v1091_v59  ;;  %v1000_v49 = vadd.f32 %v5353_v45, %v714_v42  ;;  %v4702_v45 = vpack.c.bf16 %v1596_v46, %v1595_v44  ;;  %v4714_v16 = vpack.c.bf16 %v1602_v15, %v1601_v14  ;;  %v1729_v26 = vld [vmem:[%s6326_s6] sm:$0xff]  ;;  %v1730_v27 = vld [vmem:[%s6326_s6 + $0x8] sm:$0xff]  ;;  %v1732_v32 = vld [vmem:[%s6326_s6 + $0x18] sm:$0xff] }
 0x107   : > { %4653 = vmatpush3.bf16.msra.mxu0 %v4652_v51  ;;  %v1096_v7 = vpop.f32.mrb[11].mxu1  ;;  %v1008_v48 = vadd.f32 %v1007_v4, %v723_v40  ;;  %v724_v51 = vld [vmem:[%s6356_s23 + $0x70] sm:$0xff]  ;;  %v1600_v4 = vld [vmem:[%s6357_s1 + $0x38] sm:$0xff]  ;;  %v1857_v28 = vld [vmem:[%s6328_s8] sm:$0xff] }
 0x108   : > { %4685 = vmatpush3.bf16.msra.mxu1 %v4684_v54  ;;  %4655 = vmatprep.subr.bf16.mxu0 %v4654_v55  ;;  %v1097_v52 = vadd.f32 %v1096_v7, %v725_v43  ;;  %v722_v54 = vld [vmem:[%s6356_s23 + $0x60] sm:$0xff]  ;;  %v1095_v57 = vadd.f32 %v5372_v5, %v724_v51  ;;  %v4710_v11 = vpack.c.bf16 %v1600_v4, %v1599_v3  ;;  %v1858_v30 = vld [vmem:[%s6328_s8 + $0x8] sm:$0xff]  ;;  %v1735_v38 = vld [vmem:[%s6326_s6 + $0x30] sm:$0xff] }
 0x109   : > { %4687 = vmatprep.subr.bf16.mxu1 %v4686_v60  ;;  %v5380_v17 = vpop.f32.mrb[12].mxu0  ;;  %v1597_v55 = vld [vmem:[%s6357_s1 + $0x20] sm:$0xff]  ;;  %v1006_v59 = vadd.f32 %v5368_v1, %v722_v54  ;;  %v732_v60 = vld [vmem:[%s6356_s23 + $0xb0] sm:$0xff]  ;;  %v5507_v33 = vpack.c.bf16 %v1858_v30, %v1857_v28  ;;  %v1738_v42 = vld [vmem:[%s6326_s6 + $0x48] sm:$0xff] }
 0x10a   : > { %v1013_v20 = vpop.f32.mrb[13].mxu0  ;;  %v5384_v21 = vpop.f32.mrb[12].mxu1  ;;  %v4706_v1 = vpack.c.bf16 %v1598_v56, %v1597_v55  ;;  %v1012_v7 = vadd.f32 %v5380_v17, %v730_v63  ;;  %v1603_v17 = vld [vmem:[%s6357_s1 + $0x50] sm:$0xff]  ;;  %v1740_v46 = vld [vmem:[%s6326_s6 + $0x58] sm:$0xff] }
 0x10b   : > { %4657 = vmatpush3.bf16.msra.mxu0 %v4656_v6  ;;  %v1102_v23 = vpop.f32.mrb[13].mxu1  ;;  %v1014_v58 = vadd.f32 %v1013_v20, %v731_v53  ;;  %v1101_v5 = vadd.f32 %v5384_v21, %v732_v60  ;;  %v4718_v19 = vpack.c.bf16 %v1604_v18, %v1603_v17  ;;  %v1605_v20 = vld [vmem:[%s6357_s1 + $0x60] sm:$0xff]  ;;  %v1606_v21 = vld [vmem:[%s6357_s1 + $0x68] sm:$0xff]  ;;  %v1739_v44 = vld [vmem:[%s6326_s6 + $0x50] sm:$0xff] }
 0x10c   : > { %4689 = vmatpush3.bf16.msra.mxu1 %v4688_v8  ;;  %4659 = vmatprep.subr.bf16.mxu0 %v4658_v9  ;;  %v1103_v61 = vadd.f32 %v1102_v23, %v733_v50  ;;  %v740_v8 = vld [vmem:[%s6356_s23 + $0xf0] sm:$0xff]  ;;  %v1111_v50 = vlaneseq  ;;  %v1868_v30 = vld [vmem:[%s6328_s8 + $0x58] sm:$0xff] }
 0x10d   : > { %4691 = vmatprep.subr.bf16.mxu1 %v4690_v13  ;;  %v5390_v31 = vpop.f32.mrb[14].mxu0  ;;  %v1607_v23 = vld [vmem:[%s6357_s1 + $0x70] sm:$0xff] }
 0x10e   : > { %v1019_v35 = vpop.f32.mrb[15].mxu0  ;;  %v1106_v34 = vpop.f32.mrb[14].mxu1  ;;  %v1018_v13 = vadd.f32 %v5390_v31, %v738_v10  ;;  %v1731_v31 = vld [vmem:[%s6326_s6 + $0x10] sm:$0xff]  ;;  %v5540_v60 = vand.u32 127, %v1111_v50  ;;  %v1860_v10 = vld [vmem:[%s6328_s8 + $0x18] sm:$0xff] }
 0x10f   : > { %4661 = vmatpush3.bf16.msra.mxu0 %v4660_v22  ;;  %v1108_v37 = vpop.f32.mrb[15].mxu1  ;;  %v1020_v6 = vadd.f32 %v1019_v35, %v739_v62  ;;  %v1107_v12 = vadd.f32 %v1106_v34, %v740_v8  ;;  %v4722_v22 = vpack.c.bf16 %v1606_v21, %v1605_v20  ;;  %v4734_v35 = vpack.c.bf16 %v1732_v32, %v1731_v31  ;;  %v1733_v34 = vld [vmem:[%s6326_s6 + $0x20] sm:$0xff]  ;;  %v1862_v20 = vld [vmem:[%s6328_s8 + $0x28] sm:$0xff] }
 0x110   : > { %4693 = vmatpush3.bf16.msra.mxu1 %v4692_v24  ;;  %4663 = vmatprep.subr.bf16.mxu0 %v4662_v25  ;;  %v1109_v9 = vadd.f32 %v1108_v37, %v741_v2  ;;  %v1608_v24 = vld [vmem:[%s6357_s1 + $0x78] sm:$0xff]  ;;  %vm1113_vm1 = vcmp.lt.s32.totalorder %v5540_v60, 64  ;;  %s6359_s1 = sshll.u32 %s6361_s25, 7 }
 0x111   : > { %4695 = vmatprep.subr.bf16.mxu1 %v4694_v29  ;;  %v4726_v25 = vpack.c.bf16 %v1608_v24, %v1607_v23  ;;  %v4730_v29 = vpack.c.bf16 %v1730_v27, %v1729_v26  ;;  %v1863_v23 = vld [vmem:[%s6328_s8 + $0x30] sm:$0xff]  ;;  %v1864_v24 = vld [vmem:[%s6328_s8 + $0x38] sm:$0xff]  ;;  %v1865_v26 = vld [vmem:[%s6328_s8 + $0x40] sm:$0xff]  ;;  %s6246_s4 = scalar_lea.vmem %s6341_s21, %s6359_s1 }
 0x112   : > { %v1866_v27 = vld [vmem:[%s6328_s8 + $0x48] sm:$0xff]  ;;  %v1872_v60 = vld [vmem:[%s6328_s8 + $0x78] sm:$0xff] }
 0x113   : > { %4665 = vmatpush3.bf16.msra.mxu0 %v4664_v36  ;;  %v1734_v36 = vld [vmem:[%s6326_s6 + $0x28] sm:$0xff]  ;;  %v4778_v28 = vpack.c.bf16 %v1866_v27, %v1865_v26  ;;  %v1990_v27 = vld [vmem:[%s6329_s9 + $0x20] sm:$0xff] }
 0x114   : > { %4697 = vmatpush3.bf16.msra.mxu1 %v4696_v39  ;;  %4699 = vmatprep.subr.bf16.mxu0 %v4698_v41  ;;  %v4738_v37 = vpack.c.bf16 %v1734_v36, %v1733_v34  ;;  %v1736_v39 = vld [vmem:[%s6326_s6 + $0x38] sm:$0xff] }
 0x115   : > { %4731 = vmatprep.subr.bf16.mxu1 %v4730_v29  ;;  %v4742_v40 = vpack.c.bf16 %v1736_v39, %v1735_v38 }
 0x116   : > { %1451 = vmatmul.mubr.f32.vlgmr.msra.gmra.mrb[24].mxu0 %v1000_v49  ;;  %v1742_v49 = vld [vmem:[%s6326_s6 + $0x68] sm:$0xff] }
 0x117   : > { %1571 = vmatmul.mubr.f32.vlgmr.msra.gmra.mrb[24].mxu1 %v1089_v47  ;;  %1455 = vmatprep.mubr.f32.mxu0 %v1008_v48  ;;  %v4750_v47 = vpack.c.bf16 %v1740_v46, %v1739_v44  ;;  %v1741_v48 = vld [vmem:[%s6326_s6 + $0x60] sm:$0xff] }
 0x118   : > { %1575 = vmatprep.mubr.f32.mxu1 %v1097_v52  ;;  %4701 = vmatpush3.bf16.msra.mxu0 %v4698_v41  ;;  %v1737_v41 = vld [vmem:[%s6326_s6 + $0x40] sm:$0xff]  ;;  %v4754_v51 = vpack.c.bf16 %v1742_v49, %v1741_v48 }
 0x119   : > { %4703 = vmatprep.subr.bf16.mxu0 %v4702_v45  ;;  %4733 = vmatpush3.bf16.msra.mxu1 %v4730_v29  ;;  %v4746_v43 = vpack.c.bf16 %v1738_v42, %v1737_v41  ;;  %v1867_v29 = vld [vmem:[%s6328_s8 + $0x50] sm:$0xff] }
 0x11a   : > { %1456 = vmatmul.mubr.f32.gmra.mrb[26].mxu0 %v1006_v59  ;;  %4735 = vmatprep.subr.bf16.mxu1 %v4734_v35  ;;  %v4782_v31 = vpack.c.bf16 %v1868_v30, %v1867_v29 }
 0x11b   : > { %1576 = vmatmul.mubr.f32.gmra.mrb[26].mxu1 %v1095_v57  ;;  %1460 = vmatprep.mubr.f32.mxu0 %v1014_v58 }
 0x11c   : > { %1580 = vmatprep.mubr.f32.mxu1 %v1103_v61  ;;  %4705 = vmatpush3.bf16.msra.mxu0 %v4702_v45 }
 0x11d   : > { %4707 = vmatprep.subr.bf16.mxu0 %v4706_v1  ;;  %4737 = vmatpush3.bf16.msra.mxu1 %v4734_v35  ;;  %v1870_v35 = vld [vmem:[%s6328_s8 + $0x68] sm:$0xff] }
 0x11e   : > { %1461 = vmatmul.mubr.f32.gmra.mrb[28].mxu0 %v1012_v7  ;;  %4739 = vmatprep.subr.bf16.mxu1 %v4738_v37 }
 0x11f   : > { %1581 = vmatmul.mubr.f32.gmra.mrb[28].mxu1 %v1101_v5  ;;  %1465 = vmatprep.mubr.f32.mxu0 %v1020_v6 }
 0x120   : > { %1585 = vmatprep.mubr.f32.mxu1 %v1109_v9  ;;  %4709 = vmatpush3.bf16.msra.mxu0 %v4706_v1  ;;  %v1859_v9 = vld [vmem:[%s6328_s8 + $0x10] sm:$0xff] }
 0x121   : > { %4711 = vmatprep.subr.bf16.mxu0 %v4710_v11  ;;  %4741 = vmatpush3.bf16.msra.mxu1 %v4738_v37  ;;  %v4766_v17 = vpack.c.bf16 %v1860_v10, %v1859_v9  ;;  %v3936_v10 = vld [vmem:[%s6358_s28] ss:$0 sm:$0xff] }
 0x122   : > { %1466 = vmatmul.mubr.f32.gmra.mrb[30].mxu0 %v1018_v13  ;;  %4743 = vmatprep.subr.bf16.mxu1 %v4742_v40 }
 0x123   : > { %1586 = vmatmul.mubr.f32.gmra.mrb[30].mxu1 %v1107_v12 }
 0x124   : > { %4713 = vmatpush3.bf16.msra.mxu0 %v4710_v11 }
 0x125   : > { %4715 = vmatprep.subr.bf16.mxu0 %v4714_v16  ;;  %4745 = vmatpush3.bf16.msra.mxu1 %v4742_v40 }
 0x126   : > { %4747 = vmatprep.subr.bf16.mxu1 %v4746_v43 }
 0x128   : > { %4717 = vmatpush3.bf16.msra.mxu0 %v4714_v16 }
 0x129   : > { %4719 = vmatprep.subr.bf16.mxu0 %v4718_v19  ;;  %4749 = vmatpush3.bf16.msra.mxu1 %v4746_v43 }
 0x12a   : > { %4751 = vmatprep.subr.bf16.mxu1 %v4750_v47 }
 0x12c   : > { %4721 = vmatpush3.bf16.msra.mxu0 %v4718_v19  ;;  %v1861_v19 = vld [vmem:[%s6328_s8 + $0x20] sm:$0xff] }
 0x12d   : > { %4723 = vmatprep.subr.bf16.mxu0 %v4722_v22  ;;  %4753 = vmatpush3.bf16.msra.mxu1 %v4750_v47 }
 0x12e   : > { %4755 = vmatprep.subr.bf16.mxu1 %v4754_v51 }
 0x130   : > { %4725 = vmatpush3.bf16.msra.mxu0 %v4722_v22  ;;  %v4770_v22 = vpack.c.bf16 %v1862_v20, %v1861_v19 }
 0x131   : > { %4727 = vmatprep.subr.bf16.mxu0 %v4726_v25  ;;  %4757 = vmatpush3.bf16.msra.mxu1 %v4754_v51 }
 0x134   : > { %4729 = vmatpush3.bf16.msra.mxu0 %v4726_v25  ;;  %v4774_v25 = vpack.c.bf16 %v1864_v24, %v1863_v23 }
 0x135   : > { %4763 = vmatprep.subr.bf16.mxu0 %v5507_v33 }
 0x1c9   : > { %v4066_v52 = vpop.f32.mrb[16].mxu0 }
 0x1ca   : > { %v4067_v53 = vpop.f32.mrb[17].mxu0  ;;  %v4110_v54 = vpop.f32.mrb[16].mxu1 }
 0x1cb   : > { %v4068_v45 = vadd.f32 %v4067_v53, %v4066_v52  ;;  %v4111_v55 = vpop.f32.mrb[17].mxu1 }
 0x1cc   : > { %v4112_v56 = vadd.f32 %v4111_v55, %v4110_v54 }
 0x1cd   : > { %v4069_v57 = vpop.f32.mrb[18].mxu0 }
 0x1ce   : > { %v4113_v58 = vpop.f32.mrb[18].mxu1  ;;  %v4070_v59 = vpop.f32.mrb[19].mxu0 }
 0x1cf   : > { %v4071_v61 = vadd.f32 %v4070_v59, %v4069_v57  ;;  %v4114_v62 = vpop.f32.mrb[19].mxu1 }
 0x1d0   : > { %v4115_v63 = vadd.f32 %v4114_v62, %v4113_v58 }
 0x1d1   : > { %v4072_v2 = vpop.f32.mrb[20].mxu0 }
 0x1d2   : > { %v4116_v1 = vpop.f32.mrb[20].mxu1  ;;  %v4073_v3 = vpop.f32.mrb[21].mxu0 }
 0x1d3   : > { %v4074_v4 = vadd.f32 %v4073_v3, %v4072_v2  ;;  %v4117_v5 = vpop.f32.mrb[21].mxu1  ;;  %v1743_v2 = vld [vmem:[%s6326_s6 + $0x70] sm:$0xff] }
 0x1d4   : > { %v4118_v6 = vadd.f32 %v4117_v5, %v4116_v1  ;;  %v1744_v1 = vld [vmem:[%s6326_s6 + $0x78] sm:$0xff]  ;;  %v1871_v3 = vld [vmem:[%s6328_s8 + $0x70] sm:$0xff] }
 0x1d5   : > { %v4075_v7 = vpop.f32.mrb[22].mxu0  ;;  %v5545_v8 = vsel %vm1113_vm1, %v4068_v45, %v4074_v4  ;;  %v4758_v4 = vpack.c.bf16 %v1744_v1, %v1743_v2  ;;  %v4790_v5 = vpack.c.bf16 %v1872_v60, %v1871_v3  ;;  %v2134_v2 = vld [vmem:[%s6330_s10 + $0x10] sm:$0xff]  ;;  %v2135_v1 = vld [vmem:[%s6330_s10 + $0x18] sm:$0xff] }
 0x1d6   : > { %v4076_v11 = vpop.f32.mrb[23].mxu0  ;;  %4366 = vmatprep.mubr.f32.mxu0 %v5545_v8  ;;  %v4119_v12 = vpop.f32.mrb[22].mxu1  ;;  %v5556_v13 = vsel %vm1113_vm1, %v4112_v56, %v4118_v6  ;;  %v1986_v6 = vld [vmem:[%s6329_s9] sm:$0xff] }
 0x1d7   : > { %v4077_v14 = vadd.f32 %v4076_v11, %v4075_v7  ;;  %v4120_v15 = vpop.f32.mrb[23].mxu1  ;;  %4759 = vmatprep.subr.bf16.mxu1 %v4758_v4  ;;  %v1987_v7 = vld [vmem:[%s6329_s9 + $0x8] sm:$0xff] }
 0x1d8   : > { %v4121_v16 = vadd.f32 %v4120_v15, %v4119_v12  ;;  %4761 = vmatpush3.bf16.msra.mxu1 %v4758_v4  ;;  %v4794_v9 = vpack.c.bf16 %v1987_v7, %v1986_v6 }
 0x1d9   : > { %v5560_v18 = vsel %vm1113_vm1, %v4071_v61, %v4077_v14 }
 0x1da   : > { %4367 = vmatmul.mubr.f32.vlgmr.msra.gmra.mrb[32].mxu0 %v5560_v18  ;;  %v5571_v21 = vsel %vm1113_vm1, %v4115_v63, %v4121_v16  ;;  %4795 = vmatprep.subr.bf16.mxu1 %v4794_v9  ;;  %v1988_v16 = vld [vmem:[%s6329_s9 + $0x10] sm:$0xff] }
 0x1db   : > { %4369 = vmatprep.mubr.f32.mxu0 %v5556_v13  ;;  %4765 = vmatpush3.bf16.msra.mxu0 %v5507_v33  ;;  %v1869_v33 = vld [vmem:[%s6328_s8 + $0x60] sm:$0xff] }
 0x1dc   : > { %4767 = vmatprep.subr.bf16.mxu0 %v4766_v17  ;;  %v4786_v40 = vpack.c.bf16 %v1870_v35, %v1869_v33 }
 0x1de   : > { %4370 = vmatmul.mubr.f32.gmra.mrb[34].mxu0 %v5571_v21 }
 0x1df   : > { %4769 = vmatpush3.bf16.msra.mxu0 %v4766_v17  ;;  %v1989_v17 = vld [vmem:[%s6329_s9 + $0x18] sm:$0xff] }
 0x1e0   : > { %4771 = vmatprep.subr.bf16.mxu0 %v4770_v22 }
 0x1e3   : > { %4773 = vmatpush3.bf16.msra.mxu0 %v4770_v22 }
 0x1e4   : > { %4775 = vmatprep.subr.bf16.mxu0 %v4774_v25 }
 0x1e7   : > { %4777 = vmatpush3.bf16.msra.mxu0 %v4774_v25  ;;  %v4798_v25 = vpack.c.bf16 %v1989_v17, %v1988_v16  ;;  %v2137_v16 = vld [vmem:[%s6330_s10 + $0x28] sm:$0xff] }
 0x1e8   : > { %4779 = vmatprep.subr.bf16.mxu0 %v4778_v28 }
 0x1e9   : > { %v4154_v32 = vpop.f32.mrb[24].mxu0 }
 0x1ea   : > { %v4155_v34 = vpop.f32.mrb[25].mxu0  ;;  %v4198_v36 = vpop.f32.mrb[24].mxu1 }
 0x1eb   : > { %v4156_v37 = vadd.f32 %v4155_v34, %v4154_v32  ;;  %v4199_v38 = vpop.f32.mrb[25].mxu1  ;;  %4781 = vmatpush3.bf16.msra.mxu0 %v4778_v28  ;;  %v1991_v28 = vld [vmem:[%s6329_s9 + $0x28] sm:$0xff] }
 0x1ec   : > { %v4200_v39 = vadd.f32 %v4199_v38, %v4198_v36  ;;  %4783 = vmatprep.subr.bf16.mxu0 %v4782_v31 }
 0x1ed   : > { %v4157_v41 = vpop.f32.mrb[26].mxu0 }
 0x1ee   : > { %v4158_v42 = vpop.f32.mrb[27].mxu0  ;;  %v4201_v43 = vpop.f32.mrb[26].mxu1 }
 0x1ef   : > { %v4159_v44 = vadd.f32 %v4158_v42, %v4157_v41  ;;  %v4202_v46 = vpop.f32.mrb[27].mxu1  ;;  %4785 = vmatpush3.bf16.msra.mxu0 %v4782_v31  ;;  %v4802_v31 = vpack.c.bf16 %v1991_v28, %v1990_v27 }
 0x1f0   : > { %v4203_v47 = vadd.f32 %v4202_v46, %v4201_v43  ;;  %4787 = vmatprep.subr.bf16.mxu0 %v4786_v40  ;;  %v1993_v46 = vld [vmem:[%s6329_s9 + $0x38] sm:$0xff] }
 0x1f1   : > { %v4160_v48 = vpop.f32.mrb[28].mxu0 }
 0x1f2   : > { %v4204_v49 = vpop.f32.mrb[28].mxu1  ;;  %v4161_v51 = vpop.f32.mrb[29].mxu0 }
 0x1f3   : > { %v4162_v52 = vadd.f32 %v4161_v51, %v4160_v48  ;;  %v4205_v53 = vpop.f32.mrb[29].mxu1  ;;  %4789 = vmatpush3.bf16.msra.mxu0 %v4786_v40  ;;  %v2132_v48 = vld [vmem:[%s6330_s10] sm:$0xff] }
 0x1f4   : > { %v4206_v54 = vadd.f32 %v4205_v53, %v4204_v49  ;;  %4791 = vmatprep.subr.bf16.mxu0 %v4790_v5  ;;  %v2133_v49 = vld [vmem:[%s6330_s10 + $0x8] sm:$0xff] }
 0x1f5   : > { %v4163_v50 = vpop.f32.mrb[30].mxu0  ;;  %v5602_v45 = vsel %vm1113_vm1, %v4156_v37, %v4162_v52  ;;  %v4810_v51 = vpack.c.bf16 %v2133_v49, %v2132_v48  ;;  %v3937_v52 = vld [vmem:[%s6327_s7] ss:$0 sm:$0xff] }
 0x1f6   : > { %v4207_v55 = vpop.f32.mrb[30].mxu1  ;;  %v4164_v56 = vpop.f32.mrb[31].mxu0  ;;  %4372 = vmatprep.mubr.f32.mxu0 %v5602_v45  ;;  %v5607_v57 = vsel %vm1113_vm1, %v4200_v39, %v4206_v54 }
 0x1f7   : > { %v4165_v58 = vadd.f32 %v4164_v56, %v4163_v50  ;;  %v4208_v59 = vpop.f32.mrb[31].mxu1  ;;  %4793 = vmatpush3.bf16.msra.mxu0 %v4790_v5 }
 0x1f8   : > { %v4209_v61 = vadd.f32 %v4208_v59, %v4207_v55 }
 0x1f9   : > { %v5611_v62 = vsel %vm1113_vm1, %v4159_v44, %v4165_v58  ;;  %v1992_v44 = vld [vmem:[%s6329_s9 + $0x30] sm:$0xff] }
 0x1fa   : > { %4373 = vmatmul.mubr.f32.gmra.mrb[36].mxu0 %v5611_v62  ;;  %v5616_v63 = vsel %vm1113_vm1, %v4203_v47, %v4209_v61  ;;  %v4806_v47 = vpack.c.bf16 %v1993_v46, %v1992_v44  ;;  %v2269_v46 = vld [vmem:[%s6331_s11] sm:$0xff] }
 0x1fb   : > { %4375 = vmatprep.mubr.f32.mxu0 %v5607_v57 }
 0x1fe   : > { %4376 = vmatmul.mubr.f32.gmra.mrb[38].mxu0 %v5616_v63 }
 0x2ad   : > { %v4368_v11 = vpop.f32.mrb[32].mxu0 }
 0x2ae   : > { %v1688_v12 = vadd.f32 %v4368_v11, %v3936_v10  ;;  %v1682_v14 = vpop.f32.mrb[33].mxu0  ;;  %v4814_v11 = vpack.c.bf16 %v2135_v1, %v2134_v2 }
 0x2af   : > { %v1683_v15 = vadd.f32 %v3936_v10, %v1682_v14 }
 0x2b0   : > { %v1722_v19 = vmax.f32 %v1688_v12, 0.0 }
 0x2b1   : > { %v1721_v20 = vmax.f32 %v1683_v15, 0.0  ;;  %v4371_v22 = vpop.f32.mrb[34].mxu0  ;;  %v2136_v15 = vld [vmem:[%s6330_s10 + $0x20] sm:$0xff] }
 0x2b2   : > { %v1698_v23 = vadd.f32 %v4371_v22, %v3936_v10  ;;  %v1692_v24 = vpop.f32.mrb[35].mxu0 }
 0x2b3   : > { %v1693_v26 = vadd.f32 %v3936_v10, %v1692_v24  ;;  %4410 = vmatprep.mubr.f32.mxu1 %v1721_v20  ;;  %4454 = vmatprep.mubr.f32.mxu0 %v1721_v20  ;;  %v4818_v20 = vpack.c.bf16 %v2137_v16, %v2136_v15 }
 0x2b4   : > { %v1724_v29 = vmax.f32 %v1698_v23, 0.0  ;;  %4411 = vmatmul.mubr.f32.vlgmr.msra.gmra.mrb[32].mxu1 %v1722_v19  ;;  %4455 = vmatmul.mubr.f32.vlgmr.msra.gmra.mrb[40].mxu0 %v1722_v19 }
 0x2b5   : > { %v1723_v30 = vmax.f32 %v1693_v26, 0.0  ;;  %4797 = vmatpush3.bf16.msra.mxu1 %v4794_v9 }
 0x2b6   : > { %4799 = vmatprep.subr.bf16.mxu1 %v4798_v25 }
 0x2b7   : > { %4413 = vmatprep.mubr.f32.mxu1 %v1723_v30  ;;  %4457 = vmatprep.mubr.f32.mxu0 %v1723_v30 }
 0x2b8   : > { %4414 = vmatmul.mubr.f32.gmra.mrb[34].mxu1 %v1724_v29  ;;  %4458 = vmatmul.mubr.f32.gmra.mrb[42].mxu0 %v1724_v29 }
 0x2b9   : > { %4801 = vmatpush3.bf16.msra.mxu1 %v4798_v25 }
 0x2ba   : > { %4803 = vmatprep.subr.bf16.mxu1 %v4802_v31 }
 0x2bd   : > { %4805 = vmatpush3.bf16.msra.mxu1 %v4802_v31 }
 0x2be   : > { %4807 = vmatprep.subr.bf16.mxu1 %v4806_v47 }
 0x2c1   : > { %4809 = vmatpush3.bf16.msra.mxu1 %v4806_v47  ;;  %v2270_v47 = vld [vmem:[%s6331_s11 + $0x8] sm:$0xff] }
 0x2c2   : > { %4811 = vmatprep.subr.bf16.mxu1 %v4810_v51  ;;  %v4826_v48 = vpack.c.bf16 %v2270_v47, %v2269_v46  ;;  %v2586_v46 = vld [vmem:[%s6335_s15 + $0x20] sm:$0xff] }
 0x2c3   : > { %v2594_v47 = vld [vmem:[%s6335_s15 + $0x60] sm:$0xff] }
 0x2c4   : > { %4827 = vmatprep.subr.bf16.mxu0 %v4826_v48 }
 0x2c5   : > { %4829 = vmatpush3.bf16.msra.mxu0 %v4826_v48  ;;  %v2603_v48 = vld [vmem:[%s6335_s15 + $0xa8] sm:$0xff] }
 0x2cd   : > { %v4374_v32 = vpop.f32.mrb[36].mxu0 }
 0x2ce   : > { %v1708_v33 = vadd.f32 %v4374_v32, %v3936_v10  ;;  %v1702_v35 = vpop.f32.mrb[37].mxu0 }
 0x2cf   : > { %v1703_v34 = vadd.f32 %v3936_v10, %v1702_v35 }
 0x2d0   : > { %v1726_v38 = vmax.f32 %v1708_v33, 0.0 }
 0x2d1   : > { %v1725_v36 = vmax.f32 %v1703_v34, 0.0  ;;  %v4377_v37 = vpop.f32.mrb[38].mxu0 }
 0x2d2   : > { %v1718_v39 = vadd.f32 %v4377_v37, %v3936_v10  ;;  %v1712_v40 = vpop.f32.mrb[39].mxu0 }
 0x2d3   : > { %v1713_v41 = vadd.f32 %v3936_v10, %v1712_v40  ;;  %4416 = vmatprep.mubr.f32.mxu1 %v1725_v36  ;;  %4460 = vmatprep.mubr.f32.mxu0 %v1725_v36 }
 0x2d4   : > { %4417 = vmatmul.mubr.f32.gmra.mrb[36].mxu1 %v1726_v38  ;;  %4461 = vmatmul.mubr.f32.gmra.mrb[44].mxu0 %v1726_v38  ;;  %v1728_v43 = vmax.f32 %v1718_v39, 0.0 }
 0x2d5   : > { %v1727_v42 = vmax.f32 %v1713_v41, 0.0 }
 0x2d7   : > { %4419 = vmatprep.mubr.f32.mxu1 %v1727_v42  ;;  %4463 = vmatprep.mubr.f32.mxu0 %v1727_v42  ;;  %v2138_v42 = vld [vmem:[%s6330_s10 + $0x30] sm:$0xff] }
 0x2d8   : > { %4420 = vmatmul.mubr.f32.gmra.mrb[38].mxu1 %v1728_v43  ;;  %4464 = vmatmul.mubr.f32.gmra.mrb[46].mxu0 %v1728_v43  ;;  %v2139_v43 = vld [vmem:[%s6330_s10 + $0x38] sm:$0xff] }
 0x2d9   : > { %v4822_v44 = vpack.c.bf16 %v2139_v43, %v2138_v42 }
 0x387   : > { %v4412_v53 = vpop.f32.mrb[32].mxu1  ;;  %v4456_v54 = vpop.f32.mrb[40].mxu0 }
 0x388   : > { %v5668_v50 = vadd.f32 %v4412_v53, %v3937_v52  ;;  %v1945_v55 = vadd.f32 %v4456_v54, %v3937_v52  ;;  %v1818_v56 = vpop.f32.mrb[33].mxu1  ;;  %v1939_v58 = vpop.f32.mrb[41].mxu0 }
 0x389   : > { %v5670_v59 = vadd.f32 %v3937_v52, %v1818_v56  ;;  %v1940_v61 = vadd.f32 %v3937_v52, %v1939_v58 }
 0x38a   : > { %v1979_v3 = vmul.f32 %v1945_v55, %v5668_v50 }
 0x38b   : > { %v1978_v4 = vmul.f32 %v1940_v61, %v5670_v59  ;;  %v4415_v60 = vpop.f32.mrb[34].mxu1  ;;  %v4459_v5 = vpop.f32.mrb[42].mxu0 }
 0x38c   : > { %v5680_v6 = vadd.f32 %v4415_v60, %v3937_v52  ;;  %v1955_v7 = vadd.f32 %v4459_v5, %v3937_v52  ;;  %v1828_v9 = vpop.f32.mrb[35].mxu1  ;;  %v1949_v10 = vpop.f32.mrb[43].mxu0  ;;  %v2583_v5 = vld [vmem:[%s6335_s15 + $0x8] sm:$0xff] }
 0x38d   : > { %v1829_v12 = vadd.f32 %v3937_v52, %v1828_v9  ;;  %v1950_v14 = vadd.f32 %v3937_v52, %v1949_v10  ;;  %4482 = vmatprep.mubr.msk.f32.mxu1 %vm1994_vm2, %v1978_v4  ;;  %v2582_v9 = vld [vmem:[%s6335_s15] sm:$0xff] }
 0x38e   : > { %v1981_v17 = vmul.f32 %v1955_v7, %v5680_v6  ;;  %4483 = vmatmul.mubr.msk.f32.vlgmr.msra.gmra.mrb[40].mxu1 %vm1994_vm2, %v1979_v3  ;;  %v2590_v10 = vld [vmem:[%s6335_s15 + $0x40] sm:$0xff] }
 0x38f   : > { %v1980_v19 = vmul.f32 %v1950_v14, %v1829_v12  ;;  %4813 = vmatpush3.bf16.msra.mxu1 %v4810_v51  ;;  %v4836_v15 = vpack.c.bf16 %v2590_v10, %v2582_v9  ;;  %v2416_v9 = vld [vmem:[%s6333_s13 + $0x8] sm:$0xff] }
 0x390   : > { %4815 = vmatprep.subr.bf16.mxu1 %v4814_v11 }
 0x391   : > { %4485 = vmatprep.mubr.msk.f32.mxu1 %vm1994_vm2, %v1980_v19  ;;  %v2598_v19 = vld [vmem:[%s6335_s15 + $0x80] sm:$0xff] }
 0x392   : > { %4486 = vmatmul.mubr.msk.f32.gmra.mrb[42].mxu1 %vm1994_vm2, %v1981_v17 }
 0x393   : > { %4817 = vmatpush3.bf16.msra.mxu1 %v4814_v11  ;;  %v2599_v11 = vld [vmem:[%s6335_s15 + $0x88] sm:$0xff] }
 0x394   : > { %4819 = vmatprep.subr.bf16.mxu1 %v4818_v20 }
 0x397   : > { %4821 = vmatpush3.bf16.msra.mxu1 %v4818_v20  ;;  %v2606_v20 = vld [vmem:[%s6335_s15 + $0xc0] sm:$0xff] }
 0x398   : > { %4823 = vmatprep.subr.bf16.mxu1 %v4822_v44 }
 0x39b   : > { %4825 = vmatpush3.bf16.msra.mxu1 %v4822_v44 }
 0x3a7   : > { %v4418_v22 = vpop.f32.mrb[36].mxu1  ;;  %v4462_v23 = vpop.f32.mrb[44].mxu0 }
 0x3a8   : > { %v1844_v24 = vadd.f32 %v4418_v22, %v3937_v52  ;;  %v1965_v25 = vadd.f32 %v4462_v23, %v3937_v52  ;;  %v1838_v26 = vpop.f32.mrb[37].mxu1  ;;  %v1959_v27 = vpop.f32.mrb[45].mxu0  ;;  %v2587_v22 = vld [vmem:[%s6335_s15 + $0x28] sm:$0xff] }
 0x3a9   : > { %v1839_v28 = vadd.f32 %v3937_v52, %v1838_v26  ;;  %v1960_v29 = vadd.f32 %v3937_v52, %v1959_v27  ;;  %v2595_v23 = vld [vmem:[%s6335_s15 + $0x68] sm:$0xff] }
 0x3aa   : > { %v1983_v33 = vmul.f32 %v1965_v25, %v1844_v24  ;;  %v4840_v25 = vpack.c.bf16 %v2606_v20, %v2598_v19  ;;  %v4850_v27 = vpack.c.bf16 %v2595_v23, %v2587_v22  ;;  %v2584_v20 = vld [vmem:[%s6335_s15 + $0x10] sm:$0xff] }
 0x3ab   : > { %v1982_v30 = vmul.f32 %v1960_v29, %v1839_v28  ;;  %v4421_v31 = vpop.f32.mrb[38].mxu1  ;;  %v4465_v32 = vpop.f32.mrb[46].mxu0  ;;  %v4983_v29 = vmov 0   ;;  %v2592_v22 = vld [vmem:[%s6335_s15 + $0x50] sm:$0xff] }
 0x3ac   : > { %v1854_v35 = vadd.f32 %v4421_v31, %v3937_v52  ;;  %v1975_v34 = vadd.f32 %v4465_v32, %v3937_v52  ;;  %v1848_v36 = vpop.f32.mrb[39].mxu1  ;;  %v1969_v37 = vpop.f32.mrb[47].mxu0  ;;  %4972 = vset.pattern.permute.xlu0 %v4983_v29  ;;  %4973 = vset.pattern.permute.xlu1 %v4983_v29  ;;  %v2615_v31 = vld [vmem:[%s6337_s17 + $0x8] sm:$0xff]  ;;  %v2617_v32 = vld [vmem:[%s6337_s17 + $0x18] sm:$0xff] }
 0x3ad   : > { %v1849_v38 = vadd.f32 %v3937_v52, %v1848_v36  ;;  %v1970_v39 = vadd.f32 %v3937_v52, %v1969_v37  ;;  %4488 = vmatprep.mubr.msk.f32.mxu1 %vm1994_vm2, %v1982_v30  ;;  %v2616_v30 = vld [vmem:[%s6337_s17 + $0x10] sm:$0xff]  ;;  %v2621_v36 = vld [vmem:[%s6337_s17 + $0x38] sm:$0xff]  ;;  %v2622_v37 = vld [vmem:[%s6337_s17 + $0x40] sm:$0xff] }
 0x3ae   : > { %4489 = vmatmul.mubr.msk.f32.gmra.mrb[44].mxu1 %vm1994_vm2, %v1983_v33  ;;  %v1985_v41 = vmul.f32 %v1975_v34, %v1854_v35  ;;  %2638 = vperm.xlu1 %4973, %v2616_v30   ;;  %v2618_v33 = vld [vmem:[%s6337_s17 + $0x20] sm:$0xff]  ;;  %v2620_v34 = vld [vmem:[%s6337_s17 + $0x30] sm:$0xff] }
 0x3af   : > { %v1984_v40 = vmul.f32 %v1970_v39, %v1849_v38  ;;  %v2624_v39 = vld [vmem:[%s6337_s17 + $0x50] sm:$0xff] }
 0x3b1   : > { %4491 = vmatprep.mubr.msk.f32.mxu1 %vm1994_vm2, %v1984_v40  ;;  %v2625_v40 = vld [vmem:[%s6337_s17 + $0x58] sm:$0xff] }
 0x3b2   : > { %4492 = vmatmul.mubr.msk.f32.gmra.mrb[46].mxu1 %vm1994_vm2, %v1985_v41  ;;  %2643 = vperm.xlu1 %4973, %v2617_v32  }
 0x461   : > { %v4484_v49 = vpop.f32.mrb[40].mxu1 }
 0x462   : > { %v2085_v51 = vpop.f32.mrb[41].mxu1  ;;  %v2125_v53 = vmul.f32 %v4484_v49, %v5668_v50  ;;  %v2611_v49 = vld [vmem:[%s6335_s15 + $0xe8] sm:$0xff] }
 0x463   : > { %v2124_v52 = vmul.f32 %v2085_v51, %v5670_v59  ;;  %v5810_v51 = vld [vmem:[%s6336_s16] sm:$0xff] }
 0x465   : > { %v4487_v54 = vpop.f32.mrb[42].mxu1  ;;  %4510 = vmatprep.mubr.msk.f32.mxu1 %vm1994_vm2, %v2124_v52  ;;  %v4852_v52 = vpack.c.bf16 %v2594_v47, %v2586_v46 }
 0x466   : > { %v2095_v55 = vpop.f32.mrb[43].mxu1  ;;  %4511 = vmatmul.mubr.msk.f32.vlgmr.msra.gmra.mrb[48].mxu1 %vm1994_vm2, %v2125_v53  ;;  %v2127_v58 = vmul.f32 %v4487_v54, %v5680_v6  ;;  %v2591_v6 = vld [vmem:[%s6335_s15 + $0x48] sm:$0xff]  ;;  %v4854_v53 = vpack.c.bf16 %v2611_v49, %v2603_v48  ;;  %v2602_v54 = vld [vmem:[%s6335_s15 + $0xa0] sm:$0xff] }
 0x467   : > { %v2126_v56 = vmul.f32 %v2095_v55, %v1829_v12  ;;  %v4834_v7 = vpack.c.bf16 %v2591_v6, %v2583_v5  ;;  %v2607_v12 = vld [vmem:[%s6335_s15 + $0xc8] sm:$0xff]  ;;  %v2610_v55 = vld [vmem:[%s6335_s15 + $0xe0] sm:$0xff]  ;;  %v5896_v5 = vld [vmem:[%s6336_s16 + $0x50] sm:$0xff] }
 0x468   : > { %v4838_v17 = vpack.c.bf16 %v2607_v12, %v2599_v11  ;;  %v5904_v6 = vld [vmem:[%s6336_s16 + $0x58] sm:$0xff] }
 0x469   : > { %4513 = vmatprep.mubr.msk.f32.mxu1 %vm1994_vm2, %v2126_v56  ;;  %4835 = vmatprep.subr.bf16.mxu0 %v4834_v7  ;;  %v5824_v56 = vld [vmem:[%s6336_s16 + $0x8] sm:$0xff]  ;;  %v2415_v7 = vld [vmem:[%s6333_s13] sm:$0xff]  ;;  %v2585_v11 = vld [vmem:[%s6335_s15 + $0x18] sm:$0xff] }
 0x46a   : > { %4514 = vmatmul.mubr.msk.f32.gmra.mrb[50].mxu1 %vm1994_vm2, %v2127_v58  ;;  %v4856_v58 = vpack.c.bf16 %v2610_v55, %v2602_v54  ;;  %v4830_v10 = vpack.c.bf16 %v2416_v9, %v2415_v7  ;;  %v2593_v12 = vld [vmem:[%s6335_s15 + $0x58] sm:$0xff] }
 0x46c   : > { %4831 = vmatprep.subr.bf16.mxu1 %v4830_v10 }
 0x46d   : > { %4833 = vmatpush3.bf16.msra.mxu1 %v4830_v10 }
 0x481   : > { %v4490_v61 = vpop.f32.mrb[44].mxu1 }
 0x482   : > { %v2105_v2 = vpop.f32.mrb[45].mxu1  ;;  %v2129_v3 = vmul.f32 %v4490_v61, %v1844_v24  ;;  %v5832_v61 = vld [vmem:[%s6336_s16 + $0x10] sm:$0xff] }
 0x483   : > { %v2128_v1 = vmul.f32 %v2105_v2, %v1839_v28  ;;  %v2614_v28 = vld [vmem:[%s6337_s17] sm:$0xff]  ;;  %v5840_v2 = vld [vmem:[%s6336_s16 + $0x18] sm:$0xff] }
 0x484   : > { %2628 = vperm.xlu0 %4972, %v2614_v28   ;;  %v4844_v28 = vpack.c.bf16 %v2592_v22, %v2584_v20  ;;  %v2605_v20 = vld [vmem:[%s6335_s15 + $0xb8] sm:$0xff] }
 0x485   : > { %v4493_v59 = vpop.f32.mrb[46].mxu1  ;;  %4516 = vmatprep.mubr.msk.f32.mxu1 %vm1994_vm2, %v2128_v1  ;;  %v5848_v1 = vld [vmem:[%s6336_s16 + $0x20] sm:$0xff]  ;;  %v2613_v22 = vld [vmem:[%s6335_s15 + $0xf8] sm:$0xff] }
 0x486   : > { %v2115_v50 = vpop.f32.mrb[47].mxu1  ;;  %4517 = vmatmul.mubr.msk.f32.gmra.mrb[52].mxu1 %vm1994_vm2, %v2129_v3  ;;  %v2131_v60 = vmul.f32 %v4493_v59, %v1854_v35  ;;  %v2619_v35 = vld [vmem:[%s6337_s17 + $0x28] sm:$0xff]  ;;  %v5864_v59 = vld [vmem:[%s6336_s16 + $0x30] sm:$0xff] }
 0x487   : > { %v2130_v4 = vmul.f32 %v2115_v50, %v1849_v38  ;;  %2653 = vperm.xlu1 %4973, %v2619_v35   ;;  %v2623_v38 = vld [vmem:[%s6337_s17 + $0x48] sm:$0xff]  ;;  %v5872_v50 = vld [vmem:[%s6336_s16 + $0x38] sm:$0xff]  ;;  %v2608_v35 = vld [vmem:[%s6335_s15 + $0xd0] sm:$0xff] }
 0x488   : > { %2633 = vperm.xlu0 %4972, %v2615_v31   ;;  %v5856_v3 = vld [vmem:[%s6336_s16 + $0x28] sm:$0xff] }
 0x489   : > { %4519 = vmatprep.mubr.msk.f32.mxu1 %vm1994_vm2, %v2130_v4  ;;  %v5880_v4 = vld [vmem:[%s6336_s16 + $0x40] sm:$0xff] }
 0x48a   : > { %4520 = vmatmul.mubr.msk.f32.gmra.mrb[54].mxu1 %vm1994_vm2, %v2131_v60  ;;  %v5888_v60 = vld [vmem:[%s6336_s16 + $0x48] sm:$0xff] }
 0x48b   : > { %2663 = vperm.xlu1 %4973, %v2621_v36   ;;  %v2589_v36 = vld [vmem:[%s6335_s15 + $0x38] sm:$0xff] }
 0x48c   : > { %2648 = vperm.xlu0 %4972, %v2618_v33   ;;  %v2600_v33 = vld [vmem:[%s6335_s15 + $0x90] sm:$0xff] }
 0x48f   : > { %2673 = vperm.xlu1 %4973, %v2623_v38  }
 0x490   : > { %2658 = vperm.xlu0 %4972, %v2620_v34  }
 0x493   : > { %2683 = vperm.xlu1 %4973, %v2625_v40  }
 0x494   : > { %2668 = vperm.xlu0 %4972, %v2622_v37   ;;  %v2597_v37 = vld [vmem:[%s6335_s15 + $0x78] sm:$0xff] }
 0x498   : > { %2678 = vperm.xlu0 %4972, %v2624_v39   ;;  %v4848_v39 = vpack.c.bf16 %v2608_v35, %v2600_v33 }
 0x539   : > { %v4512_v14 = vpop.f32.mrb[48].mxu1 }
 0x53a   : > { %v2230_v16 = vpop.f32.mrb[49].mxu1 }
 0x53b   : > { %4526 = vmatprep.mubr.msk.f32.mxu0 %vm742_vm0, %v2230_v16 }
 0x53c   : > { %4527 = vmatmul.mubr.msk.f32.vlgmr.msra.gmra.mrb[48].mxu0 %vm742_vm0, %v4512_v14  ;;  %v4842_v14 = vpack.c.bf16 %v2593_v12, %v2585_v11  ;;  %v2588_v12 = vld [vmem:[%s6335_s15 + $0x30] sm:$0xff] }
 0x53d   : > { %v4515_v24 = vpop.f32.mrb[50].mxu1  ;;  %4837 = vmatpush1.bf16.msra.mxu0 %v4836_v15  ;;  %v3954_v15 = vld [vmem:[%s6332_s12] ss:$0 sm:$0xff] }
 0x53e   : > { %v2240_v26 = vpop.f32.mrb[51].mxu1  ;;  %4839 = vmatprep.subr.bf16.mxu0 %v4838_v17  ;;  %4843 = vmatprep.subr.bf16.mxu1 %v4842_v14  ;;  %v2596_v14 = vld [vmem:[%s6335_s15 + $0x70] sm:$0xff] }
 0x53f   : > { %4529 = vmatprep.mubr.msk.f32.mxu0 %vm742_vm0, %v2240_v26 }
 0x540   : > { %4530 = vmatmul.mubr.msk.f32.gmra.mrb[50].mxu0 %vm742_vm0, %v4515_v24  ;;  %v2601_v24 = vld [vmem:[%s6335_s15 + $0x98] sm:$0xff] }
 0x541   : > { %4841 = vmatpush1.bf16.msra.mxu0 %v4840_v25  ;;  %v2609_v25 = vld [vmem:[%s6335_s15 + $0xd8] sm:$0xff] }
 0x542   : > { %4851 = vmatprep.subr.bf16.mxu0 %v4850_v27  ;;  %v4846_v32 = vpack.c.bf16 %v2609_v25, %v2601_v24  ;;  %v6017_v25 = vpop.permute.xlu1 %2638 }
 0x559   : > { %v4518_v41 = vpop.f32.mrb[52].mxu1 }
 0x55a   : > { %v2250_v42 = vpop.f32.mrb[53].mxu1 }
 0x55b   : > { %4532 = vmatprep.mubr.msk.f32.mxu0 %vm742_vm0, %v2250_v42  ;;  %v3368_v42 = vld [vmem:[%s6339_s19] sm:$0xff] }
 0x55c   : > { %4533 = vmatmul.mubr.msk.f32.gmra.mrb[52].mxu0 %vm742_vm0, %v4518_v41  ;;  %v4858_v41 = vpack.c.bf16 %v2597_v37, %v2589_v36  ;;  %3372 = vperm.xlu0 %4972, %v3368_v42  }
 0x55d   : > { %v4521_v43 = vpop.f32.mrb[54].mxu1 }
 0x55e   : > { %v2260_v44 = vpop.f32.mrb[55].mxu1 }
 0x55f   : > { %4535 = vmatprep.mubr.msk.f32.mxu0 %vm742_vm0, %v2260_v44 }
 0x560   : > { %4536 = vmatmul.mubr.msk.f32.gmra.mrb[54].mxu0 %vm742_vm0, %v4521_v43  ;;  %v3369_v43 = vld [vmem:[%s6339_s19 + $0x8] sm:$0x1] }
 0x561   : > { %2786 = vmatprep.mubr.f32.mxu0 %v4982_v0  ;;  %3377 = vperm.xlu1 %4973, %v3369_v43   ;;  %v6032_v43 = vpop.permute.xlu1 %2643 }
 0x564   : > { %3972 = vmatmul.mubr.msk.f32.vlgmr.msra.gmra.mrb[56].mxu0 %vm2561_vm3, %v5810_v51 }
 0x565   : > { %2792 = vmatprep.mubr.f32.mxu0 %v4982_v0  ;;  %4853 = vmatpush1.bf16.msra.mxu0 %v4852_v52 }
 0x566   : > { %4855 = vmatprep.subr.bf16.mxu0 %v4854_v53  ;;  %v5994_v53 = vpop.permute.xlu0 %2628 }
 0x568   : > { %3973 = vmatmul.mubr.msk.f32.gmra.mrb[58].mxu0 %vm2561_vm3, %v5824_v56 }
 0x569   : > { %2798 = vmatprep.mubr.f32.mxu0 %v4982_v0  ;;  %4857 = vmatpush1.bf16.msra.mxu0 %v4856_v58 }
 0x56c   : > { %3974 = vmatmul.mubr.msk.f32.gmra.mrb[60].mxu0 %vm2561_vm3, %v5832_v61 }
 0x56d   : > { %2804 = vmatprep.mubr.f32.mxu0 %v4982_v0 }
 0x570   : > { %3975 = vmatmul.mubr.msk.f32.gmra.mrb[62].mxu0 %vm2561_vm3, %v5840_v2 }
 0x571   : > { %2810 = vmatprep.mubr.f32.mxu0 %v4982_v0 }
 0x574   : > { %3976 = vmatmul.mubr.msk.f32.gmra.mrb[64].mxu0 %vm2561_vm3, %v5848_v1 }
 0x575   : > { %2816 = vmatprep.mubr.f32.mxu0 %v4982_v0 }
 0x578   : > { %3977 = vmatmul.mubr.msk.f32.gmra.mrb[66].mxu0 %vm2561_vm3, %v5856_v3 }
 0x579   : > { %2822 = vmatprep.mubr.f32.mxu0 %v4982_v0 }
 0x57c   : > { %3978 = vmatmul.mubr.msk.f32.gmra.mrb[68].mxu0 %vm2561_vm3, %v5864_v59 }
 0x57d   : > { %2828 = vmatprep.mubr.f32.mxu0 %v4982_v0 }
 0x580   : > { %3979 = vmatmul.mubr.msk.f32.gmra.mrb[70].mxu0 %vm2561_vm3, %v5872_v50 }
 0x581   : > { %2834 = vmatprep.mubr.f32.mxu0 %v4982_v0 }
 0x584   : > { %3980 = vmatmul.mubr.msk.f32.gmra.mrb[72].mxu0 %vm2561_vm3, %v5880_v4 }
 0x585   : > { %2840 = vmatprep.mubr.f32.mxu0 %v4982_v0 }
 0x588   : > { %3981 = vmatmul.mubr.msk.f32.gmra.mrb[74].mxu0 %vm2561_vm3, %v5888_v60 }
 0x589   : > { %2846 = vmatprep.mubr.f32.mxu0 %v4982_v0 }
 0x58c   : > { %3982 = vmatmul.mubr.msk.f32.gmra.mrb[76].mxu0 %vm2561_vm3, %v5896_v5 }
 0x58d   : > { %2852 = vmatprep.mubr.f32.mxu0 %v4982_v0 }
 0x590   : > { %3983 = vmatmul.mubr.msk.f32.gmra.mrb[78].mxu0 %vm2561_vm3, %v5904_v6 }
 0x591   : > { %3060 = vmatprep.mubr.f32.mxu0 %v4982_v0 }
 0x594   : > { %3996 = vmatmul.mubr.msk.f32.vlgmr.msra.gmra.mrb[80].mxu0 %vm2561_vm3, %v5810_v51 }
 0x595   : > { %3066 = vmatprep.mubr.f32.mxu0 %v4982_v0 }
 0x598   : > { %3997 = vmatmul.mubr.msk.f32.gmra.mrb[82].mxu0 %vm2561_vm3, %v5824_v56 }
 0x599   : > { %3072 = vmatprep.mubr.f32.mxu0 %v4982_v0 }
 0x59c   : > { %3998 = vmatmul.mubr.msk.f32.gmra.mrb[84].mxu0 %vm2561_vm3, %v5832_v61 }
 0x59d   : > { %3078 = vmatprep.mubr.f32.mxu0 %v4982_v0 }
 0x5a0   : > { %3999 = vmatmul.mubr.msk.f32.gmra.mrb[86].mxu0 %vm2561_vm3, %v5840_v2 }
 0x5a1   : > { %3084 = vmatprep.mubr.f32.mxu0 %v4982_v0 }
 0x5a4   : > { %4000 = vmatmul.mubr.msk.f32.gmra.mrb[88].mxu0 %vm2561_vm3, %v5848_v1 }
 0x5a5   : > { %3090 = vmatprep.mubr.f32.mxu0 %v4982_v0 }
 0x5a8   : > { %4001 = vmatmul.mubr.msk.f32.gmra.mrb[90].mxu0 %vm2561_vm3, %v5856_v3 }
 0x5a9   : > { %3096 = vmatprep.mubr.f32.mxu0 %v4982_v0 }
 0x5ac   : > { %4002 = vmatmul.mubr.msk.f32.gmra.mrb[92].mxu0 %vm2561_vm3, %v5864_v59 }
 0x5ad   : > { %3102 = vmatprep.mubr.f32.mxu0 %v4982_v0 }
 0x5b0   : > { %4003 = vmatmul.mubr.msk.f32.gmra.mrb[94].mxu0 %vm2561_vm3, %v5872_v50 }
 0x5b1   : > { %3108 = vmatprep.mubr.f32.mxu0 %v4982_v0 }
 0x5b4   : > { %4004 = vmatmul.mubr.msk.f32.gmra.mrb[96].mxu0 %vm2561_vm3, %v5880_v4 }
 0x5b5   : > { %3114 = vmatprep.mubr.f32.mxu0 %v4982_v0 }
 0x5b8   : > { %4005 = vmatmul.mubr.msk.f32.gmra.mrb[98].mxu0 %vm2561_vm3, %v5888_v60 }
 0x5b9   : > { %3120 = vmatprep.mubr.f32.mxu0 %v4982_v0 }
 0x5bc   : > { %4006 = vmatmul.mubr.msk.f32.gmra.mrb[100].mxu0 %vm2561_vm3, %v5896_v5 }
 0x5bd   : > { %3126 = vmatprep.mubr.f32.mxu0 %v4982_v0 }
 0x5c0   : > { %4007 = vmatmul.mubr.msk.f32.gmra.mrb[102].mxu0 %vm2561_vm3, %v5904_v6 }
 0x5c1   : > { %3451 = vmatprep.mubr.f32.mxu0 %v4982_v0 }
 0x60f   : > { %v4528_v16 = vpop.f32.mrb[48].mxu0 }
 0x610   : > { %v2374_v17 = vadd.f32 %v4528_v16, %v3954_v15  ;;  %v2368_v19 = vpop.f32.mrb[49].mxu0 }
 0x611   : > { %v2369_v23 = vadd.f32 %v3954_v15, %v2368_v19  ;;  %v6007_v19 = vpop.permute.xlu0 %2633 }
 0x612   : > { %v2408_v29 = vmax.f32 %v2374_v17, 0.0 }
 0x613   : > { %v2407_v26 = vmax.f32 %v2369_v23, 0.0  ;;  %v4531_v27 = vpop.f32.mrb[50].mxu0  ;;  %v4860_v23 = vpack.c.bf16 %v2596_v14, %v2588_v12  ;;  %v6045_v14 = vpop.permute.xlu1 %2653 }
 0x614   : > { %v2384_v30 = vadd.f32 %v4531_v27, %v3954_v15  ;;  %v2378_v31 = vpop.f32.mrb[51].mxu0 }
 0x615   : > { %v2379_v34 = vadd.f32 %v3954_v15, %v2378_v31  ;;  %4542 = vmatprep.mubr.msk.f32.mxu1 %vm742_vm0, %v2407_v26 }
 0x616   : > { %4543 = vmatmul.mubr.msk.f32.vlgmr.msra.gmra.mrb[56].mxu1 %vm742_vm0, %v2408_v29  ;;  %v2410_v40 = vmax.f32 %v2384_v30, 0.0  ;;  %v2604_v29 = vld [vmem:[%s6335_s15 + $0xb0] sm:$0xff] }
 0x617   : > { %v2409_v38 = vmax.f32 %v2379_v34, 0.0  ;;  %4845 = vmatpush1.bf16.msra.mxu1 %v4844_v28  ;;  %v4862_v28 = vpack.c.bf16 %v2613_v22, %v2605_v20  ;;  %v2612_v30 = vld [vmem:[%s6335_s15 + $0xf0] sm:$0xff] }
 0x618   : > { %4847 = vmatprep.subr.bf16.mxu1 %v4846_v32  ;;  %v4864_v37 = vpack.c.bf16 %v2612_v30, %v2604_v29 }
 0x619   : > { %4545 = vmatprep.mubr.msk.f32.mxu1 %vm742_vm0, %v2409_v38 }
 0x61a   : > { %4546 = vmatmul.mubr.msk.f32.gmra.mrb[58].mxu1 %vm742_vm0, %v2410_v40 }
 0x61b   : > { %4849 = vmatpush1.bf16.msra.mxu1 %v4848_v39 }
 0x61c   : > { %4859 = vmatprep.subr.bf16.mxu1 %v4858_v41 }
 0x62f   : > { %v4534_v44 = vpop.f32.mrb[52].mxu0 }
 0x630   : > { %v2394_v46 = vadd.f32 %v4534_v44, %v3954_v15  ;;  %v2388_v47 = vpop.f32.mrb[53].mxu0 }
 0x631   : > { %v2389_v48 = vadd.f32 %v3954_v15, %v2388_v47 }
 0x632   : > { %v2412_v54 = vmax.f32 %v2394_v46, 0.0 }
 0x633   : > { %v2411_v49 = vmax.f32 %v2389_v48, 0.0  ;;  %v4537_v52 = vpop.f32.mrb[54].mxu0 }
 0x634   : > { %v2404_v55 = vadd.f32 %v4537_v52, %v3954_v15  ;;  %v2398_v58 = vpop.f32.mrb[55].mxu0 }
 0x635   : > { %v2399_v7 = vadd.f32 %v3954_v15, %v2398_v58  ;;  %4548 = vmatprep.mubr.msk.f32.mxu1 %vm742_vm0, %v2411_v49 }
 0x636   : > { %4549 = vmatmul.mubr.msk.f32.gmra.mrb[60].mxu1 %vm742_vm0, %v2412_v54  ;;  %v2414_v11 = vmax.f32 %v2404_v55, 0.0  ;;  %v6039_v54 = vpop.permute.xlu0 %2648 }
 0x637   : > { %v2413_v9 = vmax.f32 %v2399_v7, 0.0  ;;  %v2788_v10 = vpop.f32.mrb[56].mxu0 }
 0x638   : > { %v2789_v16 = vadd.f32 %v2788_v10, %v5994_v53  ;;  %v2790_v17 = vpop.f32.mrb[57].mxu0 }
 0x639   : > { %4551 = vmatprep.mubr.msk.f32.mxu1 %vm742_vm0, %v2413_v9  ;;  %v2791_v15 = vadd.f32 %v2790_v17, %v5994_v53 }
 0x63a   : > { %4552 = vmatmul.mubr.msk.f32.gmra.mrb[62].mxu1 %vm742_vm0, %v2414_v11  ;;  %v3270_v26 = vmax.f32 %v2789_v16, 0.0 }
 0x63b   : > { %2923 = vmatprep.mubr.f32.mxu1 %v4982_v0  ;;  %v2794_v24 = vpop.f32.mrb[58].mxu0  ;;  %v3271_v32 = vmax.f32 %v2791_v15, 0.0 }
 0x63c   : > { %v2796_v27 = vpop.f32.mrb[59].mxu0  ;;  %v2795_v31 = vadd.f32 %v2794_v24, %v6007_v19 }
 0x63d   : > { %v2797_v33 = vadd.f32 %v2796_v27, %v6007_v19 }
 0x63e   : > { %3984 = vmatmul.mubr.msk.f32.vlgmr.msra.gmra.mrb[64].mxu1 %vm2561_vm3, %v5810_v51  ;;  %v3278_v35 = vmax.f32 %v2795_v31, 0.0 }
 0x63f   : > { %4861 = vmatpush1.bf16.msra.mxu1 %v4860_v23  ;;  %2929 = vmatprep.mubr.f32.mxu1 %v4982_v0  ;;  %v3279_v34 = vmax.f32 %v2797_v33, 0.0  ;;  %v2800_v36 = vpop.f32.mrb[60].mxu0 }
 0x640   : > { %v2801_v38 = vadd.f32 %v2800_v36, %v6017_v25  ;;  %v2802_v39 = vpop.f32.mrb[61].mxu0  ;;  %4863 = vmatprep.subr.bf16.mxu1 %v4862_v28  ;;  %v4868_v40 = vpack.c.bf16 %v3278_v35, %v3270_v26  ;;  %v6053_v26 = vpop.permute.xlu0 %2658 }
 0x641   : > { %v4866_v41 = vpack.c.bf16 %v3279_v34, %v3271_v32  ;;  %v2803_v42 = vadd.f32 %v2802_v39, %v6017_v25  ;;  %v6059_v35 = vpop.permute.xlu1 %2663 }
 0x642   : > { %3985 = vmatmul.mubr.msk.f32.gmra.mrb[66].mxu1 %vm2561_vm3, %v5824_v56  ;;  %v3286_v46 = vmax.f32 %v2801_v38, 0.0 }
 0x643   : > { %2935 = vmatprep.mubr.f32.mxu1 %v4982_v0  ;;  %v2806_v44 = vpop.f32.mrb[62].mxu0  ;;  %4865 = vmatpush1.bf16.msra.mxu1 %v4864_v37  ;;  %v3287_v49 = vmax.f32 %v2803_v42, 0.0 }
 0x644   : > { %v2808_v47 = vpop.f32.mrb[63].mxu0  ;;  %4867 = vmatprep.subr.bf16.mxu0 %v4866_v41  ;;  %v2807_v48 = vadd.f32 %v2806_v44, %v6032_v43  ;;  %v6067_v42 = vpop.permute.xlu0 %2668 }
 0x645   : > { %v2809_v52 = vadd.f32 %v2808_v47, %v6032_v43  ;;  %4869 = vmatpush1.bf16.msra.mxu0 %v4868_v40 }
 0x646   : > { %3986 = vmatmul.mubr.msk.f32.gmra.mrb[68].mxu1 %vm2561_vm3, %v5832_v61  ;;  %v3294_v55 = vmax.f32 %v2807_v48, 0.0 }
 0x647   : > { %2941 = vmatprep.mubr.f32.mxu1 %v4982_v0  ;;  %v3295_v58 = vmax.f32 %v2809_v52, 0.0  ;;  %v2812_v7 = vpop.f32.mrb[64].mxu0 }
 0x648   : > { %v2814_v9 = vpop.f32.mrb[65].mxu0  ;;  %v4872_v10 = vpack.c.bf16 %v3294_v55, %v3286_v46  ;;  %v2813_v11 = vadd.f32 %v2812_v7, %v6039_v54 }
 0x649   : > { %v4870_v12 = vpack.c.bf16 %v3295_v58, %v3287_v49  ;;  %v2815_v16 = vadd.f32 %v2814_v9, %v6039_v54  ;;  %v6073_v58 = vpop.permute.xlu1 %2673 }
 0x64a   : > { %3987 = vmatmul.mubr.msk.f32.gmra.mrb[70].mxu1 %vm2561_vm3, %v5840_v2  ;;  %v3302_v22 = vmax.f32 %v2813_v11, 0.0 }
 0x64b   : > { %2947 = vmatprep.mubr.f32.mxu1 %v4982_v0  ;;  %v2818_v17 = vpop.f32.mrb[66].mxu0  ;;  %4871 = vmatprep.subr.bf16.mxu0 %v4870_v12  ;;  %v3303_v24 = vmax.f32 %v2815_v16, 0.0 }
 0x64c   : > { %v2820_v15 = vpop.f32.mrb[67].mxu0  ;;  %4873 = vmatpush1.bf16.msra.mxu0 %v4872_v10  ;;  %v2819_v20 = vadd.f32 %v2818_v17, %v6045_v14 }
 0x64d   : > { %v2821_v23 = vadd.f32 %v2820_v15, %v6045_v14  ;;  %v6081_v15 = vpop.permute.xlu0 %2678 }
 0x64e   : > { %3988 = vmatmul.mubr.msk.f32.gmra.mrb[72].mxu1 %vm2561_vm3, %v5848_v1  ;;  %v3310_v27 = vmax.f32 %v2819_v20, 0.0 }
 0x64f   : > { %2953 = vmatprep.mubr.f32.mxu1 %v4982_v0  ;;  %v3311_v28 = vmax.f32 %v2821_v23, 0.0  ;;  %v2824_v29 = vpop.f32.mrb[68].mxu0 }
 0x650   : > { %v2826_v30 = vpop.f32.mrb[69].mxu0  ;;  %v4876_v31 = vpack.c.bf16 %v3310_v27, %v3302_v22  ;;  %v2825_v32 = vadd.f32 %v2824_v29, %v6053_v26 }
 0x651   : > { %v4874_v33 = vpack.c.bf16 %v3311_v28, %v3303_v24  ;;  %v2827_v34 = vadd.f32 %v2826_v30, %v6053_v26  ;;  %v6087_v30 = vpop.permute.xlu1 %2683 }
 0x652   : > { %3989 = vmatmul.mubr.msk.f32.gmra.mrb[74].mxu1 %vm2561_vm3, %v5856_v3  ;;  %v3318_v39 = vmax.f32 %v2825_v32, 0.0 }
 0x653   : > { %2959 = vmatprep.mubr.f32.mxu1 %v4982_v0  ;;  %v2830_v36 = vpop.f32.mrb[70].mxu0  ;;  %4875 = vmatprep.subr.bf16.mxu0 %v4874_v33  ;;  %v3319_v41 = vmax.f32 %v2827_v34, 0.0 }
 0x654   : > { %v2832_v37 = vpop.f32.mrb[71].mxu0  ;;  %4877 = vmatpush1.bf16.msra.mxu0 %v4876_v31  ;;  %v2831_v38 = vadd.f32 %v2830_v36, %v6059_v35 }
 0x655   : > { %v2833_v40 = vadd.f32 %v2832_v37, %v6059_v35 }
 0x656   : > { %3990 = vmatmul.mubr.msk.f32.gmra.mrb[76].mxu1 %vm2561_vm3, %v5864_v59  ;;  %v3326_v44 = vmax.f32 %v2831_v38, 0.0 }
 0x657   : > { %2965 = vmatprep.mubr.f32.mxu1 %v4982_v0  ;;  %v3327_v46 = vmax.f32 %v2833_v40, 0.0  ;;  %v2836_v47 = vpop.f32.mrb[72].mxu0 }
 0x658   : > { %v2838_v48 = vpop.f32.mrb[73].mxu0  ;;  %v4880_v49 = vpack.c.bf16 %v3326_v44, %v3318_v39  ;;  %v2837_v52 = vadd.f32 %v2836_v47, %v6067_v42 }
 0x659   : > { %v4878_v55 = vpack.c.bf16 %v3327_v46, %v3319_v41  ;;  %v2839_v7 = vadd.f32 %v2838_v48, %v6067_v42 }
 0x65a   : > { %3991 = vmatmul.mubr.msk.f32.gmra.mrb[78].mxu1 %vm2561_vm3, %v5872_v50  ;;  %v3334_v12 = vmax.f32 %v2837_v52, 0.0 }
 0x65b   : > { %2971 = vmatprep.mubr.f32.mxu1 %v4982_v0  ;;  %v2842_v9 = vpop.f32.mrb[74].mxu0  ;;  %4879 = vmatprep.subr.bf16.mxu0 %v4878_v55  ;;  %v3335_v17 = vmax.f32 %v2839_v7, 0.0  ;;  %v6106_v55 = vld [vmem:[%s6338_s18] sm:$0xff] }
 0x65c   : > { %v2844_v10 = vpop.f32.mrb[75].mxu0  ;;  %4881 = vmatpush1.bf16.msra.mxu0 %v4880_v49  ;;  %v2843_v11 = vadd.f32 %v2842_v9, %v6073_v58 }
 0x65d   : > { %v2845_v16 = vadd.f32 %v2844_v10, %v6073_v58 }
 0x65e   : > { %3992 = vmatmul.mubr.msk.f32.gmra.mrb[80].mxu1 %vm2561_vm3, %v5880_v4  ;;  %v3342_v20 = vmax.f32 %v2843_v11, 0.0 }
 0x65f   : > { %v3343_v22 = vmax.f32 %v2845_v16, 0.0  ;;  %v2848_v23 = vpop.f32.mrb[76].mxu0  ;;  %2977 = vmatprep.mubr.f32.mxu1 %v4982_v0 }
 0x660   : > { %v2850_v24 = vpop.f32.mrb[77].mxu0  ;;  %v4884_v27 = vpack.c.bf16 %v3342_v20, %v3334_v12  ;;  %v2849_v28 = vadd.f32 %v2848_v23, %v6081_v15 }
 0x661   : > { %v4882_v29 = vpack.c.bf16 %v3343_v22, %v3335_v17  ;;  %v2851_v31 = vadd.f32 %v2850_v24, %v6081_v15  ;;  %v6119_v22 = vld [vmem:[%s6338_s18 + $0x8] sm:$0x1] }
 0x662   : > { %3993 = vmatmul.mubr.msk.f32.gmra.mrb[82].mxu1 %vm2561_vm3, %v5888_v60  ;;  %v3350_v36 = vmax.f32 %v2849_v28, 0.0 }
 0x663   : > { %v2854_v32 = vpop.f32.mrb[78].mxu0  ;;  %2983 = vmatprep.mubr.f32.mxu1 %v4982_v0  ;;  %4883 = vmatprep.subr.bf16.mxu0 %v4882_v29  ;;  %v3351_v38 = vmax.f32 %v2851_v31, 0.0 }
 0x664   : > { %v2856_v33 = vpop.f32.mrb[79].mxu0  ;;  %4885 = vmatpush1.bf16.msra.mxu0 %v4884_v27  ;;  %v2855_v34 = vadd.f32 %v2854_v32, %v6087_v30 }
 0x665   : > { %v2857_v37 = vadd.f32 %v2856_v33, %v6087_v30 }
 0x666   : > { %3994 = vmatmul.mubr.msk.f32.gmra.mrb[84].mxu1 %vm2561_vm3, %v5896_v5  ;;  %v3358_v39 = vmax.f32 %v2855_v34, 0.0 }
 0x667   : > { %v3359_v40 = vmax.f32 %v2857_v37, 0.0  ;;  %2989 = vmatprep.mubr.f32.mxu1 %v4982_v0  ;;  %v3062_v41 = vpop.f32.mrb[80].mxu0 }
 0x668   : > { %v4888_v44 = vpack.c.bf16 %v3358_v39, %v3350_v36  ;;  %v3063_v46 = vadd.f32 %v3062_v41, %v5994_v53  ;;  %v3064_v47 = vpop.f32.mrb[81].mxu0 }
 0x669   : > { %v4886_v48 = vpack.c.bf16 %v3359_v40, %v3351_v38  ;;  %v3065_v49 = vadd.f32 %v3064_v47, %v5994_v53 }
 0x66a   : > { %3995 = vmatmul.mubr.msk.f32.gmra.mrb[86].mxu1 %vm2561_vm3, %v5904_v6  ;;  %v3274_v7 = vmax.f32 %v3063_v46, 0.0 }
 0x66b   : > { %4887 = vmatprep.subr.bf16.mxu0 %v4886_v48  ;;  %3197 = vmatprep.mubr.f32.mxu1 %v4982_v0  ;;  %v3068_v52 = vpop.f32.mrb[82].mxu0  ;;  %v3275_v11 = vmax.f32 %v3065_v49, 0.0 }
 0x66c   : > { %4889 = vmatpush1.bf16.msra.mxu0 %v4888_v44  ;;  %v3069_v9 = vadd.f32 %v3068_v52, %v6007_v19  ;;  %v3070_v10 = vpop.f32.mrb[83].mxu0 }
 0x66d   : > { %v3071_v12 = vadd.f32 %v3070_v10, %v6007_v19 }
 0x66e   : > { %4008 = vmatmul.mubr.msk.f32.vlgmr.msra.gmra.mrb[88].mxu1 %vm2561_vm3, %v5810_v51  ;;  %v3282_v16 = vmax.f32 %v3069_v9, 0.0 }
 0x66f   : > { %4020 = vmatmul.mubr.msk.f32.vlgmr.msra.gmra.mrb[104].mxu0 %vm3380_vm4, %v6106_v55  ;;  %3203 = vmatprep.mubr.f32.mxu1 %v4982_v0  ;;  %v3283_v17 = vmax.f32 %v3071_v12, 0.0  ;;  %v3074_v20 = vpop.f32.mrb[84].mxu0 }
 0x670   : > { %3457 = vmatprep.mubr.f32.mxu0 %v4982_v0  ;;  %v4916_v23 = vpack.c.bf16 %v3282_v16, %v3274_v7  ;;  %v3075_v24 = vadd.f32 %v3074_v20, %v6017_v25  ;;  %v3076_v27 = vpop.f32.mrb[85].mxu0 }
 0x671   : > { %v4914_v51 = vpack.c.bf16 %v3283_v17, %v3275_v11  ;;  %v3077_v28 = vadd.f32 %v3076_v27, %v6017_v25 }
 0x672   : > { %4009 = vmatmul.mubr.msk.f32.gmra.mrb[90].mxu1 %vm2561_vm3, %v5824_v56  ;;  %v3290_v31 = vmax.f32 %v3075_v24, 0.0 }
 0x673   : > { %4021 = vmatmul.mubr.msk.f32.gmra.mrb[106].mxu0 %vm3380_vm4, %v6119_v22  ;;  %3209 = vmatprep.mubr.f32.mxu1 %v4982_v0  ;;  %v3080_v29 = vpop.f32.mrb[86].mxu0  ;;  %v3291_v34 = vmax.f32 %v3077_v28, 0.0 }
 0x674   : > { %v3081_v32 = vadd.f32 %v3080_v29, %v6032_v43  ;;  %v3082_v33 = vpop.f32.mrb[87].mxu0  ;;  %4915 = vmatprep.subr.bf16.mxu0 %v4914_v51  ;;  %3605 = vmatprep.mubr.f32.mxu0 %v4982_v0 }
 0x675   : > { %v3083_v36 = vadd.f32 %v3082_v33, %v6032_v43  ;;  %4917 = vmatpush1.bf16.msra.mxu0 %v4916_v23 }
 0x676   : > { %4010 = vmatmul.mubr.msk.f32.gmra.mrb[92].mxu1 %vm2561_vm3, %v5832_v61  ;;  %v3298_v56 = vmax.f32 %v3081_v32, 0.0 }
 0x677   : > { %3215 = vmatprep.mubr.f32.mxu1 %v4982_v0  ;;  %v3299_v37 = vmax.f32 %v3083_v36, 0.0  ;;  %v3086_v38 = vpop.f32.mrb[88].mxu0 }
 0x678   : > { %v4920_v39 = vpack.c.bf16 %v3298_v56, %v3290_v31  ;;  %v3087_v40 = vadd.f32 %v3086_v38, %v6039_v54  ;;  %v3088_v41 = vpop.f32.mrb[89].mxu0 }
 0x679   : > { %v4918_v44 = vpack.c.bf16 %v3299_v37, %v3291_v34  ;;  %v3089_v46 = vadd.f32 %v3088_v41, %v6039_v54 }
 0x67a   : > { %4011 = vmatmul.mubr.msk.f32.gmra.mrb[94].mxu1 %vm2561_vm3, %v5840_v2  ;;  %v3306_v61 = vmax.f32 %v3087_v40, 0.0 }
 0x67b   : > { %3221 = vmatprep.mubr.f32.mxu1 %v4982_v0  ;;  %v3092_v47 = vpop.f32.mrb[90].mxu0  ;;  %4919 = vmatprep.subr.bf16.mxu0 %v4918_v44  ;;  %v3307_v52 = vmax.f32 %v3089_v46, 0.0 }
 0x67c   : > { %v3093_v48 = vadd.f32 %v3092_v47, %v6045_v14  ;;  %v3094_v49 = vpop.f32.mrb[91].mxu0  ;;  %4921 = vmatpush1.bf16.msra.mxu0 %v4920_v39 }
 0x67d   : > { %v3095_v7 = vadd.f32 %v3094_v49, %v6045_v14 }
 0x67e   : > { %4012 = vmatmul.mubr.msk.f32.gmra.mrb[96].mxu1 %vm2561_vm3, %v5848_v1  ;;  %v3314_v9 = vmax.f32 %v3093_v48, 0.0 }
 0x67f   : > { %3227 = vmatprep.mubr.f32.mxu1 %v4982_v0  ;;  %v3315_v10 = vmax.f32 %v3095_v7, 0.0  ;;  %v3098_v2 = vpop.f32.mrb[92].mxu0 }
 0x680   : > { %v4924_v11 = vpack.c.bf16 %v3314_v9, %v3306_v61  ;;  %v3099_v12 = vadd.f32 %v3098_v2, %v6053_v26  ;;  %v3100_v16 = vpop.f32.mrb[93].mxu0 }
 0x681   : > { %v4922_v17 = vpack.c.bf16 %v3315_v10, %v3307_v52  ;;  %v3101_v20 = vadd.f32 %v3100_v16, %v6053_v26 }
 0x682   : > { %4013 = vmatmul.mubr.msk.f32.gmra.mrb[98].mxu1 %vm2561_vm3, %v5856_v3  ;;  %v3322_v1 = vmax.f32 %v3099_v12, 0.0 }
 0x683   : > { %3233 = vmatprep.mubr.f32.mxu1 %v4982_v0  ;;  %v3104_v23 = vpop.f32.mrb[94].mxu0  ;;  %4923 = vmatprep.subr.bf16.mxu0 %v4922_v17  ;;  %v3323_v51 = vmax.f32 %v3101_v20, 0.0 }
 0x684   : > { %v3105_v24 = vadd.f32 %v3104_v23, %v6059_v35  ;;  %v3106_v27 = vpop.f32.mrb[95].mxu0  ;;  %4925 = vmatpush1.bf16.msra.mxu0 %v4924_v11 }
 0x685   : > { %v3107_v28 = vadd.f32 %v3106_v27, %v6059_v35 }
 0x686   : > { %4014 = vmatmul.mubr.msk.f32.gmra.mrb[100].mxu1 %vm2561_vm3, %v5864_v59  ;;  %v3330_v29 = vmax.f32 %v3105_v24, 0.0 }
 0x687   : > { %3239 = vmatprep.mubr.f32.mxu1 %v4982_v0  ;;  %v3331_v31 = vmax.f32 %v3107_v28, 0.0  ;;  %v3110_v3 = vpop.f32.mrb[96].mxu0 }
 0x688   : > { %v4928_v32 = vpack.c.bf16 %v3330_v29, %v3322_v1  ;;  %v3111_v33 = vadd.f32 %v3110_v3, %v6067_v42  ;;  %v3112_v34 = vpop.f32.mrb[97].mxu0 }
 0x689   : > { %v4926_v36 = vpack.c.bf16 %v3331_v31, %v3323_v51  ;;  %v3113_v56 = vadd.f32 %v3112_v34, %v6067_v42 }
 0x68a   : > { %4015 = vmatmul.mubr.msk.f32.gmra.mrb[102].mxu1 %vm2561_vm3, %v5872_v50  ;;  %v3338_v59 = vmax.f32 %v3111_v33, 0.0 }
 0x68b   : > { %3245 = vmatprep.mubr.f32.mxu1 %v4982_v0  ;;  %v3116_v37 = vpop.f32.mrb[98].mxu0  ;;  %4927 = vmatprep.subr.bf16.mxu0 %v4926_v36  ;;  %v3339_v40 = vmax.f32 %v3113_v56, 0.0 }
 0x68c   : > { %v3117_v38 = vadd.f32 %v3116_v37, %v6073_v58  ;;  %v3118_v39 = vpop.f32.mrb[99].mxu0  ;;  %4929 = vmatpush1.bf16.msra.mxu0 %v4928_v32 }
 0x68d   : > { %v3119_v41 = vadd.f32 %v3118_v39, %v6073_v58 }
 0x68e   : > { %4016 = vmatmul.mubr.msk.f32.gmra.mrb[104].mxu1 %vm2561_vm3, %v5880_v4  ;;  %v3346_v44 = vmax.f32 %v3117_v38, 0.0 }
 0x68f   : > { %v3347_v46 = vmax.f32 %v3119_v41, 0.0  ;;  %v3122_v47 = vpop.f32.mrb[100].mxu0  ;;  %3251 = vmatprep.mubr.f32.mxu1 %v4982_v0 }
 0x690   : > { %v4932_v50 = vpack.c.bf16 %v3346_v44, %v3338_v59  ;;  %v3123_v61 = vadd.f32 %v3122_v47, %v6081_v15  ;;  %v3124_v48 = vpop.f32.mrb[101].mxu0 }
 0x691   : > { %v4930_v49 = vpack.c.bf16 %v3347_v46, %v3339_v40  ;;  %v3125_v52 = vadd.f32 %v3124_v48, %v6081_v15 }
 0x692   : > { %4017 = vmatmul.mubr.msk.f32.gmra.mrb[106].mxu1 %vm2561_vm3, %v5888_v60  ;;  %v3354_v4 = vmax.f32 %v3123_v61, 0.0 }
 0x693   : > { %v3128_v7 = vpop.f32.mrb[102].mxu0  ;;  %3257 = vmatprep.mubr.f32.mxu1 %v4982_v0  ;;  %4931 = vmatprep.subr.bf16.mxu0 %v4930_v49  ;;  %v3355_v2 = vmax.f32 %v3125_v52, 0.0 }
 0x694   : > { %v3129_v9 = vadd.f32 %v3128_v7, %v6087_v30  ;;  %v3130_v10 = vpop.f32.mrb[103].mxu0  ;;  %4933 = vmatpush1.bf16.msra.mxu0 %v4932_v50 }
 0x695   : > { %v3131_v11 = vadd.f32 %v3130_v10, %v6087_v30 }
 0x696   : > { %v3362_v12 = vmax.f32 %v3129_v9, 0.0  ;;  %4018 = vmatmul.mubr.msk.f32.gmra.mrb[108].mxu1 %vm2561_vm3, %v5896_v5  ;;  %v3963_v5 = vld [vmem:[%s6334_s14] ss:$0 sm:$0xff] }
 0x697   : > { %v3363_v16 = vmax.f32 %v3131_v11, 0.0  ;;  %3263 = vmatprep.mubr.f32.mxu1 %v4982_v0 }
 0x698   : > { %v4936_v60 = vpack.c.bf16 %v3362_v12, %v3354_v4 }
 0x699   : > { %v4934_v17 = vpack.c.bf16 %v3363_v16, %v3355_v2 }
 0x69a   : > { %4019 = vmatmul.mubr.msk.f32.gmra.mrb[110].mxu1 %vm2561_vm3, %v5904_v6 }
 0x69b   : > { %4935 = vmatprep.subr.bf16.mxu0 %v4934_v17  ;;  %3528 = vmatprep.mubr.f32.mxu1 %v4982_v0 }
 0x69c   : > { %4937 = vmatpush1.bf16.msra.mxu0 %v4936_v60 }
 0x69f   : > { %4024 = vmatmul.mubr.msk.f32.vlgmr.msra.gmra.mrb[108].mxu0 %vm3380_vm4, %v6106_v55 }
 0x6a0   : > { %3611 = vmatprep.mubr.f32.mxu0 %v4982_v0 }
 0x6a3   : > { %4025 = vmatmul.mubr.msk.f32.gmra.mrb[110].mxu0 %vm3380_vm4, %v6119_v22 }
 0x6e9   : > { %v4544_v20 = vpop.f32.mrb[56].mxu1 }
 0x6ea   : > { %v2520_v23 = vadd.f32 %v4544_v20, %v3963_v5  ;;  %v2514_v6 = vpop.f32.mrb[57].mxu1 }
 0x6eb   : > { %v2515_v1 = vadd.f32 %v3963_v5, %v2514_v6 }
 0x6ec   : > { %v2554_v24 = vadd.f32 %v2520_v23, %v5560_v18 }
 0x6ed   : > { %v2553_v27 = vadd.f32 %v2515_v1, %v5545_v8  ;;  %v4547_v51 = vpop.f32.mrb[58].mxu1 }
 0x6ee   : > { %2563 = vst.msk [vmem:[%s6189_s29 + $0x8] sm:$0xff] %vm2561_vm3, %v2554_v24  ;;  %v2530_v28 = vadd.f32 %v4547_v51, %v3963_v5  ;;  %v2524_v29 = vpop.f32.mrb[59].mxu1 }
 0x6ef   : > { %2562 = vst.msk [vmem:[%s6189_s29] sm:$0xff] %vm2561_vm3, %v2553_v27  ;;  %v2525_v31 = vadd.f32 %v3963_v5, %v2524_v29 }
 0x6f0   : > { %v2556_v3 = vadd.f32 %v2530_v28, %v5571_v21 }
 0x6f1   : > { %v2555_v32 = vadd.f32 %v2525_v31, %v5556_v13 }
 0x6f2   : > { %2565 = vst.msk [vmem:[%s6189_s29 + $0x18] sm:$0xff] %vm2561_vm3, %v2556_v3 }
 0x6f3   : > { %2564 = vst.msk [vmem:[%s6189_s29 + $0x10] sm:$0xff] %vm2561_vm3, %v2555_v32 }
 0x709   : > { %v4550_v8 = vpop.f32.mrb[60].mxu1 }
 0x70a   : > { %v2540_v18 = vadd.f32 %v4550_v8, %v3963_v5  ;;  %v2534_v33 = vpop.f32.mrb[61].mxu1 }
 0x70b   : > { %v2535_v34 = vadd.f32 %v3963_v5, %v2534_v33 }
 0x70c   : > { %v2558_v36 = vadd.f32 %v2540_v18, %v5611_v62 }
 0x70d   : > { %v2557_v56 = vadd.f32 %v2535_v34, %v5602_v45  ;;  %v4553_v37 = vpop.f32.mrb[62].mxu1 }
 0x70e   : > { %2567 = vst.msk [vmem:[%s6189_s29 + $0x28] sm:$0xff] %vm2561_vm3, %v2558_v36  ;;  %v2550_v21 = vadd.f32 %v4553_v37, %v3963_v5  ;;  %v2544_v59 = vpop.f32.mrb[63].mxu1 }
 0x70f   : > { %2566 = vst.msk [vmem:[%s6189_s29 + $0x20] sm:$0xff] %vm2561_vm3, %v2557_v56  ;;  %v2545_v13 = vadd.f32 %v3963_v5, %v2544_v59 }
 0x710   : > { %v2560_v38 = vadd.f32 %v2550_v21, %v5616_v63 }
 0x711   : > { %v2559_v39 = vadd.f32 %v2545_v13, %v5607_v57  ;;  %v2925_v40 = vpop.f32.mrb[64].mxu1 }
 0x712   : > { %2569 = vst.msk [vmem:[%s6189_s29 + $0x38] sm:$0xff] %vm2561_vm3, %v2560_v38  ;;  %v2927_v41 = vpop.f32.mrb[65].mxu1  ;;  %v2926_v45 = vadd.f32 %v2925_v40, %v5994_v53 }
 0x713   : > { %2568 = vst.msk [vmem:[%s6189_s29 + $0x30] sm:$0xff] %vm2561_vm3, %v2559_v39  ;;  %v2928_v62 = vadd.f32 %v2927_v41, %v5994_v53 }
 0x714   : > { %v3272_v61 = vmax.f32 %v2926_v45, 0.0 }
 0x715   : > { %v2931_v44 = vpop.f32.mrb[66].mxu1  ;;  %v3273_v48 = vmax.f32 %v2928_v62, 0.0 }
 0x716   : > { %v2932_v46 = vadd.f32 %v2931_v44, %v6007_v19  ;;  %v2933_v47 = vpop.f32.mrb[67].mxu1 }
 0x717   : > { %v2934_v50 = vadd.f32 %v2933_v47, %v6007_v19 }
 0x718   : > { %v3280_v63 = vmax.f32 %v2932_v46, 0.0 }
 0x719   : > { %v3281_v57 = vmax.f32 %v2934_v50, 0.0  ;;  %v2937_v49 = vpop.f32.mrb[68].mxu1 }
 0x71a   : > { %v4892_v52 = vpack.c.bf16 %v3280_v63, %v3272_v61  ;;  %v2939_v7 = vpop.f32.mrb[69].mxu1  ;;  %v2938_v9 = vadd.f32 %v2937_v49, %v6017_v25 }
 0x71b   : > { %v4890_v4 = vpack.c.bf16 %v3281_v57, %v3273_v48  ;;  %v2940_v10 = vadd.f32 %v2939_v7, %v6017_v25 }
 0x71c   : > { %v3288_v60 = vmax.f32 %v2938_v9, 0.0 }
 0x71d   : > { %v2943_v2 = vpop.f32.mrb[70].mxu1  ;;  %4891 = vmatprep.subr.bf16.mxu1 %v4890_v4  ;;  %v3289_v5 = vmax.f32 %v2940_v10, 0.0 }
 0x71e   : > { %v2944_v11 = vadd.f32 %v2943_v2, %v6032_v43  ;;  %v2945_v12 = vpop.f32.mrb[71].mxu1  ;;  %4893 = vmatpush1.bf16.msra.mxu1 %v4892_v52 }
 0x71f   : > { %v2946_v16 = vadd.f32 %v2945_v12, %v6032_v43 }
 0x720   : > { %v3296_v17 = vmax.f32 %v2944_v11, 0.0 }
 0x721   : > { %v3297_v20 = vmax.f32 %v2946_v16, 0.0  ;;  %v2949_v23 = vpop.f32.mrb[72].mxu1 }
 0x722   : > { %v4896_v6 = vpack.c.bf16 %v3296_v17, %v3288_v60  ;;  %v2951_v1 = vpop.f32.mrb[73].mxu1  ;;  %v2950_v27 = vadd.f32 %v2949_v23, %v6039_v54 }
 0x723   : > { %v4894_v24 = vpack.c.bf16 %v3297_v20, %v3289_v5  ;;  %v2952_v51 = vadd.f32 %v2951_v1, %v6039_v54 }
 0x724   : > { %v3304_v32 = vmax.f32 %v2950_v27, 0.0 }
 0x725   : > { %v2955_v28 = vpop.f32.mrb[74].mxu1  ;;  %4895 = vmatprep.subr.bf16.mxu1 %v4894_v24  ;;  %v3305_v18 = vmax.f32 %v2952_v51, 0.0  ;;  %v6239_v51 = vpop.permute.xlu0 %3372 }
 0x726   : > { %v2956_v29 = vadd.f32 %v2955_v28, %v6045_v14  ;;  %v2957_v31 = vpop.f32.mrb[75].mxu1  ;;  %4897 = vmatpush1.bf16.msra.mxu1 %v4896_v6 }
 0x727   : > { %v2958_v3 = vadd.f32 %v2957_v31, %v6045_v14 }
 0x728   : > { %v3312_v8 = vmax.f32 %v2956_v29, 0.0 }
 0x729   : > { %v3313_v33 = vmax.f32 %v2958_v3, 0.0  ;;  %v2961_v34 = vpop.f32.mrb[76].mxu1 }
 0x72a   : > { %v4900_v36 = vpack.c.bf16 %v3312_v8, %v3304_v32  ;;  %v2963_v56 = vpop.f32.mrb[77].mxu1  ;;  %v2962_v21 = vadd.f32 %v2961_v34, %v6053_v26 }
 0x72b   : > { %v4898_v37 = vpack.c.bf16 %v3313_v33, %v3305_v18  ;;  %v2964_v59 = vadd.f32 %v2963_v56, %v6053_v26 }
 0x72c   : > { %v3320_v41 = vmax.f32 %v2962_v21, 0.0 }
 0x72d   : > { %v2967_v13 = vpop.f32.mrb[78].mxu1  ;;  %4899 = vmatprep.subr.bf16.mxu1 %v4898_v37  ;;  %v3321_v62 = vmax.f32 %v2964_v59, 0.0  ;;  %v6251_v37 = vpop.permute.xlu1 %3377 }
 0x72e   : > { %v2968_v38 = vadd.f32 %v2967_v13, %v6059_v35  ;;  %v2969_v39 = vpop.f32.mrb[79].mxu1  ;;  %4901 = vmatpush1.bf16.msra.mxu1 %v4900_v36 }
 0x72f   : > { %v2970_v40 = vadd.f32 %v2969_v39, %v6059_v35 }
 0x730   : > { %v3328_v45 = vmax.f32 %v2968_v38, 0.0 }
 0x731   : > { %v3329_v44 = vmax.f32 %v2970_v40, 0.0  ;;  %v2973_v46 = vpop.f32.mrb[80].mxu1 }
 0x732   : > { %v4904_v47 = vpack.c.bf16 %v3328_v45, %v3320_v41  ;;  %v2975_v50 = vpop.f32.mrb[81].mxu1  ;;  %v2974_v63 = vadd.f32 %v2973_v46, %v6067_v42 }
 0x733   : > { %v4902_v61 = vpack.c.bf16 %v3329_v44, %v3321_v62  ;;  %v2976_v48 = vadd.f32 %v2975_v50, %v6067_v42 }
 0x734   : > { %v3336_v4 = vmax.f32 %v2974_v63, 0.0 }
 0x735   : > { %v2979_v57 = vpop.f32.mrb[82].mxu1  ;;  %4903 = vmatprep.subr.bf16.mxu1 %v4902_v61  ;;  %v3337_v10 = vmax.f32 %v2976_v48, 0.0 }
 0x736   : > { %v2980_v49 = vadd.f32 %v2979_v57, %v6073_v58  ;;  %v2981_v52 = vpop.f32.mrb[83].mxu1  ;;  %4905 = vmatpush1.bf16.msra.mxu1 %v4904_v47 }
 0x737   : > { %v2982_v7 = vadd.f32 %v2981_v52, %v6073_v58 }
 0x738   : > { %v3344_v9 = vmax.f32 %v2980_v49, 0.0 }
 0x739   : > { %v3345_v2 = vmax.f32 %v2982_v7, 0.0  ;;  %v2985_v11 = vpop.f32.mrb[84].mxu1 }
 0x73a   : > { %v4908_v12 = vpack.c.bf16 %v3344_v9, %v3336_v4  ;;  %v2987_v16 = vpop.f32.mrb[85].mxu1  ;;  %v2986_v17 = vadd.f32 %v2985_v11, %v6081_v15 }
 0x73b   : > { %v4906_v60 = vpack.c.bf16 %v3345_v2, %v3337_v10  ;;  %v2988_v5 = vadd.f32 %v2987_v16, %v6081_v15 }
 0x73c   : > { %v3352_v24 = vmax.f32 %v2986_v17, 0.0 }
 0x73d   : > { %v2991_v20 = vpop.f32.mrb[86].mxu1  ;;  %4907 = vmatprep.subr.bf16.mxu1 %v4906_v60  ;;  %v3353_v28 = vmax.f32 %v2988_v5, 0.0 }
 0x73e   : > { %v2992_v23 = vadd.f32 %v2991_v20, %v6087_v30  ;;  %v2993_v6 = vpop.f32.mrb[87].mxu1  ;;  %4909 = vmatpush1.bf16.msra.mxu1 %v4908_v12 }
 0x73f   : > { %v2994_v1 = vadd.f32 %v2993_v6, %v6087_v30 }
 0x740   : > { %v3360_v27 = vmax.f32 %v2992_v23, 0.0 }
 0x741   : > { %v3361_v29 = vmax.f32 %v2994_v1, 0.0  ;;  %v3199_v31 = vpop.f32.mrb[88].mxu1 }
 0x742   : > { %v4912_v3 = vpack.c.bf16 %v3360_v27, %v3352_v24  ;;  %v3201_v32 = vpop.f32.mrb[89].mxu1  ;;  %v3453_v8 = vpop.f32.mrb[104].mxu0  ;;  %v3200_v36 = vadd.f32 %v3199_v31, %v5994_v53 }
 0x743   : > { %v4910_v18 = vpack.c.bf16 %v3361_v29, %v3353_v28  ;;  %v3454_v33 = vadd.f32 %v3453_v8, %v6239_v51  ;;  %v3455_v34 = vpop.f32.mrb[105].mxu0  ;;  %v3202_v21 = vadd.f32 %v3201_v32, %v5994_v53 }
 0x744   : > { %v3456_v56 = vadd.f32 %v3455_v34, %v6239_v51  ;;  %v3276_v62 = vmax.f32 %v3200_v36, 0.0 }
 0x745   : > { %3695 = vst [vmem:[%s6246_s4] sm:$0xff] %v3454_v33  ;;  %v3205_v59 = vpop.f32.mrb[90].mxu1  ;;  %4911 = vmatprep.subr.bf16.mxu1 %v4910_v18  ;;  %v3277_v46 = vmax.f32 %v3202_v21, 0.0 }
 0x746   : > { %3696 = vst [vmem:[%s6246_s4 + $0x8] sm:$0xff] %v3456_v56  ;;  %v3206_v13 = vadd.f32 %v3205_v59, %v6007_v19  ;;  %v3207_v38 = vpop.f32.mrb[91].mxu1  ;;  %v3459_v39 = vpop.f32.mrb[106].mxu0  ;;  %4913 = vmatpush1.bf16.msra.mxu1 %v4912_v3 }
 0x747   : > { %v3208_v40 = vadd.f32 %v3207_v38, %v6007_v19  ;;  %v3460_v41 = vadd.f32 %v3459_v39, %v6251_v37  ;;  %v3461_v45 = vpop.f32.mrb[107].mxu0 }
 0x748   : > { %v3284_v44 = vmax.f32 %v3206_v13, 0.0  ;;  %v3462_v53 = vadd.f32 %v3461_v45, %v6251_v37 }
 0x749   : > { %v3285_v47 = vmax.f32 %v3208_v40, 0.0  ;;  %3703 = vst [vmem:[%s6246_s4 + $0x40] sm:$0x1] %v3460_v41  ;;  %v3211_v50 = vpop.f32.mrb[92].mxu1  ;;  %4022 = vmatmul.mubr.msk.f32.vlgmr.msra.gmra.mrb[112].mxu1 %vm3380_vm4, %v6106_v55 }
 0x74a   : > { %v4940_v61 = vpack.c.bf16 %v3284_v44, %v3276_v62  ;;  %3704 = vst [vmem:[%s6246_s4 + $0x48] sm:$0x1] %v3462_v53  ;;  %v3213_v63 = vpop.f32.mrb[93].mxu1  ;;  %3534 = vmatprep.mubr.f32.mxu1 %v4982_v0  ;;  %v3212_v48 = vadd.f32 %v3211_v50, %v6017_v25 }
 0x74b   : > { %v4938_v19 = vpack.c.bf16 %v3285_v47, %v3277_v46  ;;  %v3214_v57 = vadd.f32 %v3213_v63, %v6017_v25 }
 0x74c   : > { %v3292_v9 = vmax.f32 %v3212_v48, 0.0 }
 0x74d   : > { %v3217_v49 = vpop.f32.mrb[94].mxu1  ;;  %4023 = vmatmul.mubr.msk.f32.gmra.mrb[114].mxu1 %vm3380_vm4, %v6119_v22  ;;  %4939 = vmatprep.subr.bf16.mxu1 %v4938_v19  ;;  %v3293_v2 = vmax.f32 %v3214_v57, 0.0 }
 0x74e   : > { %v3218_v52 = vadd.f32 %v3217_v49, %v6032_v43  ;;  %v3219_v7 = vpop.f32.mrb[95].mxu1  ;;  %4941 = vmatpush1.bf16.msra.mxu1 %v4940_v61  ;;  %3682 = vmatprep.mubr.f32.mxu1 %v4982_v0 }
 0x74f   : > { %v3220_v4 = vadd.f32 %v3219_v7, %v6032_v43 }
 0x750   : > { %v3300_v10 = vmax.f32 %v3218_v52, 0.0 }
 0x751   : > { %v3301_v11 = vmax.f32 %v3220_v4, 0.0  ;;  %v3223_v12 = vpop.f32.mrb[96].mxu1 }
 0x752   : > { %v4944_v16 = vpack.c.bf16 %v3300_v10, %v3292_v9  ;;  %v3225_v25 = vpop.f32.mrb[97].mxu1  ;;  %v3224_v17 = vadd.f32 %v3223_v12, %v6039_v54 }
 0x753   : > { %v4942_v60 = vpack.c.bf16 %v3301_v11, %v3293_v2  ;;  %v3226_v5 = vadd.f32 %v3225_v25, %v6039_v54 }
 0x754   : > { %v3308_v1 = vmax.f32 %v3224_v17, 0.0 }
 0x755   : > { %v3229_v20 = vpop.f32.mrb[98].mxu1  ;;  %4943 = vmatprep.subr.bf16.mxu1 %v4942_v60  ;;  %v3309_v27 = vmax.f32 %v3226_v5, 0.0 }
 0x756   : > { %v3230_v23 = vadd.f32 %v3229_v20, %v6045_v14  ;;  %v3231_v6 = vpop.f32.mrb[99].mxu1  ;;  %4945 = vmatpush1.bf16.msra.mxu1 %v4944_v16 }
 0x757   : > { %v3232_v43 = vadd.f32 %v3231_v6, %v6045_v14 }
 0x758   : > { %v3316_v24 = vmax.f32 %v3230_v23, 0.0 }
 0x759   : > { %v3317_v28 = vmax.f32 %v3232_v43, 0.0  ;;  %v3235_v29 = vpop.f32.mrb[100].mxu1 }
 0x75a   : > { %v4948_v31 = vpack.c.bf16 %v3316_v24, %v3308_v1  ;;  %v3237_v3 = vpop.f32.mrb[101].mxu1  ;;  %v3236_v8 = vadd.f32 %v3235_v29, %v6053_v26 }
 0x75b   : > { %v4946_v32 = vpack.c.bf16 %v3317_v28, %v3309_v27  ;;  %v3238_v54 = vadd.f32 %v3237_v3, %v6053_v26 }
 0x75c   : > { %v3324_v36 = vmax.f32 %v3236_v8, 0.0 }
 0x75d   : > { %v3241_v18 = vpop.f32.mrb[102].mxu1  ;;  %4947 = vmatprep.subr.bf16.mxu1 %v4946_v32  ;;  %v3325_v21 = vmax.f32 %v3238_v54, 0.0 }
 0x75e   : > { %v3242_v33 = vadd.f32 %v3241_v18, %v6059_v35  ;;  %v3243_v34 = vpop.f32.mrb[103].mxu1  ;;  %4949 = vmatpush1.bf16.msra.mxu1 %v4948_v31 }
 0x75f   : > { %v3244_v14 = vadd.f32 %v3243_v34, %v6059_v35 }
 0x760   : > { %v3332_v56 = vmax.f32 %v3242_v33, 0.0 }
 0x761   : > { %v3333_v59 = vmax.f32 %v3244_v14, 0.0  ;;  %v3247_v13 = vpop.f32.mrb[104].mxu1 }
 0x762   : > { %v4952_v38 = vpack.c.bf16 %v3332_v56, %v3324_v36  ;;  %v3249_v39 = vpop.f32.mrb[105].mxu1  ;;  %v3248_v41 = vadd.f32 %v3247_v13, %v6067_v42 }
 0x763   : > { %v4950_v40 = vpack.c.bf16 %v3333_v59, %v3325_v21  ;;  %v3250_v26 = vadd.f32 %v3249_v39, %v6067_v42 }
 0x764   : > { %v3340_v53 = vmax.f32 %v3248_v41, 0.0 }
 0x765   : > { %v3253_v45 = vpop.f32.mrb[106].mxu1  ;;  %4951 = vmatprep.subr.bf16.mxu1 %v4950_v40  ;;  %v3341_v47 = vmax.f32 %v3250_v26, 0.0 }
 0x766   : > { %v3254_v62 = vadd.f32 %v3253_v45, %v6073_v58  ;;  %v3255_v44 = vpop.f32.mrb[107].mxu1  ;;  %4953 = vmatpush1.bf16.msra.mxu1 %v4952_v38 }
 0x767   : > { %v3256_v35 = vadd.f32 %v3255_v44, %v6073_v58 }
 0x768   : > { %v3348_v46 = vmax.f32 %v3254_v62, 0.0 }
 0x769   : > { %v3349_v50 = vmax.f32 %v3256_v35, 0.0  ;;  %v3259_v61 = vpop.f32.mrb[108].mxu1 }
 0x76a   : > { %v4956_v63 = vpack.c.bf16 %v3348_v46, %v3340_v53  ;;  %v3261_v19 = vpop.f32.mrb[109].mxu1  ;;  %v3260_v57 = vadd.f32 %v3259_v61, %v6081_v15 }
 0x76b   : > { %v4954_v48 = vpack.c.bf16 %v3349_v50, %v3341_v47  ;;  %v3262_v42 = vadd.f32 %v3261_v19, %v6081_v15 }
 0x76c   : > { %v3356_v4 = vmax.f32 %v3260_v57, 0.0 }
 0x76d   : > { %v3265_v49 = vpop.f32.mrb[110].mxu1  ;;  %4955 = vmatprep.subr.bf16.mxu1 %v4954_v48  ;;  %v3357_v10 = vmax.f32 %v3262_v42, 0.0 }
 0x76e   : > { %v3266_v52 = vadd.f32 %v3265_v49, %v6087_v30  ;;  %v3267_v7 = vpop.f32.mrb[111].mxu1  ;;  %4957 = vmatpush1.bf16.msra.mxu1 %v4956_v63 }
 0x76f   : > { %v3268_v58 = vadd.f32 %v3267_v7, %v6087_v30 }
 0x770   : > { %v3364_v9 = vmax.f32 %v3266_v52, 0.0 }
 0x771   : > { %v3365_v2 = vmax.f32 %v3268_v58, 0.0 }
 0x772   : > { %v4960_v11 = vpack.c.bf16 %v3364_v9, %v3356_v4  ;;  %v3607_v12 = vpop.f32.mrb[108].mxu0 }
 0x773   : > { %v4958_v16 = vpack.c.bf16 %v3365_v2, %v3357_v10  ;;  %v3608_v15 = vadd.f32 %v3607_v12, %v6239_v51  ;;  %v3609_v25 = vpop.f32.mrb[109].mxu0 }
 0x774   : > { %v3610_v60 = vadd.f32 %v3609_v25, %v6239_v51 }
 0x775   : > { %3699 = vst [vmem:[%s6246_s4 + $0x20] sm:$0xff] %v3608_v15  ;;  %4959 = vmatprep.subr.bf16.mxu1 %v4958_v16 }
 0x776   : > { %3700 = vst [vmem:[%s6246_s4 + $0x28] sm:$0xff] %v3610_v60  ;;  %v3613_v30 = vpop.f32.mrb[110].mxu0  ;;  %4961 = vmatpush1.bf16.msra.mxu1 %v4960_v11 }
 0x777   : > { %v3614_v17 = vadd.f32 %v3613_v30, %v6251_v37  ;;  %v3615_v5 = vpop.f32.mrb[111].mxu0 }
 0x778   : > { %v3616_v20 = vadd.f32 %v3615_v5, %v6251_v37 }
 0x779   : > { %3707 = vst [vmem:[%s6246_s4 + $0x60] sm:$0x1] %v3614_v17  ;;  %4026 = vmatmul.mubr.msk.f32.vlgmr.msra.gmra.mrb[116].mxu1 %vm3380_vm4, %v6106_v55 }
 0x77a   : > { %3708 = vst [vmem:[%s6246_s4 + $0x68] sm:$0x1] %v3616_v20  ;;  %3688 = vmatprep.mubr.f32.mxu1 %v4982_v0 }
 0x77d   : > { %4027 = vmatmul.mubr.msk.f32.gmra.mrb[118].mxu1 %vm3380_vm4, %v6119_v22 }
 0x81c   : > { %v3530_v23 = vpop.f32.mrb[112].mxu1 }
 0x81d   : > { %v3531_v6 = vadd.f32 %v3530_v23, %v6239_v51  ;;  %v3532_v43 = vpop.f32.mrb[113].mxu1 }
 0x81e   : > { %v3533_v1 = vadd.f32 %v3532_v43, %v6239_v51 }
 0x81f   : > { %3697 = vst [vmem:[%s6246_s4 + $0x10] sm:$0xff] %v3531_v6 }
 0x820   : > { %3698 = vst [vmem:[%s6246_s4 + $0x18] sm:$0xff] %v3533_v1  ;;  %v3536_v24 = vpop.f32.mrb[114].mxu1 }
 0x821   : > { %v3537_v55 = vadd.f32 %v3536_v24, %v6251_v37  ;;  %v3538_v27 = vpop.f32.mrb[115].mxu1 }
 0x822   : > { %v3539_v0 = vadd.f32 %v3538_v27, %v6251_v37 }
 0x823   : > { %3705 = vst [vmem:[%s6246_s4 + $0x50] sm:$0x1] %v3537_v55 }
 0x824   : > { %3706 = vst [vmem:[%s6246_s4 + $0x58] sm:$0x1] %v3539_v0 }
 0x84c   : > { %v3684_v22 = vpop.f32.mrb[116].mxu1 }
 0x84d   : > { %v3685_v28 = vadd.f32 %v3684_v22, %v6239_v51  ;;  %v3686_v29 = vpop.f32.mrb[117].mxu1 }
 0x84e   : > { %v3687_v31 = vadd.f32 %v3686_v29, %v6239_v51 }
 0x84f   : > { %3701 = vst [vmem:[%s6246_s4 + $0x30] sm:$0xff] %v3685_v28 }
 0x850   : > { %3702 = vst [vmem:[%s6246_s4 + $0x38] sm:$0xff] %v3687_v31  ;;  %v3690_v3 = vpop.f32.mrb[118].mxu1 }
 0x851   : > { %v3691_v32 = vadd.f32 %v3690_v3, %v6251_v37  ;;  %v3692_v8 = vpop.f32.mrb[119].mxu1 }
 0x852   : > { %v3693_v54 = vadd.f32 %v3692_v8, %v6251_v37 }
 0x853   : > { %3709 = vst [vmem:[%s6246_s4 + $0x70] sm:$0x1] %v3691_v32 }
 0x854   : > { %3710 = vst [vmem:[%s6246_s4 + $0x78] sm:$0x1] %v3693_v54 }
 0x855 PF: > { %s32_s2 = sadd.s32 1, %s4980_s2  }
 0x856   : > { %p29_p4 = scmp.ge.s32.totalorder %s32_s2, 4  }
 0x858   :  { %31 = sbr.rel (!%p29_p4) target bundleno = 7 (0x7), region = 148 }

</bundles_post_ra>
